<compile_context>
chip_gen: v7x
topology: tpu7x:2x2x1
jax: 0.10.0
libtpu: 0.0.40
codegen_flags: <defaults>
</compile_context>

<pallas_src>
import functools
import math

import jax
import jax.numpy as jnp
from jax.experimental import pallas as pl
from jax.experimental.pallas import tpu as pltpu


def _layernorm(x, g, b, eps=1e-5):
    # x: (S, D) f32; g, b: (1, D) f32   (matches torch.nn.LayerNorm, eps=1e-5)
    mu = jnp.mean(x, axis=-1, keepdims=True)
    var = jnp.mean((x - mu) ** 2, axis=-1, keepdims=True)
    return (x - mu) * jax.lax.rsqrt(var + eps) * g + b


def _softmax(x):
    # x: (..., T) f32. Divide via EUP reciprocal (approx) instead of VPU divide.
    m = jnp.max(x, axis=-1, keepdims=True)
    e = jnp.exp(x - m)
    return e * pl.reciprocal(jnp.sum(e, axis=-1, keepdims=True), approx=True)


def _mha(q_in, kv_in, wq, wk, wv, wo, bo, n_heads):
    # q_in: (S, D) f32, kv_in: (T, D) f32; wq/wk/wv/wo: (D, D) bf16; bo: (1, D) f32
    S, D = q_in.shape
    T = kv_in.shape[0]
    dh = D // n_heads
    scale = 1.0 / math.sqrt(dh)

    # MXU operands in bf16, accumulate in f32. Fold the 1/sqrt(dh) into q.
    q_bf = (q_in * scale).astype(jnp.bfloat16)
    kv_bf = kv_in.astype(jnp.bfloat16)

    q = jnp.dot(q_bf, wq, preferred_element_type=jnp.float32)   # (S, D) f32
    k = jnp.dot(kv_bf, wk, preferred_element_type=jnp.float32)  # (T, D) f32
    v = jnp.dot(kv_bf, wv, preferred_element_type=jnp.float32)  # (T, D) f32

    # NOTE: explicit (head-leading) layout kept for robust Mosaic lowering of the
    # batched dot_general; operands fed to the MXU in bf16.
    q = q.reshape(S, n_heads, dh).transpose(1, 0, 2).astype(jnp.bfloat16)  # (H,S,dh)
    k = k.reshape(T, n_heads, dh).transpose(1, 0, 2).astype(jnp.bfloat16)  # (H,T,dh)
    v = v.reshape(T, n_heads, dh).transpose(1, 0, 2).astype(jnp.bfloat16)  # (H,T,dh)

    scores = jnp.einsum("hsd,htd->hst", q, k,
                        preferred_element_type=jnp.float32)     # (H, S, T) f32
    attn = _softmax(scores).astype(jnp.bfloat16)
    o = jnp.einsum("hst,htd->hsd", attn, v,
                   preferred_element_type=jnp.float32)          # (H, S, dh) f32
    o = o.transpose(1, 0, 2).reshape(S, D).astype(jnp.bfloat16)
    out = jnp.dot(o, wo, preferred_element_type=jnp.float32)    # (S, D) f32
    return out + bo


def _ffn(h, w1_ref, b1_ref, w2_ref, b2_ref, dff_chunk):
    # h: (S, D) f32; w1: (D, dff) bf16; b1: (1, dff) f32; w2: (dff, D) bf16; b2: (1, D) f32
    S, D = h.shape
    dff = w1_ref.shape[1]
    h_bf = h.astype(jnp.bfloat16)
    acc = jnp.zeros((S, D), jnp.float32)
    n_chunks = dff // dff_chunk
    for c in range(n_chunks):   # static unrolled loop over dff tiles
        sl = slice(c * dff_chunk, (c + 1) * dff_chunk)
        hidden = jnp.dot(h_bf, w1_ref[:, sl],
                         preferred_element_type=jnp.float32) + b1_ref[:, sl]
        hidden = jnp.maximum(hidden, 0.0).astype(jnp.bfloat16)
        acc = acc + jnp.dot(hidden, w2_ref[sl, :],
                            preferred_element_type=jnp.float32)
    return acc + b2_ref[...]


def decoder_block_kernel(x_q_ref, x_full_ref, ctx_ref,
                         ln1_g, ln1_b, wq1, wk1, wv1, wo1, bo1,
                         ln2_g, ln2_b, wq2, wk2, wv2, wo2, bo2,
                         ln3_g, ln3_b, w1, b1, w2, b2,
                         o_ref, *, n_heads, n_heads_cross, dff_chunk):
    xq = x_q_ref[0].astype(jnp.float32)      # (TQ, D)  this query tile
    xf = x_full_ref[0].astype(jnp.float32)   # (S, D)   full sequence (self-attn K/V)
    ctx = ctx_ref[0].astype(jnp.float32)     # (T, D)

    # --- self-attention sub-block (pre-norm) ---
    h_q = _layernorm(xq, ln1_g[...], ln1_b[...])
    h_kv = _layernorm(xf, ln1_g[...], ln1_b[...])
    xq = xq + _mha(h_q, h_kv, wq1[...], wk1[...], wv1[...], wo1[...], bo1[...],
                   n_heads)

    # --- cross-attention sub-block (pre-norm; context is not normalized) ---
    h = _layernorm(xq, ln2_g[...], ln2_b[...])
    xq = xq + _mha(h, ctx, wq2[...], wk2[...], wv2[...], wo2[...], bo2[...],
                   n_heads_cross)

    # --- feed-forward sub-block (pre-norm, relu), tiled over dff ---
    h = _layernorm(xq, ln3_g[...], ln3_b[...])
    xq = xq + _ffn(h, w1, b1, w2, b2, dff_chunk)

    o_ref[0] = xq.astype(o_ref.dtype)


_PARAM_ORDER = [
    "ln1_g", "ln1_b", "wq1", "wk1", "wv1", "wo1", "bo1",
    "ln2_g", "ln2_b", "wq2", "wk2", "wv2", "wo2", "bo2",
    "ln3_g", "ln3_b", "w1", "b1", "w2", "b2",
]
_BF16_WEIGHTS = {"wq1", "wk1", "wv1", "wo1", "wq2", "wk2", "wv2", "wo2", "w1", "w2"}


def decoder_block(x, context, params, *, n_heads, n_heads_cross,
                  tq=None, dff_chunk=512):
    B, S, D = x.shape
    _, T, _ = context.shape
    dff = params["w1"].shape[1]

    # Query-tile size for the second (parallel) grid axis.
    if tq is None:
        tq = min(S, 128)
    if S % tq != 0:
        tq = S
    n_q_tiles = S // tq

    # FFN dff tiling.
    if dff % dff_chunk != 0 or dff_chunk > dff:
        dff_chunk = dff

    # Matmul weights live in VMEM as bf16 (halves weight DMA + residency);
    # LN params and biases stay f32 (added on the f32 VPU path).
    prepped = {k: (v.astype(jnp.bfloat16) if k in _BF16_WEIGHTS else v)
               for k, v in params.items()}

    def full_spec(shape):
        return pl.BlockSpec(shape, lambda b, q: (0,) * len(shape))

    in_specs = [
        pl.BlockSpec((1, tq, D), lambda b, q: (b, q, 0)),   # x: query tile
        pl.BlockSpec((1, S, D), lambda b, q: (b, 0, 0)),    # x: full seq (K/V)
        pl.BlockSpec((1, T, D), lambda b, q: (b, 0, 0)),    # context
    ] + [full_spec(prepped[name].shape) for name in _PARAM_ORDER]

    # Advisory cost estimate (per whole call).
    mac = (4 * S * D * D + 2 * S * S * D            # self-attn
           + 2 * S * D * D + 2 * T * D * D + 2 * S * T * D   # cross-attn
           + 2 * S * D * dff)                        # ffn
    flops = 2 * B * mac
    transcendentals = B * (n_heads * S * S + n_heads_cross * S * T + 3 * S)
    param_bytes = sum(int(v.size) * v.dtype.itemsize for v in prepped.values())
    act_bytes = (x.size + context.size + B * S * D) * x.dtype.itemsize
    cost = pl.CostEstimate(flops=int(flops),
                           transcendentals=int(transcendentals),
                           bytes_accessed=int(param_bytes + act_bytes))

    kernel = functools.partial(decoder_block_kernel,
                               n_heads=n_heads,
                               n_heads_cross=n_heads_cross,
                               dff_chunk=dff_chunk)

    return pl.pallas_call(
        kernel,
        out_shape=jax.ShapeDtypeStruct((B, S, D), x.dtype),
        grid=(B, n_q_tiles),
        in_specs=in_specs,
        out_specs=pl.BlockSpec((1, tq, D), lambda b, q: (b, q, 0)),
        compiler_params=pltpu.CompilerParams(
            dimension_semantics=("parallel", "parallel"),
            vmem_limit_bytes=48 * 1024 * 1024),
        cost_estimate=cost,
    )(x, x, context, *[prepped[name] for name in _PARAM_ORDER])


def init_params(key, d_model, dff):
    ks = jax.random.split(key, 12)

    def lin(k, fan_in, fan_out):
        return (jax.random.normal(k, (fan_in, fan_out), jnp.float32)
                / jnp.sqrt(jnp.float32(fan_in)))

    params = {
        # layernorms
        "ln1_g": jnp.ones((1, d_model), jnp.float32),
        "ln1_b": jnp.zeros((1, d_model), jnp.float32),
        "ln2_g": jnp.ones((1, d_model), jnp.float32),
        "ln2_b": jnp.zeros((1, d_model), jnp.float32),
        "ln3_g": jnp.ones((1, d_model), jnp.float32),
        "ln3_b": jnp.zeros((1, d_model), jnp.float32),
        # self-attention
        "wq1": lin(ks[0], d_model, d_model),
        "wk1": lin(ks[1], d_model, d_model),
        "wv1": lin(ks[2], d_model, d_model),
        "wo1": lin(ks[3], d_model, d_model),
        "bo1": jnp.zeros((1, d_model), jnp.float32),
        # cross-attention
        "wq2": lin(ks[4], d_model, d_model),
        "wk2": lin(ks[5], d_model, d_model),
        "wv2": lin(ks[6], d_model, d_model),
        "wo2": lin(ks[7], d_model, d_model),
        "bo2": jnp.zeros((1, d_model), jnp.float32),
        # feed-forward (use_bias=True since bias=True)
        "w1": lin(ks[8], d_model, dff),
        "b1": jnp.zeros((1, dff), jnp.float32),
        "w2": lin(ks[9], dff, d_model),
        "b2": jnp.zeros((1, d_model), jnp.float32),
    }
    return params


if __name__ == "__main__":
    # Small but TPU-friendly shapes: D multiple of 128 (lane-dense output stores),
    # S/T multiples of 8, dh = 32.
    B, S, T, D = 2, 16, 24, 128
    n_heads, n_heads_cross = 4, 4
    dff = 4 * D  # FeedForwardBlock default when dff is None

    key = jax.random.PRNGKey(0)
    kx, kc, kp = jax.random.split(key, 3)
    x = jax.random.normal(kx, (B, S, D), jnp.float32)
    context = jax.random.normal(kc, (B, T, D), jnp.float32)
    params = init_params(kp, D, dff)

    out = decoder_block(x, context, params,
                        n_heads=n_heads, n_heads_cross=n_heads_cross,
                        tq=8, dff_chunk=256)
    out = jax.block_until_ready(out)
    assert out.shape == (B, S, D) and bool(jnp.all(jnp.isfinite(out)))
    print("KERNEL_OK")
</pallas_src>

<mosaic_0001>
module attributes {stable_mosaic.version = 11 : i64} {
  func.func @decoder_block_kernel(%arg0: i32, %arg1: i32, %arg2: memref<1x8x128xf32, #tpu.memory_space<vmem>>, %arg3: memref<1x16x128xf32, #tpu.memory_space<vmem>>, %arg4: memref<1x24x128xf32, #tpu.memory_space<vmem>>, %arg5: memref<1x128xf32, #tpu.memory_space<vmem>>, %arg6: memref<1x128xf32, #tpu.memory_space<vmem>>, %arg7: memref<128x128xbf16, #tpu.memory_space<vmem>>, %arg8: memref<128x128xbf16, #tpu.memory_space<vmem>>, %arg9: memref<128x128xbf16, #tpu.memory_space<vmem>>, %arg10: memref<128x128xbf16, #tpu.memory_space<vmem>>, %arg11: memref<1x128xf32, #tpu.memory_space<vmem>>, %arg12: memref<1x128xf32, #tpu.memory_space<vmem>>, %arg13: memref<1x128xf32, #tpu.memory_space<vmem>>, %arg14: memref<128x128xbf16, #tpu.memory_space<vmem>>, %arg15: memref<128x128xbf16, #tpu.memory_space<vmem>>, %arg16: memref<128x128xbf16, #tpu.memory_space<vmem>>, %arg17: memref<128x128xbf16, #tpu.memory_space<vmem>>, %arg18: memref<1x128xf32, #tpu.memory_space<vmem>>, %arg19: memref<1x128xf32, #tpu.memory_space<vmem>>, %arg20: memref<1x128xf32, #tpu.memory_space<vmem>>, %arg21: memref<128x512xbf16, #tpu.memory_space<vmem>>, %arg22: memref<1x512xf32, #tpu.memory_space<vmem>>, %arg23: memref<512x128xbf16, #tpu.memory_space<vmem>>, %arg24: memref<1x128xf32, #tpu.memory_space<vmem>>, %arg25: memref<1x8x128xf32, #tpu.memory_space<vmem>>) attributes {dimension_semantics = [#tpu.dimension_semantics<parallel>, #tpu.dimension_semantics<parallel>], iteration_bounds = array<i64: 2, 2>, scalar_prefetch = 0 : i64, scratch_operands = 0 : i64, tpu.core_type = #tpu.core_type<tc>, window_params = [{transform_indices = @transform_0, window_bounds = array<i64: 1, 8, 128>}, {transform_indices = @transform_1, window_bounds = array<i64: 1, 16, 128>}, {transform_indices = @transform_2, window_bounds = array<i64: 1, 24, 128>}, {pipeline_mode = #tpu.pipeline_mode<synchronous>, transform_indices = @transform_3, window_bounds = array<i64: 1, 128>}, {pipeline_mode = #tpu.pipeline_mode<synchronous>, transform_indices = @transform_4, window_bounds = array<i64: 1, 128>}, {pipeline_mode = #tpu.pipeline_mode<synchronous>, transform_indices = @transform_5, window_bounds = array<i64: 128, 128>}, {pipeline_mode = #tpu.pipeline_mode<synchronous>, transform_indices = @transform_6, window_bounds = array<i64: 128, 128>}, {pipeline_mode = #tpu.pipeline_mode<synchronous>, transform_indices = @transform_7, window_bounds = array<i64: 128, 128>}, {pipeline_mode = #tpu.pipeline_mode<synchronous>, transform_indices = @transform_8, window_bounds = array<i64: 128, 128>}, {pipeline_mode = #tpu.pipeline_mode<synchronous>, transform_indices = @transform_9, window_bounds = array<i64: 1, 128>}, {pipeline_mode = #tpu.pipeline_mode<synchronous>, transform_indices = @transform_10, window_bounds = array<i64: 1, 128>}, {pipeline_mode = #tpu.pipeline_mode<synchronous>, transform_indices = @transform_11, window_bounds = array<i64: 1, 128>}, {pipeline_mode = #tpu.pipeline_mode<synchronous>, transform_indices = @transform_12, window_bounds = array<i64: 128, 128>}, {pipeline_mode = #tpu.pipeline_mode<synchronous>, transform_indices = @transform_13, window_bounds = array<i64: 128, 128>}, {pipeline_mode = #tpu.pipeline_mode<synchronous>, transform_indices = @transform_14, window_bounds = array<i64: 128, 128>}, {pipeline_mode = #tpu.pipeline_mode<synchronous>, transform_indices = @transform_15, window_bounds = array<i64: 128, 128>}, {pipeline_mode = #tpu.pipeline_mode<synchronous>, transform_indices = @transform_16, window_bounds = array<i64: 1, 128>}, {pipeline_mode = #tpu.pipeline_mode<synchronous>, transform_indices = @transform_17, window_bounds = array<i64: 1, 128>}, {pipeline_mode = #tpu.pipeline_mode<synchronous>, transform_indices = @transform_18, window_bounds = array<i64: 1, 128>}, {pipeline_mode = #tpu.pipeline_mode<synchronous>, transform_indices = @transform_19, window_bounds = array<i64: 128, 512>}, {pipeline_mode = #tpu.pipeline_mode<synchronous>, transform_indices = @transform_20, window_bounds = array<i64: 1, 512>}, {pipeline_mode = #tpu.pipeline_mode<synchronous>, transform_indices = @transform_21, window_bounds = array<i64: 512, 128>}, {pipeline_mode = #tpu.pipeline_mode<synchronous>, transform_indices = @transform_22, window_bounds = array<i64: 1, 128>}, {transform_indices = @transform_23, window_bounds = array<i64: 1, 8, 128>}]} {
    %c0 = arith.constant 0 : index
    %c0_0 = arith.constant 0 : index
    %c0_1 = arith.constant 0 : index
    %0 = vector.load %arg2[%c0, %c0_0, %c0_1] : memref<1x8x128xf32, #tpu.memory_space<vmem>>, vector<1x8x128xf32>
    %1 = vector.shape_cast %0 : vector<1x8x128xf32> to vector<8x128xf32>
    %c0_2 = arith.constant 0 : index
    %c0_3 = arith.constant 0 : index
    %c0_4 = arith.constant 0 : index
    %2 = vector.load %arg3[%c0_2, %c0_3, %c0_4] : memref<1x16x128xf32, #tpu.memory_space<vmem>>, vector<1x16x128xf32>
    %3 = vector.shape_cast %2 : vector<1x16x128xf32> to vector<16x128xf32>
    %c0_5 = arith.constant 0 : index
    %c0_6 = arith.constant 0 : index
    %c0_7 = arith.constant 0 : index
    %4 = vector.load %arg4[%c0_5, %c0_6, %c0_7] : memref<1x24x128xf32, #tpu.memory_space<vmem>>, vector<1x24x128xf32>
    %5 = vector.shape_cast %4 : vector<1x24x128xf32> to vector<24x128xf32>
    %c0_8 = arith.constant 0 : index
    %c0_9 = arith.constant 0 : index
    %6 = vector.load %arg5[%c0_8, %c0_9] : memref<1x128xf32, #tpu.memory_space<vmem>>, vector<1x128xf32>
    %c0_10 = arith.constant 0 : index
    %c0_11 = arith.constant 0 : index
    %7 = vector.load %arg6[%c0_10, %c0_11] : memref<1x128xf32, #tpu.memory_space<vmem>>, vector<1x128xf32>
    %cst = arith.constant dense<0.000000e+00> : vector<8xf32>
    %8 = vector.multi_reduction <add>, %1, %cst [1] : vector<8x128xf32> to vector<8xf32>
    %9 = vector.shape_cast %8 : vector<8xf32> to vector<8x1xf32>
    %cst_12 = arith.constant 1.280000e+02 : f32
    %10 = vector.broadcast %cst_12 : f32 to vector<8x1xf32>
    %11 = arith.divf %9, %10 : vector<8x1xf32>
    %12 = vector.broadcast %11 : vector<8x1xf32> to vector<8x128xf32>
    %13 = arith.subf %1, %12 : vector<8x128xf32>
    %14 = arith.mulf %13, %13 : vector<8x128xf32>
    %cst_13 = arith.constant dense<0.000000e+00> : vector<8xf32>
    %15 = vector.multi_reduction <add>, %14, %cst_13 [1] : vector<8x128xf32> to vector<8xf32>
    %16 = vector.shape_cast %15 : vector<8xf32> to vector<8x1xf32>
    %cst_14 = arith.constant 1.280000e+02 : f32
    %17 = vector.broadcast %cst_14 : f32 to vector<8x1xf32>
    %18 = arith.divf %16, %17 : vector<8x1xf32>
    %19 = vector.broadcast %11 : vector<8x1xf32> to vector<8x128xf32>
    %20 = arith.subf %1, %19 : vector<8x128xf32>
    %cst_15 = arith.constant 9.99999974E-6 : f32
    %21 = vector.broadcast %cst_15 : f32 to vector<8x1xf32>
    %22 = arith.addf %18, %21 : vector<8x1xf32>
    %23 = math.rsqrt %22 : vector<8x1xf32>
    %24 = vector.broadcast %23 : vector<8x1xf32> to vector<8x128xf32>
    %25 = arith.mulf %20, %24 : vector<8x128xf32>
    %26 = vector.broadcast %6 : vector<1x128xf32> to vector<8x128xf32>
    %27 = arith.mulf %25, %26 : vector<8x128xf32>
    %28 = vector.broadcast %7 : vector<1x128xf32> to vector<8x128xf32>
    %29 = arith.addf %27, %28 : vector<8x128xf32>
    %c0_16 = arith.constant 0 : index
    %c0_17 = arith.constant 0 : index
    %30 = vector.load %arg5[%c0_16, %c0_17] : memref<1x128xf32, #tpu.memory_space<vmem>>, vector<1x128xf32>
    %c0_18 = arith.constant 0 : index
    %c0_19 = arith.constant 0 : index
    %31 = vector.load %arg6[%c0_18, %c0_19] : memref<1x128xf32, #tpu.memory_space<vmem>>, vector<1x128xf32>
    %cst_20 = arith.constant dense<0.000000e+00> : vector<16xf32>
    %32 = vector.multi_reduction <add>, %3, %cst_20 [1] : vector<16x128xf32> to vector<16xf32>
    %33 = vector.shape_cast %32 : vector<16xf32> to vector<16x1xf32>
    %cst_21 = arith.constant 1.280000e+02 : f32
    %34 = vector.broadcast %cst_21 : f32 to vector<16x1xf32>
    %35 = arith.divf %33, %34 : vector<16x1xf32>
    %36 = vector.broadcast %35 : vector<16x1xf32> to vector<16x128xf32>
    %37 = arith.subf %3, %36 : vector<16x128xf32>
    %38 = arith.mulf %37, %37 : vector<16x128xf32>
    %cst_22 = arith.constant dense<0.000000e+00> : vector<16xf32>
    %39 = vector.multi_reduction <add>, %38, %cst_22 [1] : vector<16x128xf32> to vector<16xf32>
    %40 = vector.shape_cast %39 : vector<16xf32> to vector<16x1xf32>
    %cst_23 = arith.constant 1.280000e+02 : f32
    %41 = vector.broadcast %cst_23 : f32 to vector<16x1xf32>
    %42 = arith.divf %40, %41 : vector<16x1xf32>
    %43 = vector.broadcast %35 : vector<16x1xf32> to vector<16x128xf32>
    %44 = arith.subf %3, %43 : vector<16x128xf32>
    %cst_24 = arith.constant 9.99999974E-6 : f32
    %45 = vector.broadcast %cst_24 : f32 to vector<16x1xf32>
    %46 = arith.addf %42, %45 : vector<16x1xf32>
    %47 = math.rsqrt %46 : vector<16x1xf32>
    %48 = vector.broadcast %47 : vector<16x1xf32> to vector<16x128xf32>
    %49 = arith.mulf %44, %48 : vector<16x128xf32>
    %50 = vector.broadcast %30 : vector<1x128xf32> to vector<16x128xf32>
    %51 = arith.mulf %49, %50 : vector<16x128xf32>
    %52 = vector.broadcast %31 : vector<1x128xf32> to vector<16x128xf32>
    %53 = arith.addf %51, %52 : vector<16x128xf32>
    %c0_25 = arith.constant 0 : index
    %c0_26 = arith.constant 0 : index
    %54 = vector.load %arg7[%c0_25, %c0_26] : memref<128x128xbf16, #tpu.memory_space<vmem>>, vector<128x128xbf16>
    %c0_27 = arith.constant 0 : index
    %c0_28 = arith.constant 0 : index
    %55 = vector.load %arg8[%c0_27, %c0_28] : memref<128x128xbf16, #tpu.memory_space<vmem>>, vector<128x128xbf16>
    %c0_29 = arith.constant 0 : index
    %c0_30 = arith.constant 0 : index
    %56 = vector.load %arg9[%c0_29, %c0_30] : memref<128x128xbf16, #tpu.memory_space<vmem>>, vector<128x128xbf16>
    %c0_31 = arith.constant 0 : index
    %c0_32 = arith.constant 0 : index
    %57 = vector.load %arg10[%c0_31, %c0_32] : memref<128x128xbf16, #tpu.memory_space<vmem>>, vector<128x128xbf16>
    %c0_33 = arith.constant 0 : index
    %c0_34 = arith.constant 0 : index
    %58 = vector.load %arg11[%c0_33, %c0_34] : memref<1x128xf32, #tpu.memory_space<vmem>>, vector<1x128xf32>
    %cst_35 = arith.constant 0.176776692 : f32
    %59 = vector.broadcast %cst_35 : f32 to vector<8x128xf32>
    %60 = arith.mulf %29, %59 : vector<8x128xf32>
    %61 = arith.truncf %60 : vector<8x128xf32> to vector<8x128xbf16>
    %62 = arith.truncf %53 : vector<16x128xf32> to vector<16x128xbf16>
    %cst_36 = arith.constant dense<0.000000e+00> : vector<8x128xf32>
    %63 = tpu.matmul %61, %54, %cst_36 {dimension_numbers = #tpu.dot_dimension_numbers<[1], [0], [0], [1], [0, 0, 1, 1], [], []>} : vector<8x128xbf16>, vector<128x128xbf16>, vector<8x128xf32> -> vector<8x128xf32>
    %cst_37 = arith.constant dense<0.000000e+00> : vector<16x128xf32>
    %64 = tpu.matmul %62, %55, %cst_37 {dimension_numbers = #tpu.dot_dimension_numbers<[1], [0], [0], [1], [0, 0, 1, 1], [], []>} : vector<16x128xbf16>, vector<128x128xbf16>, vector<16x128xf32> -> vector<16x128xf32>
    %cst_38 = arith.constant dense<0.000000e+00> : vector<16x128xf32>
    %65 = tpu.matmul %62, %56, %cst_38 {dimension_numbers = #tpu.dot_dimension_numbers<[1], [0], [0], [1], [0, 0, 1, 1], [], []>} : vector<16x128xbf16>, vector<128x128xbf16>, vector<16x128xf32> -> vector<16x128xf32>
    %66 = vector.shape_cast %63 : vector<8x128xf32> to vector<8x4x32xf32>
    %67 = tpu.transpose %66, [1, 0, 2] : vector<8x4x32xf32> -> vector<4x8x32xf32>
    %68 = arith.truncf %67 : vector<4x8x32xf32> to vector<4x8x32xbf16>
    %69 = vector.shape_cast %64 : vector<16x128xf32> to vector<16x4x32xf32>
    %70 = tpu.transpose %69, [1, 0, 2] : vector<16x4x32xf32> -> vector<4x16x32xf32>
    %71 = arith.truncf %70 : vector<4x16x32xf32> to vector<4x16x32xbf16>
    %72 = vector.shape_cast %65 : vector<16x128xf32> to vector<16x4x32xf32>
    %73 = tpu.transpose %72, [1, 0, 2] : vector<16x4x32xf32> -> vector<4x16x32xf32>
    %74 = arith.truncf %73 : vector<4x16x32xf32> to vector<4x16x32xbf16>
    "tpu.trace_start"() <{level = 10 : i32, message = "hsd,htd->hst"}> : () -> ()
    %cst_39 = arith.constant dense<0.000000e+00> : vector<4x8x16xf32>
    %75 = tpu.matmul %68, %71, %cst_39 {dimension_numbers = #tpu.dot_dimension_numbers<[2], [2], [1], [1], [0, 0, 0, 1, 1, 1], [0], [0]>} : vector<4x8x32xbf16>, vector<4x16x32xbf16>, vector<4x8x16xf32> -> vector<4x8x16xf32>
    "tpu.trace_stop"() : () -> ()
    %cst_40 = arith.constant dense<0xFF800000> : vector<4x8xf32>
    %76 = vector.multi_reduction <maximumf>, %75, %cst_40 [2] : vector<4x8x16xf32> to vector<4x8xf32>
    %77 = vector.shape_cast %76 : vector<4x8xf32> to vector<4x8x1xf32>
    %78 = vector.broadcast %77 : vector<4x8x1xf32> to vector<4x8x16xf32>
    %79 = arith.subf %75, %78 : vector<4x8x16xf32>
    %80 = math.exp %79 : vector<4x8x16xf32>
    %cst_41 = arith.constant dense<0.000000e+00> : vector<4x8xf32>
    %81 = vector.multi_reduction <add>, %80, %cst_41 [2] : vector<4x8x16xf32> to vector<4x8xf32>
    %82 = vector.shape_cast %81 : vector<4x8xf32> to vector<4x8x1xf32>
    %83 = tpu.reciprocal %82 {approx = true} : vector<4x8x1xf32> -> vector<4x8x1xf32>
    %84 = vector.broadcast %83 : vector<4x8x1xf32> to vector<4x8x16xf32>
    %85 = arith.mulf %80, %84 : vector<4x8x16xf32>
    %86 = arith.truncf %85 : vector<4x8x16xf32> to vector<4x8x16xbf16>
    "tpu.trace_start"() <{level = 10 : i32, message = "hst,htd->hsd"}> : () -> ()
    %cst_42 = arith.constant dense<0.000000e+00> : vector<4x8x32xf32>
    %87 = tpu.matmul %86, %74, %cst_42 {dimension_numbers = #tpu.dot_dimension_numbers<[2], [1], [1], [2], [0, 0, 0, 1, 1, 2], [0], [0]>} : vector<4x8x16xbf16>, vector<4x16x32xbf16>, vector<4x8x32xf32> -> vector<4x8x32xf32>
    "tpu.trace_stop"() : () -> ()
    %88 = tpu.transpose %87, [1, 0, 2] : vector<4x8x32xf32> -> vector<8x4x32xf32>
    %89 = vector.shape_cast %88 : vector<8x4x32xf32> to vector<8x128xf32>
    %90 = arith.truncf %89 : vector<8x128xf32> to vector<8x128xbf16>
    %cst_43 = arith.constant dense<0.000000e+00> : vector<8x128xf32>
    %91 = tpu.matmul %90, %57, %cst_43 {dimension_numbers = #tpu.dot_dimension_numbers<[1], [0], [0], [1], [0, 0, 1, 1], [], []>} : vector<8x128xbf16>, vector<128x128xbf16>, vector<8x128xf32> -> vector<8x128xf32>
    %92 = vector.broadcast %58 : vector<1x128xf32> to vector<8x128xf32>
    %93 = arith.addf %91, %92 : vector<8x128xf32>
    %94 = arith.addf %1, %93 : vector<8x128xf32>
    %c0_44 = arith.constant 0 : index
    %c0_45 = arith.constant 0 : index
    %95 = vector.load %arg12[%c0_44, %c0_45] : memref<1x128xf32, #tpu.memory_space<vmem>>, vector<1x128xf32>
    %c0_46 = arith.constant 0 : index
    %c0_47 = arith.constant 0 : index
    %96 = vector.load %arg13[%c0_46, %c0_47] : memref<1x128xf32, #tpu.memory_space<vmem>>, vector<1x128xf32>
    %cst_48 = arith.constant dense<0.000000e+00> : vector<8xf32>
    %97 = vector.multi_reduction <add>, %94, %cst_48 [1] : vector<8x128xf32> to vector<8xf32>
    %98 = vector.shape_cast %97 : vector<8xf32> to vector<8x1xf32>
    %cst_49 = arith.constant 1.280000e+02 : f32
    %99 = vector.broadcast %cst_49 : f32 to vector<8x1xf32>
    %100 = arith.divf %98, %99 : vector<8x1xf32>
    %101 = vector.broadcast %100 : vector<8x1xf32> to vector<8x128xf32>
    %102 = arith.subf %94, %101 : vector<8x128xf32>
    %103 = arith.mulf %102, %102 : vector<8x128xf32>
    %cst_50 = arith.constant dense<0.000000e+00> : vector<8xf32>
    %104 = vector.multi_reduction <add>, %103, %cst_50 [1] : vector<8x128xf32> to vector<8xf32>
    %105 = vector.shape_cast %104 : vector<8xf32> to vector<8x1xf32>
    %cst_51 = arith.constant 1.280000e+02 : f32
    %106 = vector.broadcast %cst_51 : f32 to vector<8x1xf32>
    %107 = arith.divf %105, %106 : vector<8x1xf32>
    %108 = vector.broadcast %100 : vector<8x1xf32> to vector<8x128xf32>
    %109 = arith.subf %94, %108 : vector<8x128xf32>
    %cst_52 = arith.constant 9.99999974E-6 : f32
    %110 = vector.broadcast %cst_52 : f32 to vector<8x1xf32>
    %111 = arith.addf %107, %110 : vector<8x1xf32>
    %112 = math.rsqrt %111 : vector<8x1xf32>
    %113 = vector.broadcast %112 : vector<8x1xf32> to vector<8x128xf32>
    %114 = arith.mulf %109, %113 : vector<8x128xf32>
    %115 = vector.broadcast %95 : vector<1x128xf32> to vector<8x128xf32>
    %116 = arith.mulf %114, %115 : vector<8x128xf32>
    %117 = vector.broadcast %96 : vector<1x128xf32> to vector<8x128xf32>
    %118 = arith.addf %116, %117 : vector<8x128xf32>
    %c0_53 = arith.constant 0 : index
    %c0_54 = arith.constant 0 : index
    %119 = vector.load %arg14[%c0_53, %c0_54] : memref<128x128xbf16, #tpu.memory_space<vmem>>, vector<128x128xbf16>
    %c0_55 = arith.constant 0 : index
    %c0_56 = arith.constant 0 : index
    %120 = vector.load %arg15[%c0_55, %c0_56] : memref<128x128xbf16, #tpu.memory_space<vmem>>, vector<128x128xbf16>
    %c0_57 = arith.constant 0 : index
    %c0_58 = arith.constant 0 : index
    %121 = vector.load %arg16[%c0_57, %c0_58] : memref<128x128xbf16, #tpu.memory_space<vmem>>, vector<128x128xbf16>
    %c0_59 = arith.constant 0 : index
    %c0_60 = arith.constant 0 : index
    %122 = vector.load %arg17[%c0_59, %c0_60] : memref<128x128xbf16, #tpu.memory_space<vmem>>, vector<128x128xbf16>
    %c0_61 = arith.constant 0 : index
    %c0_62 = arith.constant 0 : index
    %123 = vector.load %arg18[%c0_61, %c0_62] : memref<1x128xf32, #tpu.memory_space<vmem>>, vector<1x128xf32>
    %cst_63 = arith.constant 0.176776692 : f32
    %124 = vector.broadcast %cst_63 : f32 to vector<8x128xf32>
    %125 = arith.mulf %118, %124 : vector<8x128xf32>
    %126 = arith.truncf %125 : vector<8x128xf32> to vector<8x128xbf16>
    %127 = arith.truncf %5 : vector<24x128xf32> to vector<24x128xbf16>
    %cst_64 = arith.constant dense<0.000000e+00> : vector<8x128xf32>
    %128 = tpu.matmul %126, %119, %cst_64 {dimension_numbers = #tpu.dot_dimension_numbers<[1], [0], [0], [1], [0, 0, 1, 1], [], []>} : vector<8x128xbf16>, vector<128x128xbf16>, vector<8x128xf32> -> vector<8x128xf32>
    %cst_65 = arith.constant dense<0.000000e+00> : vector<24x128xf32>
    %129 = tpu.matmul %127, %120, %cst_65 {dimension_numbers = #tpu.dot_dimension_numbers<[1], [0], [0], [1], [0, 0, 1, 1], [], []>} : vector<24x128xbf16>, vector<128x128xbf16>, vector<24x128xf32> -> vector<24x128xf32>
    %cst_66 = arith.constant dense<0.000000e+00> : vector<24x128xf32>
    %130 = tpu.matmul %127, %121, %cst_66 {dimension_numbers = #tpu.dot_dimension_numbers<[1], [0], [0], [1], [0, 0, 1, 1], [], []>} : vector<24x128xbf16>, vector<128x128xbf16>, vector<24x128xf32> -> vector<24x128xf32>
    %131 = vector.shape_cast %128 : vector<8x128xf32> to vector<8x4x32xf32>
    %132 = tpu.transpose %131, [1, 0, 2] : vector<8x4x32xf32> -> vector<4x8x32xf32>
    %133 = arith.truncf %132 : vector<4x8x32xf32> to vector<4x8x32xbf16>
    %134 = vector.shape_cast %129 : vector<24x128xf32> to vector<24x4x32xf32>
    %135 = tpu.transpose %134, [1, 0, 2] : vector<24x4x32xf32> -> vector<4x24x32xf32>
    %136 = arith.truncf %135 : vector<4x24x32xf32> to vector<4x24x32xbf16>
    %137 = vector.shape_cast %130 : vector<24x128xf32> to vector<24x4x32xf32>
    %138 = tpu.transpose %137, [1, 0, 2] : vector<24x4x32xf32> -> vector<4x24x32xf32>
    %139 = arith.truncf %138 : vector<4x24x32xf32> to vector<4x24x32xbf16>
    "tpu.trace_start"() <{level = 10 : i32, message = "hsd,htd->hst"}> : () -> ()
    %cst_67 = arith.constant dense<0.000000e+00> : vector<4x8x24xf32>
    %140 = tpu.matmul %133, %136, %cst_67 {dimension_numbers = #tpu.dot_dimension_numbers<[2], [2], [1], [1], [0, 0, 0, 1, 1, 1], [0], [0]>} : vector<4x8x32xbf16>, vector<4x24x32xbf16>, vector<4x8x24xf32> -> vector<4x8x24xf32>
    "tpu.trace_stop"() : () -> ()
    %cst_68 = arith.constant dense<0xFF800000> : vector<4x8xf32>
    %141 = vector.multi_reduction <maximumf>, %140, %cst_68 [2] : vector<4x8x24xf32> to vector<4x8xf32>
    %142 = vector.shape_cast %141 : vector<4x8xf32> to vector<4x8x1xf32>
    %143 = vector.broadcast %142 : vector<4x8x1xf32> to vector<4x8x24xf32>
    %144 = arith.subf %140, %143 : vector<4x8x24xf32>
    %145 = math.exp %144 : vector<4x8x24xf32>
    %cst_69 = arith.constant dense<0.000000e+00> : vector<4x8xf32>
    %146 = vector.multi_reduction <add>, %145, %cst_69 [2] : vector<4x8x24xf32> to vector<4x8xf32>
    %147 = vector.shape_cast %146 : vector<4x8xf32> to vector<4x8x1xf32>
    %148 = tpu.reciprocal %147 {approx = true} : vector<4x8x1xf32> -> vector<4x8x1xf32>
    %149 = vector.broadcast %148 : vector<4x8x1xf32> to vector<4x8x24xf32>
    %150 = arith.mulf %145, %149 : vector<4x8x24xf32>
    %151 = arith.truncf %150 : vector<4x8x24xf32> to vector<4x8x24xbf16>
    "tpu.trace_start"() <{level = 10 : i32, message = "hst,htd->hsd"}> : () -> ()
    %cst_70 = arith.constant dense<0.000000e+00> : vector<4x8x32xf32>
    %152 = tpu.matmul %151, %139, %cst_70 {dimension_numbers = #tpu.dot_dimension_numbers<[2], [1], [1], [2], [0, 0, 0, 1, 1, 2], [0], [0]>} : vector<4x8x24xbf16>, vector<4x24x32xbf16>, vector<4x8x32xf32> -> vector<4x8x32xf32>
    "tpu.trace_stop"() : () -> ()
    %153 = tpu.transpose %152, [1, 0, 2] : vector<4x8x32xf32> -> vector<8x4x32xf32>
    %154 = vector.shape_cast %153 : vector<8x4x32xf32> to vector<8x128xf32>
    %155 = arith.truncf %154 : vector<8x128xf32> to vector<8x128xbf16>
    %cst_71 = arith.constant dense<0.000000e+00> : vector<8x128xf32>
    %156 = tpu.matmul %155, %122, %cst_71 {dimension_numbers = #tpu.dot_dimension_numbers<[1], [0], [0], [1], [0, 0, 1, 1], [], []>} : vector<8x128xbf16>, vector<128x128xbf16>, vector<8x128xf32> -> vector<8x128xf32>
    %157 = vector.broadcast %123 : vector<1x128xf32> to vector<8x128xf32>
    %158 = arith.addf %156, %157 : vector<8x128xf32>
    %159 = arith.addf %94, %158 : vector<8x128xf32>
    %c0_72 = arith.constant 0 : index
    %c0_73 = arith.constant 0 : index
    %160 = vector.load %arg19[%c0_72, %c0_73] : memref<1x128xf32, #tpu.memory_space<vmem>>, vector<1x128xf32>
    %c0_74 = arith.constant 0 : index
    %c0_75 = arith.constant 0 : index
    %161 = vector.load %arg20[%c0_74, %c0_75] : memref<1x128xf32, #tpu.memory_space<vmem>>, vector<1x128xf32>
    %cst_76 = arith.constant dense<0.000000e+00> : vector<8xf32>
    %162 = vector.multi_reduction <add>, %159, %cst_76 [1] : vector<8x128xf32> to vector<8xf32>
    %163 = vector.shape_cast %162 : vector<8xf32> to vector<8x1xf32>
    %cst_77 = arith.constant 1.280000e+02 : f32
    %164 = vector.broadcast %cst_77 : f32 to vector<8x1xf32>
    %165 = arith.divf %163, %164 : vector<8x1xf32>
    %166 = vector.broadcast %165 : vector<8x1xf32> to vector<8x128xf32>
    %167 = arith.subf %159, %166 : vector<8x128xf32>
    %168 = arith.mulf %167, %167 : vector<8x128xf32>
    %cst_78 = arith.constant dense<0.000000e+00> : vector<8xf32>
    %169 = vector.multi_reduction <add>, %168, %cst_78 [1] : vector<8x128xf32> to vector<8xf32>
    %170 = vector.shape_cast %169 : vector<8xf32> to vector<8x1xf32>
    %cst_79 = arith.constant 1.280000e+02 : f32
    %171 = vector.broadcast %cst_79 : f32 to vector<8x1xf32>
    %172 = arith.divf %170, %171 : vector<8x1xf32>
    %173 = vector.broadcast %165 : vector<8x1xf32> to vector<8x128xf32>
    %174 = arith.subf %159, %173 : vector<8x128xf32>
    %cst_80 = arith.constant 9.99999974E-6 : f32
    %175 = vector.broadcast %cst_80 : f32 to vector<8x1xf32>
    %176 = arith.addf %172, %175 : vector<8x1xf32>
    %177 = math.rsqrt %176 : vector<8x1xf32>
    %178 = vector.broadcast %177 : vector<8x1xf32> to vector<8x128xf32>
    %179 = arith.mulf %174, %178 : vector<8x128xf32>
    %180 = vector.broadcast %160 : vector<1x128xf32> to vector<8x128xf32>
    %181 = arith.mulf %179, %180 : vector<8x128xf32>
    %182 = vector.broadcast %161 : vector<1x128xf32> to vector<8x128xf32>
    %183 = arith.addf %181, %182 : vector<8x128xf32>
    %184 = arith.truncf %183 : vector<8x128xf32> to vector<8x128xbf16>
    %cst_81 = arith.constant 0.000000e+00 : f32
    %185 = vector.broadcast %cst_81 : f32 to vector<8x128xf32>
    %c0_82 = arith.constant 0 : index
    %c0_83 = arith.constant 0 : index
    %186 = vector.load %arg21[%c0_82, %c0_83] : memref<128x512xbf16, #tpu.memory_space<vmem>>, vector<128x256xbf16>
    %cst_84 = arith.constant dense<0.000000e+00> : vector<8x256xf32>
    %187 = tpu.matmul %184, %186, %cst_84 {dimension_numbers = #tpu.dot_dimension_numbers<[1], [0], [0], [1], [0, 0, 1, 1], [], []>} : vector<8x128xbf16>, vector<128x256xbf16>, vector<8x256xf32> -> vector<8x256xf32>
    %c0_85 = arith.constant 0 : index
    %c0_86 = arith.constant 0 : index
    %188 = vector.load %arg22[%c0_85, %c0_86] : memref<1x512xf32, #tpu.memory_space<vmem>>, vector<1x256xf32>
    %189 = vector.broadcast %188 : vector<1x256xf32> to vector<8x256xf32>
    %190 = arith.addf %187, %189 : vector<8x256xf32>
    %cst_87 = arith.constant 0.000000e+00 : f32
    %191 = vector.broadcast %cst_87 : f32 to vector<8x256xf32>
    %192 = arith.maximumf %190, %191 : vector<8x256xf32>
    %193 = arith.truncf %192 : vector<8x256xf32> to vector<8x256xbf16>
    %c0_88 = arith.constant 0 : index
    %c0_89 = arith.constant 0 : index
    %194 = vector.load %arg23[%c0_88, %c0_89] : memref<512x128xbf16, #tpu.memory_space<vmem>>, vector<256x128xbf16>
    %cst_90 = arith.constant dense<0.000000e+00> : vector<8x128xf32>
    %195 = tpu.matmul %193, %194, %cst_90 {dimension_numbers = #tpu.dot_dimension_numbers<[1], [0], [0], [1], [0, 0, 1, 1], [], []>} : vector<8x256xbf16>, vector<256x128xbf16>, vector<8x128xf32> -> vector<8x128xf32>
    %196 = arith.addf %185, %195 : vector<8x128xf32>
    %c0_91 = arith.constant 0 : index
    %c256 = arith.constant 256 : index
    %197 = vector.load %arg21[%c0_91, %c256] : memref<128x512xbf16, #tpu.memory_space<vmem>>, vector<128x256xbf16>
    %cst_92 = arith.constant dense<0.000000e+00> : vector<8x256xf32>
    %198 = tpu.matmul %184, %197, %cst_92 {dimension_numbers = #tpu.dot_dimension_numbers<[1], [0], [0], [1], [0, 0, 1, 1], [], []>} : vector<8x128xbf16>, vector<128x256xbf16>, vector<8x256xf32> -> vector<8x256xf32>
    %c0_93 = arith.constant 0 : index
    %c256_94 = arith.constant 256 : index
    %199 = vector.load %arg22[%c0_93, %c256_94] : memref<1x512xf32, #tpu.memory_space<vmem>>, vector<1x256xf32>
    %200 = vector.broadcast %199 : vector<1x256xf32> to vector<8x256xf32>
    %201 = arith.addf %198, %200 : vector<8x256xf32>
    %cst_95 = arith.constant 0.000000e+00 : f32
    %202 = vector.broadcast %cst_95 : f32 to vector<8x256xf32>
    %203 = arith.maximumf %201, %202 : vector<8x256xf32>
    %204 = arith.truncf %203 : vector<8x256xf32> to vector<8x256xbf16>
    %c256_96 = arith.constant 256 : index
    %c0_97 = arith.constant 0 : index
    %205 = vector.load %arg23[%c256_96, %c0_97] : memref<512x128xbf16, #tpu.memory_space<vmem>>, vector<256x128xbf16>
    %cst_98 = arith.constant dense<0.000000e+00> : vector<8x128xf32>
    %206 = tpu.matmul %204, %205, %cst_98 {dimension_numbers = #tpu.dot_dimension_numbers<[1], [0], [0], [1], [0, 0, 1, 1], [], []>} : vector<8x256xbf16>, vector<256x128xbf16>, vector<8x128xf32> -> vector<8x128xf32>
    %207 = arith.addf %196, %206 : vector<8x128xf32>
    %c0_99 = arith.constant 0 : index
    %c0_100 = arith.constant 0 : index
    %208 = vector.load %arg24[%c0_99, %c0_100] : memref<1x128xf32, #tpu.memory_space<vmem>>, vector<1x128xf32>
    %209 = vector.broadcast %208 : vector<1x128xf32> to vector<8x128xf32>
    %210 = arith.addf %207, %209 : vector<8x128xf32>
    %211 = arith.addf %159, %210 : vector<8x128xf32>
    %c0_101 = arith.constant 0 : index
    %c0_102 = arith.constant 0 : index
    %c0_103 = arith.constant 0 : index
    %212 = vector.load %arg25[%c0_101, %c0_102, %c0_103] : memref<1x8x128xf32, #tpu.memory_space<vmem>>, vector<1x8x128xf32>
    %213 = vector.shape_cast %212 : vector<1x8x128xf32> to vector<8x128xf32>
    %214 = vector.shape_cast %211 : vector<8x128xf32> to vector<1x8x128xf32>
    tpu.vector_store %arg25[%c0_101, %c0_102, %c0_103], %214 {strides = array<i32>} : memref<1x8x128xf32, #tpu.memory_space<vmem>>, vector<1x8x128xf32>,
    return
  }
  func.func @transform_0(%arg0: i32, %arg1: i32) -> (i32, i32, i32) {
    %c0_i32 = arith.constant 0 : i32
    %c0_i32_0 = arith.constant 0 : i32
    return %arg0, %arg1, %c0_i32 : i32, i32, i32
  }
  func.func @transform_1(%arg0: i32, %arg1: i32) -> (i32, i32, i32) {
    %c0_i32 = arith.constant 0 : i32
    %c0_i32_0 = arith.constant 0 : i32
    %c0_i32_1 = arith.constant 0 : i32
    return %arg0, %c0_i32, %c0_i32_0 : i32, i32, i32
  }
  func.func @transform_2(%arg0: i32, %arg1: i32) -> (i32, i32, i32) {
    %c0_i32 = arith.constant 0 : i32
    %c0_i32_0 = arith.constant 0 : i32
    %c0_i32_1 = arith.constant 0 : i32
    return %arg0, %c0_i32, %c0_i32_0 : i32, i32, i32
  }
  func.func @transform_3(%arg0: i32, %arg1: i32) -> (i32, i32) {
    %c0_i32 = arith.constant 0 : i32
    %c0_i32_0 = arith.constant 0 : i32
    %c0_i32_1 = arith.constant 0 : i32
    return %c0_i32, %c0_i32_0 : i32, i32
  }
  func.func @transform_4(%arg0: i32, %arg1: i32) -> (i32, i32) {
    %c0_i32 = arith.constant 0 : i32
    %c0_i32_0 = arith.constant 0 : i32
    %c0_i32_1 = arith.constant 0 : i32
    return %c0_i32, %c0_i32_0 : i32, i32
  }
  func.func @transform_5(%arg0: i32, %arg1: i32) -> (i32, i32) {
    %c0_i32 = arith.constant 0 : i32
    %c0_i32_0 = arith.constant 0 : i32
    %c0_i32_1 = arith.constant 0 : i32
    return %c0_i32, %c0_i32_0 : i32, i32
  }
  func.func @transform_6(%arg0: i32, %arg1: i32) -> (i32, i32) {
    %c0_i32 = arith.constant 0 : i32
    %c0_i32_0 = arith.constant 0 : i32
    %c0_i32_1 = arith.constant 0 : i32
    return %c0_i32, %c0_i32_0 : i32, i32
  }
  func.func @transform_7(%arg0: i32, %arg1: i32) -> (i32, i32) {
    %c0_i32 = arith.constant 0 : i32
    %c0_i32_0 = arith.constant 0 : i32
    %c0_i32_1 = arith.constant 0 : i32
    return %c0_i32, %c0_i32_0 : i32, i32
  }
  func.func @transform_8(%arg0: i32, %arg1: i32) -> (i32, i32) {
    %c0_i32 = arith.constant 0 : i32
    %c0_i32_0 = arith.constant 0 : i32
    %c0_i32_1 = arith.constant 0 : i32
    return %c0_i32, %c0_i32_0 : i32, i32
  }
  func.func @transform_9(%arg0: i32, %arg1: i32) -> (i32, i32) {
    %c0_i32 = arith.constant 0 : i32
    %c0_i32_0 = arith.constant 0 : i32
    %c0_i32_1 = arith.constant 0 : i32
    return %c0_i32, %c0_i32_0 : i32, i32
  }
  func.func @transform_10(%arg0: i32, %arg1: i32) -> (i32, i32) {
    %c0_i32 = arith.constant 0 : i32
    %c0_i32_0 = arith.constant 0 : i32
    %c0_i32_1 = arith.constant 0 : i32
    return %c0_i32, %c0_i32_0 : i32, i32
  }
  func.func @transform_11(%arg0: i32, %arg1: i32) -> (i32, i32) {
    %c0_i32 = arith.constant 0 : i32
    %c0_i32_0 = arith.constant 0 : i32
    %c0_i32_1 = arith.constant 0 : i32
    return %c0_i32, %c0_i32_0 : i32, i32
  }
  func.func @transform_12(%arg0: i32, %arg1: i32) -> (i32, i32) {
    %c0_i32 = arith.constant 0 : i32
    %c0_i32_0 = arith.constant 0 : i32
    %c0_i32_1 = arith.constant 0 : i32
    return %c0_i32, %c0_i32_0 : i32, i32
  }
  func.func @transform_13(%arg0: i32, %arg1: i32) -> (i32, i32) {
    %c0_i32 = arith.constant 0 : i32
    %c0_i32_0 = arith.constant 0 : i32
    %c0_i32_1 = arith.constant 0 : i32
    return %c0_i32, %c0_i32_0 : i32, i32
  }
  func.func @transform_14(%arg0: i32, %arg1: i32) -> (i32, i32) {
    %c0_i32 = arith.constant 0 : i32
    %c0_i32_0 = arith.constant 0 : i32
    %c0_i32_1 = arith.constant 0 : i32
    return %c0_i32, %c0_i32_0 : i32, i32
  }
  func.func @transform_15(%arg0: i32, %arg1: i32) -> (i32, i32) {
    %c0_i32 = arith.constant 0 : i32
    %c0_i32_0 = arith.constant 0 : i32
    %c0_i32_1 = arith.constant 0 : i32
    return %c0_i32, %c0_i32_0 : i32, i32
  }
  func.func @transform_16(%arg0: i32, %arg1: i32) -> (i32, i32) {
    %c0_i32 = arith.constant 0 : i32
    %c0_i32_0 = arith.constant 0 : i32
    %c0_i32_1 = arith.constant 0 : i32
    return %c0_i32, %c0_i32_0 : i32, i32
  }
  func.func @transform_17(%arg0: i32, %arg1: i32) -> (i32, i32) {
    %c0_i32 = arith.constant 0 : i32
    %c0_i32_0 = arith.constant 0 : i32
    %c0_i32_1 = arith.constant 0 : i32
    return %c0_i32, %c0_i32_0 : i32, i32
  }
  func.func @transform_18(%arg0: i32, %arg1: i32) -> (i32, i32) {
    %c0_i32 = arith.constant 0 : i32
    %c0_i32_0 = arith.constant 0 : i32
    %c0_i32_1 = arith.constant 0 : i32
    return %c0_i32, %c0_i32_0 : i32, i32
  }
  func.func @transform_19(%arg0: i32, %arg1: i32) -> (i32, i32) {
    %c0_i32 = arith.constant 0 : i32
    %c0_i32_0 = arith.constant 0 : i32
    %c0_i32_1 = arith.constant 0 : i32
    return %c0_i32, %c0_i32_0 : i32, i32
  }
  func.func @transform_20(%arg0: i32, %arg1: i32) -> (i32, i32) {
    %c0_i32 = arith.constant 0 : i32
    %c0_i32_0 = arith.constant 0 : i32
    %c0_i32_1 = arith.constant 0 : i32
    return %c0_i32, %c0_i32_0 : i32, i32
  }
  func.func @transform_21(%arg0: i32, %arg1: i32) -> (i32, i32) {
    %c0_i32 = arith.constant 0 : i32
    %c0_i32_0 = arith.constant 0 : i32
    %c0_i32_1 = arith.constant 0 : i32
    return %c0_i32, %c0_i32_0 : i32, i32
  }
  func.func @transform_22(%arg0: i32, %arg1: i32) -> (i32, i32) {
    %c0_i32 = arith.constant 0 : i32
    %c0_i32_0 = arith.constant 0 : i32
    %c0_i32_1 = arith.constant 0 : i32
    return %c0_i32, %c0_i32_0 : i32, i32
  }
  func.func @transform_23(%arg0: i32, %arg1: i32) -> (i32, i32, i32) {
    %c0_i32 = arith.constant 0 : i32
    %c0_i32_0 = arith.constant 0 : i32
    return %arg0, %arg1, %c0_i32 : i32, i32, i32
  }
}

</mosaic_0001>

<bundles_post_ra>
// kernel: tpu_custom_call.1
= control target key start
LH: loop header
LB: loop body
LE: loop exit
PB: predicated region body
PF: predicated region fallthrough
CT: control target
= control target key end

     0   :  { %s8805_s0 = inlined_call_operand.hbm [shape: f32[2,16,128], index: 0, kind: input, shape index: {}]   ;;  %s8806_s1 = inlined_call_operand.hbm [shape: f32[2,16,128], index: 1, kind: input, shape index: {}]   ;;  %s8807_s2 = inlined_call_operand.hbm [shape: f32[2,24,128], index: 2, kind: input, shape index: {}]   ;;  %s8808_s3 = inlined_call_operand.vmem [shape: f32[1,128], index: 3, kind: input, shape index: {}]   ;;  %s8809_s4 = inlined_call_operand.vmem [shape: f32[1,128], index: 4, kind: input, shape index: {}]   ;;  %s8810_s5 = inlined_call_operand.hbm [shape: bf16[128,128], index: 5, kind: input, shape index: {}]   ;;  %s8811_s6 = inlined_call_operand.hbm [shape: bf16[128,128], index: 6, kind: input, shape index: {}]   ;;  %s8812_s7 = inlined_call_operand.hbm [shape: bf16[128,128], index: 7, kind: input, shape index: {}]   ;;  %s8813_s8 = inlined_call_operand.hbm [shape: bf16[128,128], index: 8, kind: input, shape index: {}]   ;;  %s8814_s9 = inlined_call_operand.vmem [shape: f32[1,128], index: 9, kind: input, shape index: {}]   ;;  %s8815_s10 = inlined_call_operand.vmem [shape: f32[1,128], index: 10, kind: input, shape index: {}]   ;;  %s8816_s11 = inlined_call_operand.vmem [shape: f32[1,128], index: 11, kind: input, shape index: {}]   ;;  %s8817_s12 = inlined_call_operand.hbm [shape: bf16[128,128], index: 12, kind: input, shape index: {}]   ;;  %s8818_s13 = inlined_call_operand.hbm [shape: bf16[128,128], index: 13, kind: input, shape index: {}]   ;;  %s8819_s14 = inlined_call_operand.hbm [shape: bf16[128,128], index: 14, kind: input, shape index: {}]   ;;  %s8820_s15 = inlined_call_operand.hbm [shape: bf16[128,128], index: 15, kind: input, shape index: {}]   ;;  %s8821_s16 = inlined_call_operand.vmem [shape: f32[1,128], index: 16, kind: input, shape index: {}]   ;;  %s8822_s17 = inlined_call_operand.vmem [shape: f32[1,128], index: 17, kind: input, shape index: {}]   ;;  %s8823_s18 = inlined_call_operand.vmem [shape: f32[1,128], index: 18, kind: input, shape index: {}]   ;;  %s8824_s19 = inlined_call_operand.hbm [shape: bf16[128,512], index: 19, kind: input, shape index: {}]   ;;  %s8825_s20 = inlined_call_operand.vmem [shape: f32[1,512], index: 20, kind: input, shape index: {}]   ;;  %s8826_s21 = inlined_call_operand.hbm [shape: bf16[512,128], index: 21, kind: input, shape index: {}]   ;;  %s8827_s22 = inlined_call_operand.vmem [shape: f32[1,128], index: 22, kind: input, shape index: {}]   ;;  %s8828_s23 = inlined_call_operand.hbm [shape: f32[2,16,128], index: 23, kind: output, shape index: {}]  }
   0x1   :  { %8864 = sst [smem:[#allocation40_spill]] %s8805_s0 }
   0x2   :  { %8865 = sst [smem:[#allocation41_spill]] %s8806_s1 }
   0x3   :  { %8866 = sst [smem:[#allocation42_spill]] %s8807_s2 }
   0x4   :  { %8867 = sst [smem:[#allocation43_spill]] %s8808_s3 }
   0x5   :  { %8868 = sst [smem:[#allocation44_spill]] %s8809_s4 }
   0x6   :  { %8869 = sst [smem:[#allocation45_spill]] %s8810_s5 }
   0x7   :  { %8870 = sst [smem:[#allocation46_spill]] %s8811_s6 }
   0x8   :  { %8871 = sst [smem:[#allocation47_spill]] %s8812_s7 }
   0x9   :  { %8872 = sst [smem:[#allocation48_spill]] %s8813_s8 }
   0xa   :  { %8873 = sst [smem:[#allocation49_spill]] %s8814_s9 }
   0xb   :  { %8874 = sst [smem:[#allocation50_spill]] %s8815_s10 }
   0xc   :  { %8875 = sst [smem:[#allocation51_spill]] %s8816_s11 }
   0xd   :  { %8876 = sst [smem:[#allocation52_spill]] %s8817_s12 }
   0xe   :  { %8877 = sst [smem:[#allocation53_spill]] %s8818_s13 }
   0xf   :  { %8878 = sst [smem:[#allocation54_spill]] %s8819_s14 }
  0x10   :  { %8879 = sst [smem:[#allocation55_spill]] %s8820_s15 }
  0x11   :  { %8880 = sst [smem:[#allocation56_spill]] %s8821_s16 }
  0x12   :  { %8881 = sst [smem:[#allocation57_spill]] %s8822_s17 }
  0x13   :  { %8882 = sst [smem:[#allocation58_spill]] %s8823_s18 }
  0x14   :  { %8883 = sst [smem:[#allocation59_spill]] %s8824_s19 }
  0x15   :  { %8884 = sst [smem:[#allocation60_spill]] %s8825_s20 }
  0x16   :  { %8885 = sst [smem:[#allocation61_spill]] %s8826_s21 }
  0x17   :  { %8886 = sst [smem:[#allocation62_spill]] %s8827_s22 }
  0x18   :  { %8887 = sst [smem:[#allocation63_spill]] %s8828_s23 }
  0x19   :  { %28 = vsyncpa [#allocation3], 0 }
  0x1a   :  { %30 = vsyncpa [#allocation3 + $0x1], 0 }
  0x1b   :  { %31 = vsyncpa [#allocation6], 0 }
  0x1c   :  { %33 = vsyncpa [#allocation6 + $0x1], 0 }
  0x1d   :  { %34 = vsyncpa [#allocation9], 0 }
  0x1e   :  { %35 = vsyncpa [#allocation12], 0 }
  0x1f   :  { %36 = vsyncpa [#allocation15], 0 }
  0x20   :  { %37 = vsyncpa [#allocation18], 0 }
  0x21   :  { %38 = vsyncpa [#allocation21], 0 }
  0x22   :  { %39 = vsyncpa [#allocation4], 0 }
  0x23   :  { %41 = vsyncpa [#allocation4 + $0x1], 0  ;;  %s7507_s4 = smov 0   ;;  %s7509_s30 = smov 0  }
  0x24   :  { %s7511_s24 = smov 0   ;;  %s7513_s25 = smov 0  }
  0x25   :  { %s7515_s5 = smov 0   ;;  %s7517_s1 = smov 0  }
  0x26   :  { %s7519_s26 = smov 0   ;;  %s7521_s2 = smov 0  }
  0x27   :  { %s7523_s6 = smov 0   ;;  %s7525_s27 = smov 0  }
  0x28   :  { %s7527_s7 = smov 0  }
  0x29 LB: > { %8888 = sst [smem:[#allocation32_spill]] %s7329_s25  ;;  %s7563_s28 = sadd.s32 4294967295, %s7357_s7   ;;  %s7357_s7 = sphi %s7527_s7, %s47_s7   ;;  %s7353_s27 = sphi %s7525_s27, %s8976_s27   ;;  %s7349_s6 = sphi %s7523_s6, %s8975_s6   ;;  %s7345_s2 = sphi %s7521_s2, %s8974_s2   ;;  %s7341_s26 = sphi %s7519_s26, %s8968_s26   ;;  %s7337_s1 = sphi %s7517_s1, %s8973_s1   ;;  %s7333_s5 = sphi %s7515_s5, %s8967_s5   ;;  %s7329_s25 = sphi %s7513_s25, %s8966_s25   ;;  %s7325_s24 = sphi %s7511_s24, %s8972_s24   ;;  %s7321_s30 = sphi %s7509_s30, %s8971_s30   ;;  %s7317_s4 = sphi %s7507_s4, %s8970_s4  }
  0x2a   : > { %8889 = sst [smem:[#allocation33_spill]] %s7333_s5  ;;  %p5774_p0 = scmp.ge.s32.totalorder %s7357_s7, 1 }
  0x2b   : > { %8890 = sst [smem:[#allocation34_spill]] %s7337_s1  ;;  %p8842_p1 = scmp.eq.s32.totalorder %s7563_s28, 0 }
  0x2c   : > { %8891 = sst [smem:[#allocation35_spill]] %s7341_s26  ;;  %p592_p2 = scmp.lt.s32.totalorder %s7357_s7, 5 }
  0x2d   : > { %8892 = sst [smem:[#allocation36_spill]] %s7345_s2  ;;  %s7359_s3 = smov [#allocation8]  }
  0x2e   : > { %8893 = sst [smem:[#allocation37_spill]] %s7349_s6  ;;  %p7568_p3 = pnand %p5774_p0, %p592_p2 }
  0x2f   : > { %s610_s0 = sshll.u32 %s7359_s3, 4  ;;  %s7360_s22 = smov [#allocation11]   ;;  %s7572_s0 = int_to_ptr.vmem [resolvable:$true] %s610_s0 }
  0x30   : > { %s8894_s29 = scalar_select %p7568_p3, 1, 0 }
  0x31   : > { %p6475_p4 = pneg %p7568_p3  ;;  %s636_s26 = sshll.u32 %s7360_s22, 4  ;;  %s7582_s26 = int_to_ptr.vmem [resolvable:$true] %s636_s26 }
  0x32   : > { %8895 = sst [smem:[#allocation38_spill]] %s8894_s29  ;;  %s7361_s2 = smov [#allocation14]  }
  0x33   : > { %p7578_p5 = pnand %p6475_p4, %p8842_p1  ;;  %s7584_s20 = sshll.u32 %s7361_s2, 4  ;;  %s672_s20 = int_to_ptr.vmem [resolvable:$true] %s7584_s20 }
  0x34   : > { %s8897_s3 = sld [smem:[#allocation45_spill]] }
  0x35   : > { %s8896_s23 = scalar_select %p7578_p5, 1, 0 }
  0x36   : > { %p7594_p7 = pneg %p7578_p5 }
  0x3a   : > { %s6841_s16 = scalar_lea.hbm %s8897_s3, 1024 }
  0x3b   : > { %p6842_p6 = scmp.ne.s32.totalorder %s8897_s3, %s6841_s16  ;;  %p6848_p10 = scmp.lt.u32.totalorder %s6841_s16, %s8897_s3 }
  0x3d   : > { %p6844_p8 = pnand %p7594_p7, %p6842_p6 }
  0x3f   : > { %p6845_p9 = pneg %p6844_p8 }
  0x41   : > { %p6850_p11 = pnand %p6848_p10, %p6845_p9 }
  0x43   : > { %6853 = shalt.err (!%p6850_p11)
}
  0x44   : > { %s6854_s10 = scalar_lea.vmem %s7572_s0, 1024  ;;  %p6862_p2 = scmp.lt.s32.totalorder %s7572_s0, %s7572_s0 }
  0x45   : > { %p6855_p12 = scmp.ne.s32.totalorder %s7572_s0, %s6854_s10  ;;  %p6863_p4 = scmp.lt.s32.totalorder %s6854_s10, %s6854_s10 }
  0x47   : > { %p6857_p13 = pnand %p6855_p12, %p7594_p7  ;;  %p6864_p6 = por %p6863_p4, %p6862_p2 }
  0x49   : > { %p6858_p0 = pneg %p6857_p13 }
  0x4b   : > { %p6865_p8 = pnand %p6864_p6, %p6858_p0 }
  0x4d   : > { %6868 = shalt.err (!%p6865_p8)
}
  0x4e   : > { %s8850_s11 = smov 64   ;;  %s8852_s16 = smov 4  }
  0x4f   : > { %6478 = dma.hbm_to_vmem [thread:$0]  (!%p7578_p5), %s8897_s3, 1024, %s7572_s0, [#allocation9], %s8850_s11, %s8850_s11, %s8852_s16  }
  0x50   : > { %s8899_s29 = sld [smem:[#allocation47_spill]] }
  0x56   : > { %s6869_s10 = scalar_lea.hbm %s8899_s29, 1024 }
  0x57   : > { %p6870_p9 = scmp.ne.s32.totalorder %s8899_s29, %s6869_s10  ;;  %p6876_p12 = scmp.lt.u32.totalorder %s6869_s10, %s8899_s29 }
  0x59   : > { %p6872_p10 = pnand %p6870_p9, %p7594_p7 }
  0x5b   : > { %p6873_p11 = pneg %p6872_p10 }
  0x5d   : > { %p6878_p13 = pnand %p6876_p12, %p6873_p11 }
  0x5f   : > { %6881 = shalt.err (!%p6878_p13)
}
  0x60   : > { %s6882_s0 = scalar_lea.vmem %s7582_s26, 1024  ;;  %p6890_p6 = scmp.lt.s32.totalorder %s7582_s26, %s7582_s26 }
  0x61   : > { %p6883_p0 = scmp.ne.s32.totalorder %s7582_s26, %s6882_s0  ;;  %p6891_p8 = scmp.lt.s32.totalorder %s6882_s0, %s6882_s0 }
  0x63   : > { %p6885_p2 = pnand %p6883_p0, %p7594_p7  ;;  %p6892_p9 = por %p6891_p8, %p6890_p6 }
  0x65   : > { %p6886_p4 = pneg %p6885_p2 }
  0x67   : > { %p6893_p10 = pnand %p6892_p9, %p6886_p4 }
  0x69   : > { %6896 = shalt.err (!%p6893_p10)
}
  0x6a   : > { %6484 = dma.hbm_to_vmem [thread:$0]  (!%p7578_p5), %s8899_s29, 1024, %s7582_s26, [#allocation12], %s8850_s11, %s8850_s11, %s8852_s16  }
  0x6b   : > { %s8900_s12 = sld [smem:[#allocation52_spill]] }
  0x71   : > { %s6897_s17 = scalar_lea.hbm %s8900_s12, 1024 }
  0x72   : > { %p6898_p11 = scmp.ne.s32.totalorder %s8900_s12, %s6897_s17  ;;  %p6904_p0 = scmp.lt.u32.totalorder %s6897_s17, %s8900_s12 }
  0x74   : > { %p6900_p12 = pnand %p6898_p11, %p7594_p7 }
  0x76   : > { %p6901_p13 = pneg %p6900_p12 }
  0x78   : > { %p6906_p2 = pnand %p6904_p0, %p6901_p13 }
  0x7a   : > { %6909 = shalt.err (!%p6906_p2)
}
  0x7b   : > { %s6910_s0 = scalar_lea.vmem %s672_s20, 1024  ;;  %p6918_p9 = scmp.lt.s32.totalorder %s672_s20, %s672_s20 }
  0x7c   : > { %p6911_p4 = scmp.ne.s32.totalorder %s672_s20, %s6910_s0  ;;  %p6919_p10 = scmp.lt.s32.totalorder %s6910_s0, %s6910_s0 }
  0x7e   : > { %p6913_p6 = pnand %p6911_p4, %p7594_p7  ;;  %p6920_p1 = por %p6919_p10, %p6918_p9 }
  0x80   : > { %p6914_p8 = pneg %p6913_p6 }
  0x82   : > { %p6921_p3 = pnand %p6920_p1, %p6914_p8 }
  0x84   : > { %6924 = shalt.err (!%p6921_p3)
}
  0x85   : > { %6490 = dma.hbm_to_vmem [thread:$0]  (!%p7578_p5), %s8900_s12, 1024, %s672_s20, [#allocation15], %s8850_s11, %s8850_s11, %s8852_s16  }
  0x86   : > { %s7364_s5 = smov [#allocation17]   ;;  %s7365_s6 = smov [#allocation20]  }
  0x87   : > { %s697_s1 = sshll.u32 %s7364_s5, 4  ;;  %s732_s17 = sshll.u32 %s7365_s6, 4  ;;  %s698_s1 = int_to_ptr.vmem [resolvable:$true] %s697_s1  ;;  %s733_s17 = int_to_ptr.vmem [resolvable:$true] %s732_s17 }
  0x88   : > { %s8901_s14 = sld [smem:[#allocation54_spill]] }
  0x8e   : > { %s6925_s2 = scalar_lea.hbm %s8901_s14, 1024 }
  0x8f   : > { %p6926_p1 = scmp.ne.s32.totalorder %s8901_s14, %s6925_s2  ;;  %p6932_p12 = scmp.lt.u32.totalorder %s6925_s2, %s8901_s14 }
  0x91   : > { %p6928_p3 = pnand %p6926_p1, %p7594_p7 }
  0x93   : > { %p6929_p11 = pneg %p6928_p3 }
  0x95   : > { %p6934_p13 = pnand %p6932_p12, %p6929_p11 }
  0x97   : > { %6937 = shalt.err (!%p6934_p13)
}
  0x98   : > { %s6938_s20 = scalar_lea.vmem %s698_s1, 1024  ;;  %p6946_p6 = scmp.lt.s32.totalorder %s698_s1, %s698_s1 }
  0x99   : > { %p6939_p0 = scmp.ne.s32.totalorder %s698_s1, %s6938_s20  ;;  %p6947_p8 = scmp.lt.s32.totalorder %s6938_s20, %s6938_s20 }
  0x9b   : > { %p6941_p2 = pnand %p6939_p0, %p7594_p7  ;;  %p6948_p9 = por %p6947_p8, %p6946_p6 }
  0x9d   : > { %p6942_p4 = pneg %p6941_p2 }
  0x9f   : > { %p6949_p10 = pnand %p6948_p9, %p6942_p4 }
  0xa1   : > { %6952 = shalt.err (!%p6949_p10)
}
  0xa2   : > { %6496 = dma.hbm_to_vmem [thread:$0]  (!%p7578_p5), %s8901_s14, 1024, %s698_s1, [#allocation18], %s8850_s11, %s8850_s11, %s8852_s16  }
  0xa3   : > { %s8902_s19 = sld [smem:[#allocation59_spill]] }
  0xa9   : > { %s6953_s18 = scalar_lea.hbm %s8902_s19, 4096 }
  0xaa   : > { %p6954_p1 = scmp.ne.s32.totalorder %s8902_s19, %s6953_s18  ;;  %p6960_p12 = scmp.lt.u32.totalorder %s6953_s18, %s8902_s19 }
  0xac   : > { %p6956_p3 = pnand %p6954_p1, %p7594_p7 }
  0xae   : > { %p6957_p11 = pneg %p6956_p3 }
  0xb0   : > { %p6962_p13 = pnand %p6960_p12, %p6957_p11 }
  0xb2   : > { %6965 = shalt.err (!%p6962_p13)
}
  0xb3   : > { %s6966_s26 = scalar_lea.vmem %s733_s17, 4096  ;;  %p6974_p6 = scmp.lt.s32.totalorder %s733_s17, %s733_s17 }
  0xb4   : > { %p6967_p0 = scmp.ne.s32.totalorder %s733_s17, %s6966_s26  ;;  %p6975_p8 = scmp.lt.s32.totalorder %s6966_s26, %s6966_s26 }
  0xb6   : > { %p6969_p2 = pnand %p6967_p0, %p7594_p7  ;;  %p6976_p9 = por %p6975_p8, %p6974_p6 }
  0xb8   : > { %p6970_p4 = pneg %p6969_p2 }
  0xba   : > { %p6977_p10 = pnand %p6976_p9, %p6970_p4 }
  0xbc   : > { %6980 = shalt.err (!%p6977_p10)
}
  0xbd   : > { %s7366_s1 = smov 256   ;;  %s7367_s20 = smov 16  }
  0xbe   : > { %6502 = dma.hbm_to_vmem [thread:$0]  (!%p7578_p5), %s8902_s19, 4096, %s733_s17, [#allocation21], %s7366_s1, %s7366_s1, %s7367_s20  }
  0xbf   : > { %p8846_p1 = scmp.eq.s32.totalorder %s7357_s7, 0  ;;  %p101_p3 = scmp.ne.s32.totalorder %s7325_s24, %s7321_s30 }
  0xc0   : > { %p107_p11 = scmp.ne.s32.totalorder %s7321_s30, %s7317_s4  ;;  %p8845_p12 = scmp.lt.s32.totalorder %s7357_s7, 4 }
  0xc1   : > { %s785_s5 = sand.u32 1, %s7357_s7   ;;  %p103_p13 = por %p101_p3, %p8846_p1 }
  0xc2   : > { %p8903_p0 = scmp.eq.s32.totalorder %s7563_s28, 0  ;;  %s787_s18 = sand.u32 1, %s7325_s24  }
  0xc3   : > { %s5789_s22 = sshll.u32 %s787_s18, 4  ;;  %s5993_s2 = sshll.u32 %s7353_s27, 8 }
  0xc4   : > { %p7716_p2 = por %p107_p11, %p8903_p0  ;;  %s8905_s26 = sld [smem:[#allocation41_spill]] }
  0xc5   : > { %s789_s4 = scalar_lea.vmem [#allocation5], %s5789_s22  ;;  %p7731_p4 = pnand %p8845_p12, %p103_p13 }
  0xc6   : > { %s8904_s6 = scalar_select %p7716_p2, 1, 0 }
  0xc7   : > { %s796_s1 = sshll.u32 %s789_s4, 4  ;;  %s7737_s25 = scalar_lea.sflag [#allocation6], %s785_s5  ;;  %s7735_s1 = int_to_ptr.vmem [resolvable:$true] %s796_s1 }
  0xc8   : > { %s8907_s20 = scalar_select %p7731_p4, 1, 0 }
  0xc9   : > { %p8855_p8 = pneg %p7731_p4 }
  0xca   : > { %s8906_s3 = smov %s8905_s26  ;;  %s7727_s17 = scalar_lea.hbm %s8905_s26, %s5993_s2 }
  0xcb   : > { %s6981_s10 = scalar_lea.hbm %s7727_s17, 256  ;;  %s6986_s0 = scalar_lea.hbm %s8906_s3, 512 }
  0xcc   : > { %p6982_p6 = scmp.ne.s32.totalorder %s7727_s17, %s6981_s10  ;;  %p6987_p3 = scmp.lt.u32.totalorder %s7727_s17, %s8906_s3 }
  0xcd   : > { %p6988_p11 = scmp.lt.u32.totalorder %s6986_s0, %s6981_s10  ;;  %p6990_p0 = scmp.lt.u32.totalorder %s6981_s10, %s7727_s17 }
  0xce   : > { %p6984_p9 = pnand %p8855_p8, %p6982_p6 }
  0xcf   : > { %p6989_p13 = por %p6988_p11, %p6987_p3 }
  0xd0   : > { %p6985_p10 = pneg %p6984_p9 }
  0xd1   : > { %p6991_p12 = por %p6990_p0, %p6989_p13 }
  0xd3   : > { %p6992_p1 = pnand %p6991_p12, %p6985_p10 }
  0xd5   : > { %6995 = shalt.err (!%p6992_p1)
}
  0xd6   : > { %s6996_s5 = scalar_lea.vmem %s7735_s1, 256  ;;  %s7368_s22 = smov [#allocation5]  }
  0xd7   : > { %p6997_p6 = scmp.ne.s32.totalorder %s7735_s1, %s6996_s5  ;;  %s7001_s2 = sshll.u32 %s7368_s22, 4  ;;  %s7002_s2 = int_to_ptr.vmem [resolvable:$false] %s7001_s2 }
  0xd8   : > { %s7003_s26 = scalar_lea.vmem %s7002_s2, 512  ;;  %p7004_p5 = scmp.lt.s32.totalorder %s7735_s1, %s7002_s2 }
  0xd9   : > { %p6999_p9 = pnand %p6997_p6, %p8855_p8  ;;  %p7005_p3 = scmp.lt.s32.totalorder %s7003_s26, %s6996_s5 }
  0xdb   : > { %p7000_p2 = pneg %p6999_p9  ;;  %p7006_p11 = por %p7005_p3, %p7004_p5 }
  0xdd   : > { %p7007_p13 = pnand %p7006_p11, %p7000_p2 }
  0xdf   : > { %7010 = shalt.err (!%p7007_p13)
}
  0xe0   : > { %s8856_s10 = smov 128   ;;  %s8857_s0 = smov 8  }
  0xe1   : > { %6512 = dma.hbm_to_vmem [thread:$0]  (!%p7731_p4), %s7727_s17, 256, %s7735_s1, %s7737_s25, %s8856_s10, %s8856_s10, %s8857_s0  }
  0xe2   : > { %s7770_s4 = smul.u32 24, %s787_s18  ;;  %s7371_s5 = smov [#allocation10]  }
  0xe3   : > { %s623_s22 = sshll.u32 %s7371_s5, 4  ;;  %s8908_s11 = sld [smem:[#allocation46_spill]]  ;;  %s624_s22 = int_to_ptr.vmem [resolvable:$true] %s623_s22 }
  0xe9   : > { %s7011_s16 = scalar_lea.hbm %s8908_s11, 1024 }
  0xea   : > { %p7012_p5 = scmp.ne.s32.totalorder %s8908_s11, %s7011_s16  ;;  %p7018_p2 = scmp.lt.u32.totalorder %s7011_s16, %s8908_s11 }
  0xec   : > { %p7014_p1 = pnand %p7012_p5, %p7594_p7 }
  0xee   : > { %p7015_p12 = pneg %p7014_p1 }
  0xf0   : > { %p7020_p10 = pnand %p7018_p2, %p7015_p12 }
  0xf2   : > { %7023 = shalt.err (!%p7020_p10)
}
  0xf3   : > { %s7024_s18 = scalar_lea.vmem %s624_s22, 1024  ;;  %p7032_p3 = scmp.lt.s32.totalorder %s624_s22, %s624_s22 }
  0xf4   : > { %p7025_p0 = scmp.ne.s32.totalorder %s624_s22, %s7024_s18  ;;  %p7033_p11 = scmp.lt.s32.totalorder %s7024_s18, %s7024_s18 }
  0xf6   : > { %p7027_p6 = pnand %p7025_p0, %p7594_p7  ;;  %p7034_p13 = por %p7033_p11, %p7032_p3 }
  0xf8   : > { %p7028_p9 = pneg %p7027_p6 }
  0xfa   : > { %p7035_p8 = pnand %p7034_p13, %p7028_p9 }
  0xfc   : > { %7038 = shalt.err (!%p7035_p8)
}
  0xfd   : > { %p8909_p5 = scmp.ne.s32.totalorder %s8896_s23, 0  ;;  %s8910_s12 = smov 4  }
  0xfe   : > { %s8911_s3 = smov 64   ;;  %s7372_s16 = smov [#allocation13]  }
  0xff   : > { %6481 = dma.hbm_to_vmem [thread:$0]  (!%p8909_p5), %s8908_s11, 1024, %s624_s22, [#allocation9], %s8911_s3, %s8911_s3, %s8910_s12  }
 0x100   : > { %s649_s17 = sshll.u32 %s7372_s16, 4  ;;  %s7373_s1 = smov [#allocation16]   ;;  %s650_s17 = int_to_ptr.vmem [resolvable:$true] %s649_s17 }
 0x101   : > { %s684_s5 = sshll.u32 %s7373_s1, 4  ;;  %s8912_s8 = sld [smem:[#allocation48_spill]]  ;;  %s685_s5 = int_to_ptr.vmem [resolvable:$true] %s684_s5 }
 0x107   : > { %s7039_s18 = scalar_lea.hbm %s8912_s8, 1024 }
 0x108   : > { %p7040_p8 = scmp.ne.s32.totalorder %s8912_s8, %s7039_s18  ;;  %p7046_p2 = scmp.lt.u32.totalorder %s7039_s18, %s8912_s8 }
 0x10a   : > { %p7042_p1 = pnand %p7040_p8, %p7594_p7 }
 0x10c   : > { %p7043_p12 = pneg %p7042_p1 }
 0x10e   : > { %p7048_p10 = pnand %p7046_p2, %p7043_p12 }
 0x110   : > { %7051 = shalt.err (!%p7048_p10)
}
 0x111   : > { %s7052_s22 = scalar_lea.vmem %s650_s17, 1024  ;;  %p7060_p3 = scmp.lt.s32.totalorder %s650_s17, %s650_s17 }
 0x112   : > { %p7053_p0 = scmp.ne.s32.totalorder %s650_s17, %s7052_s22  ;;  %p7061_p11 = scmp.lt.s32.totalorder %s7052_s22, %s7052_s22 }
 0x114   : > { %p7055_p6 = pnand %p7053_p0, %p7594_p7  ;;  %p7062_p13 = por %p7061_p11, %p7060_p3 }
 0x116   : > { %p7056_p9 = pneg %p7055_p6 }
 0x118   : > { %p7063_p4 = pnand %p7062_p13, %p7056_p9 }
 0x11a   : > { %7066 = shalt.err (!%p7063_p4)
}
 0x11b   : > { %6487 = dma.hbm_to_vmem [thread:$0]  (!%p8909_p5), %s8912_s8, 1024, %s650_s17, [#allocation12], %s8911_s3, %s8911_s3, %s8910_s12  }
 0x11c   : > { %s8913_s13 = sld [smem:[#allocation53_spill]] }
 0x122   : > { %s7067_s16 = scalar_lea.hbm %s8913_s13, 1024 }
 0x123   : > { %p7068_p8 = scmp.ne.s32.totalorder %s8913_s13, %s7067_s16  ;;  %p7074_p12 = scmp.lt.u32.totalorder %s7067_s16, %s8913_s13 }
 0x125   : > { %p7070_p4 = pnand %p7068_p8, %p7594_p7 }
 0x127   : > { %p7071_p1 = pneg %p7070_p4 }
 0x129   : > { %p7076_p2 = pnand %p7074_p12, %p7071_p1 }
 0x12b   : > { %7079 = shalt.err (!%p7076_p2)
}
 0x12c   : > { %s7080_s14 = scalar_lea.vmem %s685_s5, 1024  ;;  %p7088_p9 = scmp.lt.s32.totalorder %s685_s5, %s685_s5 }
 0x12d   : > { %p7081_p10 = scmp.ne.s32.totalorder %s685_s5, %s7080_s14  ;;  %p7089_p3 = scmp.lt.s32.totalorder %s7080_s14, %s7080_s14 }
 0x12f   : > { %p7083_p0 = pnand %p7081_p10, %p7594_p7  ;;  %p7090_p11 = por %p7089_p3, %p7088_p9 }
 0x131   : > { %p7084_p6 = pneg %p7083_p0 }
 0x133   : > { %p7091_p13 = pnand %p7090_p11, %p7084_p6 }
 0x135   : > { %7094 = shalt.err (!%p7091_p13)
}
 0x136   : > { %6493 = dma.hbm_to_vmem [thread:$0]  (!%p8909_p5), %s8913_s13, 1024, %s685_s5, [#allocation15], %s8911_s3, %s8911_s3, %s8910_s12  }
 0x137   : > { %s7374_s29 = smov [#allocation19]   ;;  %s7375_s0 = smov [#allocation22]  }
 0x138   : > { %s710_s10 = sshll.u32 %s7374_s29, 4  ;;  %s748_s19 = sshll.u32 %s7375_s0, 4  ;;  %s711_s10 = int_to_ptr.vmem [resolvable:$true] %s710_s10  ;;  %s749_s19 = int_to_ptr.vmem [resolvable:$true] %s748_s19 }
 0x139   : > { %s8914_s15 = sld [smem:[#allocation55_spill]] }
 0x13f   : > { %s7095_s2 = scalar_lea.hbm %s8914_s15, 1024 }
 0x140   : > { %p7096_p8 = scmp.ne.s32.totalorder %s8914_s15, %s7095_s2  ;;  %p7102_p12 = scmp.lt.u32.totalorder %s7095_s2, %s8914_s15 }
 0x142   : > { %p7098_p4 = pnand %p7096_p8, %p7594_p7 }
 0x144   : > { %p7099_p1 = pneg %p7098_p4 }
 0x146   : > { %p7104_p2 = pnand %p7102_p12, %p7099_p1 }
 0x148   : > { %7107 = shalt.err (!%p7104_p2)
}
 0x149   : > { %s7108_s5 = scalar_lea.vmem %s711_s10, 1024  ;;  %p7116_p9 = scmp.lt.s32.totalorder %s711_s10, %s711_s10 }
 0x14a   : > { %p7109_p10 = scmp.ne.s32.totalorder %s711_s10, %s7108_s5  ;;  %p7117_p3 = scmp.lt.s32.totalorder %s7108_s5, %s7108_s5 }
 0x14c   : > { %p7111_p0 = pnand %p7109_p10, %p7594_p7  ;;  %p7118_p11 = por %p7117_p3, %p7116_p9 }
 0x14e   : > { %p7112_p6 = pneg %p7111_p0 }
 0x150   : > { %p7119_p13 = pnand %p7118_p11, %p7112_p6 }
 0x152   : > { %7122 = shalt.err (!%p7119_p13)
}
 0x153   : > { %6499 = dma.hbm_to_vmem [thread:$0]  (!%p8909_p5), %s8914_s15, 1024, %s711_s10, [#allocation18], %s8911_s3, %s8911_s3, %s8910_s12  }
 0x154   : > { %s8915_s21 = sld [smem:[#allocation61_spill]] }
 0x15a   : > { %s7123_s1 = scalar_lea.hbm %s8915_s21, 4096 }
 0x15b   : > { %p7124_p8 = scmp.ne.s32.totalorder %s8915_s21, %s7123_s1  ;;  %p7130_p12 = scmp.lt.u32.totalorder %s7123_s1, %s8915_s21 }
 0x15d   : > { %p7126_p4 = pnand %p7124_p8, %p7594_p7 }
 0x15f   : > { %p7127_p1 = pneg %p7126_p4 }
 0x161   : > { %p7132_p2 = pnand %p7130_p12, %p7127_p1 }
 0x163   : > { %7135 = shalt.err (!%p7132_p2)
}
 0x164   : > { %s7136_s17 = scalar_lea.vmem %s749_s19, 4096  ;;  %p7144_p9 = scmp.lt.s32.totalorder %s749_s19, %s749_s19 }
 0x165   : > { %p7137_p10 = scmp.ne.s32.totalorder %s749_s19, %s7136_s17  ;;  %p7145_p3 = scmp.lt.s32.totalorder %s7136_s17, %s7136_s17 }
 0x167   : > { %p7139_p0 = pnand %p7137_p10, %p7594_p7  ;;  %p7146_p11 = por %p7145_p3, %p7144_p9 }
 0x169   : > { %p7140_p6 = pneg %p7139_p0 }
 0x16b   : > { %p7147_p13 = pnand %p7146_p11, %p7140_p6 }
 0x16d   : > { %7150 = shalt.err (!%p7147_p13)
}
 0x16e   : > { %s8916_s22 = sld [smem:[#allocation37_spill]]  ;;  %s8917_s29 = sld [smem:[#allocation34_spill]] }
 0x16f   : > { %s8918_s9 = sld [smem:[#allocation33_spill]]  ;;  %s8919_s0 = sld [smem:[#allocation32_spill]] }
 0x170   : > { %6505 = dma.hbm_to_vmem [thread:$0]  (!%p8909_p5), %s8915_s21, 4096, %s749_s19, [#allocation21], %s8911_s3, %s8911_s3, %s8910_s12  }
 0x171   : > { %s5773_s23 = sadd.s32 4294967294, %s7357_s7   ;;  %s59_s1 = sadd.s32 1, %s7353_s27 }
 0x172   : > { %p8920_p1 = scmp.eq.s32.totalorder %s7357_s7, 0  ;;  %p8922_p2 = scmp.eq.s32.totalorder %s7563_s28, 0 }
 0x173   : > { %s94_s19 = sadd.s32 1, %s7325_s24  ;;  %p579_p0 = scmp.eq.s32.totalorder %s7563_s28, 3 }
 0x174   : > { %s56_s16 = sadd.s32 1, %s8916_s22  ;;  %s68_s2 = sadd.s32 1, %s8917_s29 }
 0x175   : > { %p57_p7 = scmp.ge.s32.totalorder %s56_s16, 2  ;;  %p75_p8 = scmp.ne.s32.totalorder %s8917_s29, %s8918_s9 }
 0x176   : > { %p81_p4 = scmp.ne.s32.totalorder %s8918_s9, %s8919_s0  ;;  %p585_p9 = scmp.eq.s32.totalorder %s5773_s23, 3 }
 0x177   : > { %s8978_s16 = smov (%p57_p7, %s56_s16), 0  ;;  %s8980_s1 = smov (!%p57_p7, %s59_s1), %s7353_s27 }
 0x178   : > { %s64_s26 = ssub.s32 %s8916_s22, %s8978_s16  ;;  %p7892_p5 = por %p8920_p1, %p75_p8 }
 0x179   : > { %p61_p12 = scmp.ge.s32.totalorder %s8980_s1, 2  ;;  %p7901_p10 = por %p8922_p2, %p81_p4 }
 0x17a   : > { %p7909_p6 = por %p579_p0, %p75_p8  ;;  %s765_s17 = sand.u32 1, %s8917_s29  }
 0x17b   : > { %s8982_s1 = smov (%p61_p12, %s8980_s1), 0  ;;  %p7919_p13 = por %p585_p9, %p81_p4 }
 0x17c   : > { %8924 = sst [smem:[#allocation39_spill]] %s8982_s1  ;;  %s63_s14 = ssub.s32 %s7353_s27, %s8982_s1 }
 0x17d   : > { %s8925_s18 = scalar_select %p7909_p6, 1, 0 }
 0x17e   : > { %s65_s10 = sor.u32 %s64_s26, %s63_s14  ;;  %p92_p3 = scmp.eq.s32.totalorder %s63_s14, 0 }
 0x17f   : > { %p66_p11 = scmp.eq.s32.totalorder %s65_s10, 0  ;;  %s5786_s11 = sshll.u32 %s765_s17, 3 }
 0x180   : > { %s8926_s5 = scalar_select %p7919_p13, 1, 0 }
 0x181   : > { %s7924_s8 = scalar_select %p92_p3, %s7325_s24, %s94_s19  }
 0x182   : > { %s8984_s29 = smov (!%p66_p11, %s8917_s29), %s68_s2  ;;  %s5787_s23 = sshll.u32 %s7353_s27, 1 }
 0x183   : > { %s774_s13 = sadd.s32 %s8916_s22, %s5787_s23  ;;  %s769_s15 = scalar_lea.vmem [#allocation2], %s5786_s11 }
 0x184   : > { %s778_s21 = sshll.u32 %s769_s15, 4  ;;  %s5788_s1 = sshll.u32 %s774_s13, 7  ;;  %s7931_s21 = int_to_ptr.vmem [resolvable:$true] %s778_s21 }
 0x185   : > { %s8927_s10 = sld [smem:[#allocation40_spill]]  ;;  %p8928_p7 = scmp.lt.s32.totalorder %s7357_s7, 4 }
 0x186   : > { %s6425_s13 = smul.u32 384, %s7353_s27  ;;  %s810_s15 = scalar_lea.vmem [#allocation7], %s7770_s4 }
 0x187   : > { %p7942_p8 = pnand %p8928_p7, %p7892_p5  ;;  %s817_s11 = sshll.u32 %s810_s15, 4  ;;  %s7948_s11 = int_to_ptr.vmem [resolvable:$true] %s817_s11 }
 0x188   : > { %s766_s22 = scalar_lea.sflag [#allocation3], %s765_s17 }
 0x189   : > { %p7153_p1 = pneg %p7942_p8 }
 0x18b   : > { %s7936_s9 = scalar_lea.hbm %s8927_s10, %s5788_s1  ;;  %s7156_s19 = scalar_lea.hbm %s8927_s10, 512 }
 0x18c   : > { %s7151_s1 = scalar_lea.hbm %s7936_s9, 128  ;;  %p7157_p5 = scmp.lt.u32.totalorder %s7936_s9, %s8927_s10 }
 0x18d   : > { %p7152_p4 = scmp.ne.s32.totalorder %s7936_s9, %s7151_s1  ;;  %p7158_p0 = scmp.lt.u32.totalorder %s7156_s19, %s7151_s1 }
 0x18e   : > { %p7160_p3 = scmp.lt.u32.totalorder %s7151_s1, %s7936_s9 }
 0x18f   : > { %p7154_p12 = pnand %p7153_p1, %p7152_p4  ;;  %p7159_p9 = por %p7158_p0, %p7157_p5 }
 0x191   : > { %p7155_p2 = pneg %p7154_p12  ;;  %p7161_p11 = por %p7160_p3, %p7159_p9 }
 0x193   : > { %p7162_p7 = pnand %p7161_p11, %p7155_p2 }
 0x195   : > { %7165 = shalt.err (!%p7162_p7)
}
 0x196   : > { %s7166_s4 = scalar_lea.vmem %s7931_s21, 128  ;;  %s7376_s17 = smov [#allocation2]  }
 0x197   : > { %p7167_p4 = scmp.ne.s32.totalorder %s7931_s21, %s7166_s4  ;;  %s7171_s14 = sshll.u32 %s7376_s17, 4  ;;  %s7172_s14 = int_to_ptr.vmem [resolvable:$false] %s7171_s14 }
 0x198   : > { %s7173_s15 = scalar_lea.vmem %s7172_s14, 256  ;;  %p7174_p6 = scmp.lt.s32.totalorder %s7931_s21, %s7172_s14 }
 0x199   : > { %p7169_p12 = pnand %p7167_p4, %p7153_p1  ;;  %p7175_p5 = scmp.lt.s32.totalorder %s7173_s15, %s7166_s4 }
 0x19b   : > { %p7170_p13 = pneg %p7169_p12  ;;  %p7176_p0 = por %p7175_p5, %p7174_p6 }
 0x19d   : > { %p7177_p9 = pnand %p7176_p0, %p7170_p13 }
 0x19f   : > { %7180 = shalt.err (!%p7177_p9)
}
 0x1a0   : > { %6509 = dma.hbm_to_vmem [thread:$0]  (!%p7942_p8), %s7936_s9, 128, %s7931_s21, %s766_s22  }
 0x1a1   : > { %s8930_s12 = sld [smem:[#allocation42_spill]]  ;;  %p8931_p13 = scmp.ne.s32.totalorder %s8907_s20, 0 }
 0x1a3   : > { %p8932_p1 = pneg %p8931_p13 }
 0x1a7   : > { %s7980_s19 = scalar_lea.hbm %s8930_s12, %s6425_s13  ;;  %s7186_s21 = scalar_lea.hbm %s8930_s12, 768 }
 0x1a8   : > { %s7181_s23 = scalar_lea.hbm %s7980_s19, 384  ;;  %p7187_p8 = scmp.lt.u32.totalorder %s7980_s19, %s8930_s12 }
 0x1a9   : > { %p7182_p6 = scmp.ne.s32.totalorder %s7980_s19, %s7181_s23  ;;  %p7188_p11 = scmp.lt.u32.totalorder %s7186_s21, %s7181_s23 }
 0x1aa   : > { %p7190_p4 = scmp.lt.u32.totalorder %s7181_s23, %s7980_s19 }
 0x1ab   : > { %p7184_p2 = pnand %p7182_p6, %p8932_p1  ;;  %p7189_p7 = por %p7188_p11, %p7187_p8 }
 0x1ad   : > { %p7185_p3 = pneg %p7184_p2  ;;  %p7191_p12 = por %p7190_p4, %p7189_p7 }
 0x1af   : > { %p7192_p5 = pnand %p7191_p12, %p7185_p3 }
 0x1b1   : > { %7195 = shalt.err (!%p7192_p5)
}
 0x1b2   : > { %s7196_s13 = scalar_lea.vmem %s7948_s11, 384  ;;  %p8933_p9 = pmov %p8932_p1 }
 0x1b3   : > { %p7197_p0 = scmp.ne.s32.totalorder %s7948_s11, %s7196_s13  ;;  %s7377_s4 = smov [#allocation7]  }
 0x1b4   : > { %s7201_s17 = sshll.u32 %s7377_s4, 4  ;;  %s7202_s17 = int_to_ptr.vmem [resolvable:$false] %s7201_s17 }
 0x1b5   : > { %p7199_p6 = pnand %p7197_p0, %p8933_p9  ;;  %s7203_s14 = scalar_lea.vmem %s7202_s17, 768 }
 0x1b6   : > { %p7204_p2 = scmp.lt.s32.totalorder %s7948_s11, %s7202_s17  ;;  %p7205_p8 = scmp.lt.s32.totalorder %s7203_s14, %s7196_s13 }
 0x1b7   : > { %p7200_p1 = pneg %p7199_p6 }
 0x1b8   : > { %p7206_p11 = por %p7205_p8, %p7204_p2 }
 0x1ba   : > { %p7207_p7 = pnand %p7206_p11, %p7200_p1 }
 0x1bc   : > { %7210 = shalt.err (!%p7207_p7)
}
 0x1bd   : > { %s8934_s15 = smov 8   ;;  %s8935_s1 = smov 128  }
 0x1be   : > { %6515 = dma.hbm_to_vmem [thread:$0]  (!%p8931_p13), %s7980_s19, 384, %s7948_s11, %s7737_s25, %s8935_s1, %s8935_s1, %s8934_s15  }
 0x1bf   : > { %s8936_s2 = sld [smem:[#allocation38_spill]] }
 0x1c5   : > { %p8937_p3 = scmp.ne.s32.totalorder %s8936_s2, 0 }
 0x1c6   : > { %s8938_s23 = sld [smem:[#allocation33_spill]] (!%p8937_p3) }
 0x1c7   : > { %829 = sbr.rel (%p8937_p3) target bundleno = 4927 (0x133f), region = 112 }
 0x1cc   : > { %s8012_s0 = sand.u32 (!%p8937_p3), 1, %s8938_s23  }
 0x1cd   : > { %s5794_s26 = sshll.u32 (!%p8937_p3), %s8012_s0, 3  ;;  %s832_s21 = scalar_lea.sflag (!%p8937_p3), [#allocation3], %s8012_s0 }
 0x1ce   : > { %s8018_s20 = scalar_lea.vmem [#allocation2], %s5794_s26 }
 0x1cf   : > { %7284 = dma.done.wait (%p7901_p10), %s832_s21, 128  }
 0x1d0   : > { %7286 = vsyncadd (%p7901_p10), %s832_s21, 4294967168  ;;  %s840_s25 = sand.u32 1, %s7563_s28   ;;  %s842_s11 = sand.u32 1, %s7321_s30  }
 0x1d1   : > { %s5795_s19 = sshll.u32 %s842_s11, 4  ;;  %s841_s9 = scalar_lea.sflag [#allocation6], %s840_s25 }
 0x1d2   : > { %s844_s22 = scalar_lea.vmem [#allocation5], %s5795_s19  ;;  %p8939_p13 = scmp.ne.s32.totalorder %s8904_s6, 0 }
 0x1d4   : > { %7288 = dma.done.wait (%p8939_p13), %s841_s9, 640  }
 0x1d5   : > { %7290 = vsyncadd (%p8939_p13), %s841_s9, 4294966656  ;;  %s6426_s13 = smul.u32 24, %s842_s11  ;;  %p8940_p4 = scmp.eq.s32.totalorder %s7563_s28, 0 }
 0x1d7   : > { %s8030_s4 = scalar_lea.vmem [#allocation7], %s6426_s13 }
 0x1d8   : > { %7292 = dma.done.wait (%p8940_p4), [#allocation9], 2048   ;;  %p8941_p10 = pmov %p8940_p4 }
 0x1d9   : > { %p8942_p12 = pmov %p8940_p4 }
 0x1da   : > { %7294 = vsyncadd (%p8941_p10), [#allocation9], 4294965248 }
 0x1db   : > { %7296 = dma.done.wait (%p8942_p12), [#allocation12], 2048   ;;  %p8943_p5 = pmov %p8940_p4 }
 0x1dc   : > { %p8944_p0 = pmov %p8940_p4 }
 0x1dd   : > { %7298 = vsyncadd (%p8943_p5), [#allocation12], 4294965248 }
 0x1de   : > { %7300 = dma.done.wait (%p8944_p0), [#allocation15], 2048   ;;  %p8945_p9 = pmov %p8944_p0 }
 0x1df   : > { %p8946_p6 = pmov %p8944_p0 }
 0x1e0   : > { %7302 = vsyncadd (%p8945_p9), [#allocation15], 4294965248 }
 0x1e1   : > { %7304 = dma.done.wait (%p8946_p6), [#allocation18], 2048   ;;  %p8947_p1 = pmov %p8944_p0 }
 0x1e2   : > { %p8948_p2 = pmov %p8944_p0 }
 0x1e3   : > { %7306 = vsyncadd (%p8947_p1), [#allocation18], 4294965248 }
 0x1e4   : > { %7308 = dma.done.wait (%p8948_p2), [#allocation21], 8192   ;;  %p8949_p8 = pmov %p8944_p0 }
 0x1e5   : > { %v968_v0 = vld [vmem:[%s844_s22] sm:$0xff]  ;;  %v969_v1 = vld [vmem:[%s844_s22 + $0x8] sm:$0xff]  ;;  %v7378_v5 = vmov 0.0   ;;  %vm7379_vm0 = vmmov 0   ;;  %s8950_s3 = sld [smem:[#allocation43_spill]]  ;;  %s8951_s15 = sld [smem:[#allocation44_spill]] }
 0x1e6   : > { %7310 = vsyncadd (%p8949_p8), [#allocation21], 4294959104  ;;  %v967_v2 = vld [vmem:[%s8018_s20] sm:$0xff]  ;;  %1001 = vadd.xlane.f32.xlu0 %v968_v0  ;;  %6172 = vmatprep.subr.bf16.mxu1 %v7378_v5  ;;  %v6658_v20 = vld [vmem:[#allocation10 + $0x10] sm:$0xff]   ;;  %s7380_s1 = smov 64   ;;  %s7381_s2 = smov 96  }
 0x1e7   : > { %975 = vadd.xlane.f32.xlu1 %v967_v2  ;;  %v6654_v3 = vld [vmem:[#allocation10] sm:$0xff]   ;;  %6152 = vmatprep.subr.bf16.mxu0 %v7378_v5  ;;  %v6656_v18 = vld [vmem:[#allocation10 + $0x8] sm:$0xff]   ;;  %v6659_v21 = vld [vmem:[#allocation8 + $0x10] sm:$0xff]   ;;  %s7382_s23 = smov 32   ;;  %vm2103_vm1 = vcmask 261120   ;;  %vm2288_vm2 = vcmask 130048  }
 0x1e8   : > { %v6655_v4 = vld [vmem:[#allocation8] sm:$0xff]   ;;  %6173 = vmatpush3.bf16.msra.mxu1 %v6654_v3  ;;  %v6657_v19 = vld [vmem:[#allocation8 + $0x8] sm:$0xff]   ;;  %v6660_v22 = vld [vmem:[#allocation10 + $0x18] sm:$0xff]   ;;  %6188 = vmatprep.mubr.msk.bf16.mxu1 %vm7379_vm0, %v7378_v5  ;;  %vm2658_vm3 = vcmask 523264   ;;  %vm2660_vm4 = vcmask 785408   ;;  %s8952_s11 = sld [smem:[#allocation49_spill]] }
 0x1e9   : > { %6153 = vmatpush3.bf16.msra.mxu0 %v6655_v4  ;;  %6174 = vmatprep.subr.bf16.mxu1 %v7378_v5  ;;  %v6661_v23 = vld [vmem:[#allocation8 + $0x18] sm:$0xff]   ;;  %v6662_v24 = vld [vmem:[#allocation10 + $0x20] sm:$0xff]   ;;  %v6664_v26 = vld [vmem:[#allocation10 + $0x28] sm:$0xff]   ;;  %s8953_s9 = sld [smem:[#allocation50_spill]]  ;;  %vm4372_vm5 = vcmask 195584   ;;  %vm4424_vm6 = vcmask 1043456  }
 0x1ea   : > { %1003 = vadd.xlane.f32.xlu0 %v969_v1  ;;  %6154 = vmatprep.subr.bf16.mxu0 %v7378_v5  ;;  %v6663_v25 = vld [vmem:[#allocation8 + $0x20] sm:$0xff]   ;;  %v6665_v27 = vld [vmem:[#allocation8 + $0x28] sm:$0xff]   ;;  %v6666_v28 = vld [vmem:[#allocation10 + $0x30] sm:$0xff]   ;;  %s8960_s22 = sld [smem:[#allocation35_spill]]  ;;  %s965_s14 = scalar_lea.vmem [#allocation23], %s5794_s26 }
 0x1eb   : > { %6168 = vmatprep.mubr.msk.bf16.mxu0 %vm7379_vm0, %v7378_v5  ;;  %v6667_v29 = vld [vmem:[#allocation8 + $0x30] sm:$0xff]   ;;  %v6668_v30 = vld [vmem:[#allocation10 + $0x38] sm:$0xff]   ;;  %v5807_v43 = vld [vmem:[%s8950_s3] ss:$0 sm:$0xff]  ;;  %s8955_s3 = sld [smem:[#allocation56_spill]]  ;;  %s5534_s25 = scalar_lea.sflag [#allocation4], %s8012_s0 }
 0x1ec   : > { %6175 = vmatpush3.bf16.msra.mxu1 %v6656_v18  ;;  %v6669_v31 = vld [vmem:[#allocation8 + $0x38] sm:$0xff]   ;;  %v5808_v48 = vld [vmem:[%s8951_s15] ss:$0 sm:$0xff]  ;;  %v6671_v59 = vld [vmem:[#allocation11 + $0x8] sm:$0xff]   ;;  %v7384_v18 = vmov 1934713408  }
 0x1ed   : > { %6155 = vmatpush3.bf16.msra.mxu0 %v6657_v19  ;;  %6176 = vmatprep.subr.bf16.mxu1 %v7378_v5  ;;  %v6670_v57 = vld [vmem:[#allocation11] sm:$0xff]   ;;  %v6672_v60 = vld [vmem:[#allocation11 + $0x10] sm:$0xff]   ;;  %v6673_v61 = vld [vmem:[#allocation11 + $0x18] sm:$0xff]   ;;  %v1406_v19 = vunpack.c.l.s4 %v7384_v18  ;;  %s8956_s15 = sld [smem:[#allocation57_spill]]  ;;  %p8963_p7 = scmp.ne.s32.totalorder %s8925_s18, 0 }
 0x1ee   : > { %6156 = vmatprep.subr.bf16.mxu0 %v7378_v5  ;;  %v6674_v62 = vld [vmem:[#allocation11 + $0x20] sm:$0xff]   ;;  %v6675_v63 = vld [vmem:[#allocation11 + $0x28] sm:$0xff]   ;;  %s7386_s26 = smov [#allocation23]  }
 0x1ef   : > { %s7215_s19 = sshll.u32 %s7386_s26, 4  ;;  %s7216_s19 = int_to_ptr.vmem [resolvable:$false] %s7215_s19 }
 0x1f0   : > { %6177 = vmatpush3.bf16.msra.mxu1 %v6658_v20 }
 0x1f1   : > { %6157 = vmatpush3.bf16.msra.mxu0 %v6659_v21  ;;  %6178 = vmatprep.subr.bf16.mxu1 %v7378_v5 }
 0x1f2   : > { %6158 = vmatprep.subr.bf16.mxu0 %v7378_v5 }
 0x1f4   : > { %6179 = vmatpush3.bf16.msra.mxu1 %v6660_v22 }
 0x1f5   : > { %6159 = vmatpush3.bf16.msra.mxu0 %v6661_v23  ;;  %6180 = vmatprep.subr.bf16.mxu1 %v7378_v5 }
 0x1f6   : > { %6160 = vmatprep.subr.bf16.mxu0 %v7378_v5 }
 0x1f8   : > { %6181 = vmatpush3.bf16.msra.mxu1 %v6662_v24  ;;  %v1407_v24 = vunpack.c.0.s8 %v1406_v19 }
 0x1f9   : > { %6161 = vmatpush3.bf16.msra.mxu0 %v6663_v25  ;;  %6182 = vmatprep.subr.bf16.mxu1 %v7378_v5 }
 0x1fa   : > { %6162 = vmatprep.subr.bf16.mxu0 %v7378_v5 }
 0x1fc   : > { %6183 = vmatpush3.bf16.msra.mxu1 %v6664_v26 }
 0x1fd   : > { %6163 = vmatpush3.bf16.msra.mxu0 %v6665_v27  ;;  %6184 = vmatprep.subr.bf16.mxu1 %v7378_v5 }
 0x1fe   : > { %6164 = vmatprep.subr.bf16.mxu0 %v7378_v5 }
 0x200   : > { %6185 = vmatpush3.bf16.msra.mxu1 %v6666_v28 }
 0x201   : > { %6165 = vmatpush3.bf16.msra.mxu0 %v6667_v29  ;;  %6186 = vmatprep.subr.bf16.mxu1 %v7378_v5 }
 0x202   : > { %6166 = vmatprep.subr.bf16.mxu0 %v7378_v5 }
 0x204   : > { %6187 = vmatpush3.bf16.msra.mxu1 %v6668_v30 }
 0x205   : > { %6167 = vmatpush3.bf16.msra.mxu0 %v6669_v31  ;;  %6212 = vmatprep.subr.bf16.mxu1 %v7378_v5 }
 0x206   : > { %6192 = vmatprep.subr.bf16.mxu0 %v7378_v5 }
 0x273   : > { %v1002_v6 = vpop.xlane.xlu0 %1001 }
 0x274   : > { %v976_v7 = vpop.xlane.xlu1 %975  ;;  %v1005_v8 = vmul.f32 0.0078125, %v1002_v6 }
 0x275   : > { %v978_v9 = vmul.f32 0.0078125, %v976_v7 }
 0x276   : > { %v8057_v10 = vsub.f32 %v968_v0, %v1005_v8  ;;  %v6676_v0 = vld [vmem:[#allocation11 + $0x30] sm:$0xff]  }
 0x277   : > { %v8059_v11 = vsub.f32 %v967_v2, %v978_v9  ;;  %v1004_v12 = vpop.xlane.xlu0 %1003 }
 0x278   : > { %v1006_v13 = vmul.f32 0.0078125, %v1004_v12  ;;  %v1009_v14 = vmul.f32 %v8057_v10, %v8057_v10 }
 0x279   : > { %v980_v16 = vmul.f32 %v8059_v11, %v8059_v11 }
 0x27a   : > { %v8063_v15 = vsub.f32 %v969_v1, %v1006_v13  ;;  %1011 = vadd.xlane.f32.xlu1 %v1009_v14  ;;  %v6677_v1 = vld [vmem:[#allocation11 + $0x38] sm:$0xff]  }
 0x27c   : > { %v1010_v17 = vmul.f32 %v8063_v15, %v8063_v15 }
 0x27e   : > { %1013 = vadd.xlane.f32.xlu0 %v1010_v17  ;;  %981 = vadd.xlane.f32.xlu1 %v980_v16  ;;  %v1376_v17 = vlaneseq }
 0x280   : > { %v8135_v21 = vshrl.u32 %v1376_v17, 7 }
 0x307   : > { %v1012_v32 = vpop.xlane.xlu1 %1011 }
 0x308   : > { %v1015_v33 = vmul.f32 0.0078125, %v1012_v32  ;;  %v8141_v32 = vsub.s32 %v1407_v24, %v8135_v21 }
 0x30a   : > { %v1017_v34 = vadd.f32 1e-05, %v1015_v33 }
 0x30b   : > { %v1014_v35 = vpop.xlane.xlu0 %1013  ;;  %v982_v36 = vpop.xlane.xlu1 %981 }
 0x30c   : > { %6798 = vrsqrt.f32 %v1017_v34  ;;  %v1016_v37 = vmul.f32 0.0078125, %v1014_v35  ;;  %v983_v38 = vmul.f32 0.0078125, %v982_v36 }
 0x30e   : > { %v1018_v39 = vadd.f32 1e-05, %v1016_v37  ;;  %v984_v40 = vadd.f32 1e-05, %v983_v38 }
 0x310   : > { %6800 = vrsqrt.f32 %v1018_v39 }
 0x311   : > { %6802 = vrsqrt.f32 %v984_v40 }
 0x316   : > { %v6799_v41 = vpop.eup %6798 }
 0x317   : > { %v1021_v42 = vmul.f32 %v6799_v41, %v8057_v10 }
 0x319   : > { %v1023_v47 = vmul.f32 %v5807_v43, %v1021_v42 }
 0x31a   : > { %v6801_v44 = vpop.eup %6800 }
 0x31b   : > { %v6803_v45 = vpop.eup %6802  ;;  %v1022_v46 = vmul.f32 %v6801_v44, %v8063_v15  ;;  %v1025_v52 = vadd.f32 %v5808_v48, %v1023_v47  ;;  %v7383_v15 = vmov 1983009808  }
 0x31c   : > { %v986_v49 = vmul.f32 %v6803_v45, %v8059_v11  ;;  %v1374_v16 = vunpack.c.l.s4 %v7383_v15 }
 0x31d   : > { %v1024_v50 = vmul.f32 %v5807_v43, %v1022_v46 }
 0x31e   : > { %v993_v51 = vmul.f32 %v5807_v43, %v986_v49  ;;  %v1375_v20 = vunpack.c.0.s8 %v1374_v16 }
 0x31f   : > { %v1026_v53 = vadd.f32 %v5808_v48, %v1024_v50 }
 0x320   : > { %v1000_v54 = vadd.f32 %v5808_v48, %v993_v51  ;;  %v8138_v25 = vsub.s32 %v1375_v20, %v8135_v21 }
 0x321   : > { %v1094_v55 = vpack.c.bf16 %v1026_v53, %v1025_v52 }
 0x322   : > { %v1092_v56 = vmul.f32 0.17677669, %v1000_v54 }
 0x323   : > { %6189 = vmatmul.mubr.bf16.vlgmr.msra.gmra.mrb[0].mxu1 %v1094_v55 }
 0x324   : > { %v1093_v58 = vpack.c.bf16 %v1092_v56, %v1092_v56  ;;  %6214 = vmatprep.mubr.msk.bf16.mxu1 %vm7379_vm0, %v7378_v5 }
 0x326   : > { %6169 = vmatmul.mubr.bf16.vlgmr.msra.gmra.mrb[0].mxu0 %v1093_v58 }
 0x327   : > { %6193 = vmatpush3.bf16.msra.mxu0 %v6670_v57  ;;  %6208 = vmatprep.mubr.msk.bf16.mxu0 %vm7379_vm0, %v7378_v5 }
 0x328   : > { %6194 = vmatprep.subr.bf16.mxu0 %v7378_v5 }
 0x32b   : > { %6195 = vmatpush3.bf16.msra.mxu0 %v6671_v59 }
 0x32c   : > { %6196 = vmatprep.subr.bf16.mxu0 %v7378_v5 }
 0x32f   : > { %6197 = vmatpush3.bf16.msra.mxu0 %v6672_v60 }
 0x330   : > { %6198 = vmatprep.subr.bf16.mxu0 %v7378_v5 }
 0x333   : > { %6199 = vmatpush3.bf16.msra.mxu0 %v6673_v61 }
 0x334   : > { %6200 = vmatprep.subr.bf16.mxu0 %v7378_v5 }
 0x337   : > { %6201 = vmatpush3.bf16.msra.mxu0 %v6674_v62 }
 0x338   : > { %6202 = vmatprep.subr.bf16.mxu0 %v7378_v5 }
 0x33b   : > { %6203 = vmatpush3.bf16.msra.mxu0 %v6675_v63 }
 0x33c   : > { %6204 = vmatprep.subr.bf16.mxu0 %v7378_v5 }
 0x33f   : > { %6205 = vmatpush3.bf16.msra.mxu0 %v6676_v0 }
 0x340   : > { %6206 = vmatprep.subr.bf16.mxu0 %v7378_v5 }
 0x343   : > { %6207 = vmatpush3.bf16.msra.mxu0 %v6677_v1 }
 0x344   : > { %6236 = vmatprep.subr.bf16.mxu0 %v7378_v5 }
 0x346   : > { %6209 = vmatmul.mubr.bf16.vlgmr.msra.gmra.mrb[4].mxu0 %v1094_v55 }
 0x347   : > { %6238 = vmatprep.mubr.msk.bf16.mxu0 %vm7379_vm0, %v7378_v5 }
 0x3f6   : > { %v1265_v2 = vpop.f32.mrb[0].mxu1 }
 0x3f7   : > { %1519 = vrot.lane.b32.xlu1 %v1265_v2, %s7380_s1  ;;  %1513 = vrot.lane.b32.xlu0 %v1265_v2, %s7381_s2  ;;  %v6190_v3 = vpop.f32.mrb[1].mxu1 }
 0x3f8   : > { %v8112_v4 = vpop.f32.mrb[2].mxu1 }
 0x3f9   : > { %v8114_v6 = vpop.f32.mrb[0].mxu0  ;;  %v6191_v7 = vpop.f32.mrb[3].mxu1 }
 0x3fa   : > { %v6170_v8 = vpop.f32.mrb[1].mxu0 }
 0x3fb   : > { %v1180_v9 = vpop.f32.mrb[2].mxu0  ;;  %1525 = vrot.lane.b32.xlu0 %v1265_v2, %s7382_s23  ;;  %1515 = vrot.lane.b32.xlu1 %v8112_v4, %s7381_s2 }
 0x3fc   : > { %v6171_v10 = vpop.f32.mrb[3].mxu0 }
 0x3ff   : > { %1521 = vrot.lane.b32.xlu1 %v8112_v4, %s7380_s1  ;;  %1362 = vrot.lane.b32.xlu0 %v8114_v6, %s7381_s2 }
 0x403   : > { %1527 = vrot.lane.b32.xlu1 %v8112_v4, %s7382_s23  ;;  %1368 = vrot.lane.b32.xlu0 %v8114_v6, %s7382_s23 }
 0x407   : > { %1365 = vrot.lane.b32.xlu1 %v8114_v6, %s7380_s1 }
 0x419   : > { %v8129_v11 = vpop.f32.mrb[4].mxu0 }
 0x41a   : > { %1809 = vrot.lane.b32.xlu1 %v8129_v11, %s7381_s2  ;;  %v6210_v12 = vpop.f32.mrb[5].mxu0 }
 0x41b   : > { %v8133_v13 = vpop.f32.mrb[6].mxu0 }
 0x41c   : > { %v6211_v14 = vpop.f32.mrb[7].mxu0 }
 0x469   : > { %v1514_v22 = vpop.permute.xlu0 %1513  ;;  %v1520_v23 = vpop.permute.xlu1 %1519 }
 0x46a   : > { %v1531_v26 = vcombine.low %v1265_v2, %v1520_v23  ;;  %v1532_v27 = vcombine.high %v1265_v2, %v1520_v23 }
 0x46c   : > { %v1539_v33 = vrot.slane %v1531_v26, %v8138_v25  ;;  %v1546_v34 = vrot.slane %v1532_v27, %v8138_v25 }
 0x46d   : > { %v1526_v28 = vpop.permute.xlu0 %1525  ;;  %v1516_v29 = vpop.permute.xlu1 %1515 }
 0x46e   : > { %v1547_v30 = vcombine.low %v1514_v22, %v1526_v28  ;;  %v1548_v31 = vcombine.high %v1514_v22, %v1526_v28 }
 0x470   : > { %v1555_v35 = vrot.slane %v1547_v30, %v8138_v25  ;;  %v1562_v36 = vrot.slane %v1548_v31, %v8138_v25 }
 0x471   : > { %v1363_v37 = vpop.permute.xlu0 %1362  ;;  %v1522_v38 = vpop.permute.xlu1 %1521 }
 0x472   : > { %v1563_v39 = vcombine.low %v1539_v33, %v1555_v35  ;;  %v1564_v40 = vcombine.high %v1539_v33, %v1555_v35  ;;  %v1579_v41 = vcombine.low %v1546_v34, %v1562_v36  ;;  %v1580_v42 = vcombine.high %v1546_v34, %v1562_v36 }
 0x473   : > { %v1599_v47 = vcombine.low %v8112_v4, %v1522_v38  ;;  %v1600_v48 = vcombine.high %v8112_v4, %v1522_v38 }
 0x474   : > { %v1571_v43 = vrot.slane %v1563_v39, %v8141_v32  ;;  %v1578_v44 = vrot.slane %v1564_v40, %v8141_v32  ;;  %v1587_v45 = vrot.slane %v1579_v41, %v8141_v32  ;;  %v1594_v46 = vrot.slane %v1580_v42, %v8141_v32 }
 0x475   : > { %v1369_v49 = vpop.permute.xlu0 %1368  ;;  %v1528_v50 = vpop.permute.xlu1 %1527  ;;  %v1607_v63 = vrot.slane %v1599_v47, %v8138_v25  ;;  %v1614_v0 = vrot.slane %v1600_v48, %v8138_v25 }
 0x476   : > { %v1667_v51 = vcombine.low %v1571_v43, %v1578_v44  ;;  %v5835_v52 = vcombine.high %v1571_v43, %v1578_v44  ;;  %v1683_v53 = vcombine.low %v1587_v45, %v1594_v46  ;;  %v5836_v54 = vcombine.high %v1587_v45, %v1594_v46 }
 0x477   : > { %v1387_v55 = vcombine.low %v1363_v37, %v1369_v49  ;;  %v1388_v56 = vcombine.high %v1363_v37, %v1369_v49  ;;  %v1615_v57 = vcombine.low %v1516_v29, %v1528_v50  ;;  %v1616_v58 = vcombine.high %v1516_v29, %v1528_v50 }
 0x478   : > { %v8154_v59 = vrot.slane %v1667_v51, %v8138_v25  ;;  %v8157_v60 = vrot.slane %v5835_v52, %v8138_v25  ;;  %v8160_v61 = vrot.slane %v1683_v53, %v8138_v25  ;;  %v8163_v62 = vrot.slane %v5836_v54, %v8138_v25 }
 0x479   : > { %v1623_v1 = vrot.slane %v1615_v57, %v8138_v25  ;;  %v1630_v2 = vrot.slane %v1616_v58, %v8138_v25  ;;  %v1366_v3 = vpop.permute.xlu1 %1365  ;;  %v1395_v4 = vrot.slane %v1387_v55, %v8138_v25  ;;  %v1402_v7 = vrot.slane %v1388_v56, %v8138_v25 }
 0x47a   : > { %v1371_v8 = vcombine.low %v8114_v6, %v1366_v3  ;;  %v1372_v9 = vcombine.high %v8114_v6, %v1366_v3  ;;  %v1699_v18 = vcombine.low %v8154_v59, %v8157_v60  ;;  %v1715_v19 = vcombine.low %v8160_v61, %v8163_v62 }
 0x47b   : > { %v1631_v10 = vcombine.low %v1607_v63, %v1623_v1  ;;  %v1632_v12 = vcombine.high %v1607_v63, %v1623_v1  ;;  %v1647_v14 = vcombine.low %v1614_v0, %v1630_v2  ;;  %v1648_v15 = vcombine.high %v1614_v0, %v1630_v2 }
 0x47c   : > { %v1379_v16 = vrot.slane %v1371_v8, %v8138_v25  ;;  %v1386_v17 = vrot.slane %v1372_v9, %v8138_v25  ;;  %v1707_v46 = vrot.slane %v1699_v18, %v8141_v32  ;;  %v1723_v47 = vrot.slane %v1715_v19, %v8141_v32 }
 0x47d   : > { %v1639_v20 = vrot.slane %v1631_v10, %v8141_v32  ;;  %v1646_v22 = vrot.slane %v1632_v12, %v8141_v32  ;;  %v1655_v6 = vrot.slane %v1647_v14, %v8141_v32  ;;  %v1662_v23 = vrot.slane %v1648_v15, %v8141_v32 }
 0x47e   : > { %v1403_v24 = vcombine.low %v1379_v16, %v1395_v4  ;;  %v1404_v26 = vcombine.high %v1379_v16, %v1395_v4  ;;  %v1419_v27 = vcombine.low %v1386_v17, %v1402_v7  ;;  %v1420_v28 = vcombine.high %v1386_v17, %v1402_v7 }
 0x47f   : > { %v1735_v29 = vcombine.low %v1639_v20, %v1646_v22  ;;  %v5837_v30 = vcombine.high %v1639_v20, %v1646_v22  ;;  %v1751_v31 = vcombine.low %v1655_v6, %v1662_v23  ;;  %v5838_v33 = vcombine.high %v1655_v6, %v1662_v23 }
 0x480   : > { %v1411_v34 = vrot.slane %v1403_v24, %v8141_v32  ;;  %v1418_v35 = vrot.slane %v1404_v26, %v8141_v32  ;;  %v1427_v36 = vrot.slane %v1419_v27, %v8141_v32  ;;  %v1434_v37 = vrot.slane %v1420_v28, %v8141_v32 }
 0x481   : > { %v1742_v38 = vrot.slane %v1735_v29, %v8138_v25  ;;  %v1750_v39 = vrot.slane %v5837_v30, %v8138_v25  ;;  %v1758_v40 = vrot.slane %v1751_v31, %v8138_v25  ;;  %v1766_v41 = vrot.slane %v5838_v33, %v8138_v25 }
 0x482   : > { %v1439_v42 = vcombine.low %v1411_v34, %v1418_v35  ;;  %v5833_v43 = vcombine.high %v1411_v34, %v1418_v35  ;;  %v1455_v44 = vcombine.low %v1427_v36, %v1434_v37  ;;  %v5834_v45 = vcombine.high %v1427_v36, %v1434_v37 }
 0x483   : > { %v1767_v48 = vcombine.low %v1742_v38, %v1750_v39  ;;  %v1783_v49 = vcombine.low %v1758_v40, %v1766_v41  ;;  %v1700_v56 = vcombine.high %v8154_v59, %v8157_v60  ;;  %v1716_v57 = vcombine.high %v8160_v61, %v8163_v62 }
 0x484   : > { %v1446_v50 = vrot.slane %v1439_v42, %v8138_v25  ;;  %v1454_v51 = vrot.slane %v5833_v43, %v8138_v25  ;;  %v1462_v52 = vrot.slane %v1455_v44, %v8138_v25  ;;  %v1470_v53 = vrot.slane %v5834_v45, %v8138_v25 }
 0x485   : > { %v1775_v54 = vrot.slane %v1767_v48, %v8141_v32  ;;  %v1791_v55 = vrot.slane %v1783_v49, %v8141_v32  ;;  %v1731_v0 = vcombine.low %v1707_v46, %v1723_v47  ;;  %v1732_v2 = vcombine.high %v1707_v46, %v1723_v47 }
 0x486   : > { %v1471_v58 = vcombine.low %v1446_v50, %v1454_v51  ;;  %v1487_v63 = vcombine.low %v1462_v52, %v1470_v53  ;;  %v1714_v4 = vrot.slane %v1700_v56, %v8141_v32  ;;  %v1730_v7 = vrot.slane %v1716_v57, %v8141_v32 }
 0x487   : > { %v1799_v1 = vcombine.low %v1775_v54, %v1791_v55  ;;  %v1800_v3 = vcombine.high %v1775_v54, %v1791_v55  ;;  %v1768_v8 = vcombine.high %v1742_v38, %v1750_v39  ;;  %v1784_v9 = vcombine.high %v1758_v40, %v1766_v41 }
 0x488   : > { %v1479_v12 = vrot.slane %v1471_v58, %v8141_v32  ;;  %v1495_v59 = vrot.slane %v1487_v63, %v8141_v32  ;;  %v1733_v15 = vcombine.low %v1714_v4, %v1730_v7  ;;  %v1734_v17 = vcombine.high %v1714_v4, %v1730_v7 }
 0x489   : > { %v1803_v10 = vpack.c.bf16 %v1799_v1, %v1731_v0  ;;  %v1804_v60 = vpack.c.bf16 %v1800_v3, %v1732_v2  ;;  %v1782_v61 = vrot.slane %v1768_v8, %v8141_v32  ;;  %v1798_v62 = vrot.slane %v1784_v9, %v8141_v32 }
 0x48a   : > { %v1503_v19 = vcombine.low %v1479_v12, %v1495_v59  ;;  %v1472_v24 = vcombine.high %v1446_v50, %v1454_v51  ;;  %v1488_v26 = vcombine.high %v1462_v52, %v1470_v53  ;;  %v1504_v27 = vcombine.high %v1479_v12, %v1495_v59 }
 0x48b   : > { %v2108_v14 = vsel %vm2103_vm1, %v1803_v10, 0  ;;  %v1801_v16 = vcombine.low %v1782_v61, %v1798_v62  ;;  %v1802_v18 = vcombine.high %v1782_v61, %v1798_v62  ;;  %v2154_v23 = vsel %vm2103_vm1, %v1804_v60, 0 }
 0x48c   : > { %6213 = vmatpush3.bf16.xpose.msra.mxu1 %v2108_v14  ;;  %v1507_v6 = vpack.c.bf16 %v1503_v19, %v1503_v19  ;;  %v1508_v28 = vpack.c.bf16 %v1504_v27, %v1504_v27  ;;  %v1486_v29 = vrot.slane %v1472_v24, %v8141_v32  ;;  %v1502_v30 = vrot.slane %v1488_v26, %v8141_v32  ;;  %v1810_v58 = vpop.permute.xlu1 %1809 }
 0x48d   : > { %6218 = vmatprep.subr.bf16.mxu1 %v7378_v5  ;;  %v1805_v20 = vpack.c.bf16 %v1801_v16, %v1733_v15  ;;  %v1806_v22 = vpack.c.bf16 %v1802_v18, %v1734_v17 }
 0x48e   : > { %v1505_v33 = vcombine.low %v1486_v29, %v1502_v30  ;;  %v1506_v36 = vcombine.high %v1486_v29, %v1502_v30 }
 0x48f   : > { %v2200_v31 = vsel %vm2103_vm1, %v1805_v20, 0  ;;  %v2246_v35 = vsel %vm2103_vm1, %v1806_v22, 0 }
 0x490   : > { %v1509_v34 = vpack.c.bf16 %v1505_v33, %v1505_v33  ;;  %v1510_v37 = vpack.c.bf16 %v1506_v36, %v1506_v36 }
 0x493   : > { %6215 = vmatmul.mubr.msk.bf16.vlgmr.msra.gmra.mrb[4].mxu1 %vm2103_vm1, %v1507_v6 }
 0x494   : > { %6219 = vmatpush3.bf16.xpose.msra.mxu1 %v2154_v23  ;;  %6220 = vmatprep.mubr.msk.bf16.mxu1 %vm7379_vm0, %v7378_v5 }
 0x495   : > { %6224 = vmatprep.subr.bf16.mxu1 %v7378_v5 }
 0x49b   : > { %6221 = vmatmul.mubr.msk.bf16.vlgmr.msra.gmra.mrb[8].mxu1 %vm2103_vm1, %v1508_v28 }
 0x49c   : > { %6225 = vmatpush3.bf16.xpose.msra.mxu1 %v2200_v31  ;;  %6226 = vmatprep.mubr.msk.bf16.mxu1 %vm7379_vm0, %v7378_v5 }
 0x49d   : > { %6230 = vmatprep.subr.bf16.mxu1 %v7378_v5 }
 0x4a3   : > { %6227 = vmatmul.mubr.msk.bf16.vlgmr.msra.gmra.mrb[12].mxu1 %vm2103_vm1, %v1509_v34 }
 0x4a4   : > { %6231 = vmatpush3.bf16.xpose.msra.mxu1 %v2246_v35  ;;  %6232 = vmatprep.mubr.msk.bf16.mxu1 %vm7379_vm0, %v7378_v5 }
 0x4a5   : > { %6242 = vmatprep.subr.bf16.mxu1 %v7378_v5 }
 0x4ab   : > { %6233 = vmatmul.mubr.msk.bf16.vlgmr.msra.gmra.mrb[16].mxu1 %vm2103_vm1, %v1510_v37 }
 0x4ac   : > { %6244 = vmatprep.mubr.msk.bf16.mxu1 %vm7379_vm0, %v7378_v5 }
 0x566   : > { %v2144_v38 = vpop.f32.mrb[4].mxu1 }
 0x567   : > { %v6216_v39 = vpop.f32.mrb[5].mxu1  ;;  %v2289_v40 = vsel %vm2288_vm2, %v2144_v38, -inf }
 0x568   : > { %2290 = vmax.xlane.f32.xlu1 %v2289_v40  ;;  %v2147_v41 = vpop.f32.mrb[6].mxu1 }
 0x569   : > { %v6217_v42 = vpop.f32.mrb[7].mxu1 }
 0x56e   : > { %v2190_v43 = vpop.f32.mrb[8].mxu1 }
 0x56f   : > { %v6222_v44 = vpop.f32.mrb[9].mxu1  ;;  %v2292_v45 = vsel %vm2288_vm2, %v2190_v43, -inf }
 0x570   : > { %2293 = vmax.xlane.f32.xlu0 %v2292_v45  ;;  %v2193_v46 = vpop.f32.mrb[10].mxu1 }
 0x571   : > { %v6223_v47 = vpop.f32.mrb[11].mxu1 }
 0x576   : > { %v2236_v48 = vpop.f32.mrb[12].mxu1 }
 0x577   : > { %v6228_v49 = vpop.f32.mrb[13].mxu1  ;;  %v2295_v50 = vsel %vm2288_vm2, %v2236_v48, -inf }
 0x578   : > { %2296 = vmax.xlane.f32.xlu0 %v2295_v50  ;;  %v2239_v51 = vpop.f32.mrb[14].mxu1 }
 0x579   : > { %1815 = vrot.lane.b32.xlu1 %v8129_v11, %s7380_s1  ;;  %v6229_v52 = vpop.f32.mrb[15].mxu1 }
 0x57d   : > { %1817 = vrot.lane.b32.xlu1 %v8133_v13, %s7380_s1 }
 0x57e   : > { %v2282_v53 = vpop.f32.mrb[16].mxu1 }
 0x57f   : > { %v6234_v54 = vpop.f32.mrb[17].mxu1  ;;  %v2298_v55 = vsel %vm2288_vm2, %v2282_v53, -inf }
 0x580   : > { %2299 = vmax.xlane.f32.xlu0 %v2298_v55  ;;  %v2285_v56 = vpop.f32.mrb[18].mxu1 }
 0x581   : > { %v6235_v57 = vpop.f32.mrb[19].mxu1 }
 0x596   : > { %1811 = vrot.lane.b32.xlu0 %v8133_v13, %s7381_s2 }
 0x5f5   : > { %v2291_v63 = vpop.xlane.xlu1 %2290 }
 0x5f6   : > { %v2301_v0 = vsub.f32 %v2144_v38, %v2291_v63 }
 0x5f8   : > { %v2305_v1 = vmul.f32 1.442695, %v2301_v0 }
 0x5f9   : > { %v1816_v19 = vpop.permute.xlu1 %1815 }
 0x5fa   : > { %6804 = vpow2.f32 %v2305_v1  ;;  %v1827_v6 = vcombine.low %v8129_v11, %v1816_v19  ;;  %v1828_v23 = vcombine.high %v8129_v11, %v1816_v19 }
 0x5fc   : > { %v1835_v29 = vrot.slane %v1827_v6, %v8138_v25  ;;  %v1842_v30 = vrot.slane %v1828_v23, %v8138_v25 }
 0x5fd   : > { %v2294_v2 = vpop.xlane.xlu0 %2293  ;;  %v1818_v20 = vpop.permute.xlu1 %1817 }
 0x5fe   : > { %v2302_v3 = vsub.f32 %v2190_v43, %v2294_v2  ;;  %v1895_v39 = vcombine.low %v8133_v13, %v1818_v20  ;;  %v1896_v43 = vcombine.high %v8133_v13, %v1818_v20 }
 0x600   : > { %v2307_v4 = vmul.f32 1.442695, %v2302_v3  ;;  %v1903_v51 = vrot.slane %v1895_v39, %v8138_v25  ;;  %v1910_v52 = vrot.slane %v1896_v43, %v8138_v25 }
 0x602   : > { %6806 = vpow2.f32 %v2307_v4 }
 0x604   : > { %v8241_v7 = vpop.eup %6804 }
 0x605   : > { %v2313_v8 = vsel %vm2288_vm2, %v8241_v7, 0.0  ;;  %v2297_v12 = vpop.xlane.xlu0 %2296 }
 0x606   : > { %2314 = vadd.xlane.f32.xlu1 %v2313_v8  ;;  %v2303_v59 = vsub.f32 %v2236_v48, %v2297_v12 }
 0x608   : > { %v2309_v60 = vmul.f32 1.442695, %v2303_v59 }
 0x60a   : > { %6808 = vpow2.f32 %v2309_v60 }
 0x60c   : > { %v8245_v9 = vpop.eup %6806 }
 0x60d   : > { %v2316_v10 = vsel %vm2288_vm2, %v8245_v9, 0.0  ;;  %v2300_v61 = vpop.xlane.xlu0 %2299 }
 0x60e   : > { %2317 = vadd.xlane.f32.xlu0 %v2316_v10  ;;  %v2304_v62 = vsub.f32 %v2282_v53, %v2300_v61 }
 0x610   : > { %v2311_v14 = vmul.f32 1.442695, %v2304_v62 }
 0x611   : > { %v1812_v24 = vpop.permute.xlu0 %1811 }
 0x612   : > { %6810 = vpow2.f32 %v2311_v14 }
 0x614   : > { %v8253_v15 = vpop.eup %6808 }
 0x615   : > { %v2319_v16 = vsel %vm2288_vm2, %v8253_v15, 0.0 }
 0x617   : > { %1821 = vrot.lane.b32.xlu1 %v8129_v11, %s7382_s23 }
 0x61c   : > { %v8257_v17 = vpop.eup %6810 }
 0x61d   : > { %v2322_v18 = vsel %vm2288_vm2, %v8257_v17, 0.0 }
 0x624   : > { %1823 = vrot.lane.b32.xlu0 %v8133_v13, %s7382_s23 }
 0x63b   : > { %2320 = vadd.xlane.f32.xlu1 %v2319_v16 }
 0x643   : > { %2323 = vadd.xlane.f32.xlu0 %v2322_v18 }
 0x693   : > { %v2315_v22 = vpop.xlane.xlu1 %2314 }
 0x694   : > { %6812 = vrcp.f32 %v2315_v22 }
 0x697   : > { %v1822_v26 = vpop.permute.xlu1 %1821 }
 0x698   : > { %v1843_v27 = vcombine.low %v1810_v58, %v1822_v26  ;;  %v1844_v28 = vcombine.high %v1810_v58, %v1822_v26 }
 0x69a   : > { %v1851_v31 = vrot.slane %v1843_v27, %v8138_v25  ;;  %v1858_v33 = vrot.slane %v1844_v28, %v8138_v25 }
 0x69b   : > { %v2318_v34 = vpop.xlane.xlu0 %2317 }
 0x69c   : > { %v1859_v35 = vcombine.low %v1835_v29, %v1851_v31  ;;  %v1860_v36 = vcombine.high %v1835_v29, %v1851_v31  ;;  %v1875_v37 = vcombine.low %v1842_v30, %v1858_v33  ;;  %v1876_v38 = vcombine.high %v1842_v30, %v1858_v33 }
 0x69d   : > { %6814 = vrcp.f32 %v2318_v34 }
 0x69e   : > { %v1867_v11 = vrot.slane %v1859_v35, %v8141_v32  ;;  %v1874_v40 = vrot.slane %v1860_v36, %v8141_v32  ;;  %v1883_v41 = vrot.slane %v1875_v37, %v8141_v32  ;;  %v1890_v42 = vrot.slane %v1876_v38, %v8141_v32  ;;  %v6813_v6 = vpop.eup %6812 }
 0x69f   : > { %v1824_v44 = vpop.permute.xlu0 %1823 }
 0x6a0   : > { %v1963_v45 = vcombine.low %v1867_v11, %v1874_v40  ;;  %v5839_v46 = vcombine.high %v1867_v11, %v1874_v40  ;;  %v1979_v47 = vcombine.low %v1883_v41, %v1890_v42  ;;  %v5840_v48 = vcombine.high %v1883_v41, %v1890_v42 }
 0x6a1   : > { %v1911_v49 = vcombine.low %v1812_v24, %v1824_v44  ;;  %v1912_v50 = vcombine.high %v1812_v24, %v1824_v44 }
 0x6a2   : > { %v1970_v55 = vrot.slane %v1963_v45, %v8138_v25  ;;  %v1978_v13 = vrot.slane %v5839_v46, %v8138_v25  ;;  %v1986_v56 = vrot.slane %v1979_v47, %v8138_v25  ;;  %v1994_v57 = vrot.slane %v5840_v48, %v8138_v25 }
 0x6a3   : > { %v1919_v53 = vrot.slane %v1911_v49, %v8138_v25  ;;  %v1926_v54 = vrot.slane %v1912_v50, %v8138_v25  ;;  %v2329_v45 = vmul.f32 %v6813_v6, %v8241_v7 }
 0x6a4   : > { %v1995_v10 = vcombine.low %v1970_v55, %v1978_v13  ;;  %v2011_v12 = vcombine.low %v1986_v56, %v1994_v57  ;;  %v1996_v59 = vcombine.high %v1970_v55, %v1978_v13  ;;  %v2012_v60 = vcombine.high %v1986_v56, %v1994_v57 }
 0x6a5   : > { %v1927_v58 = vcombine.low %v1903_v51, %v1919_v53  ;;  %v1928_v63 = vcombine.high %v1903_v51, %v1919_v53  ;;  %v1943_v0 = vcombine.low %v1910_v52, %v1926_v54  ;;  %v1944_v1 = vcombine.high %v1910_v52, %v1926_v54 }
 0x6a6   : > { %v2003_v23 = vrot.slane %v1995_v10, %v8141_v32  ;;  %v2019_v24 = vrot.slane %v2011_v12, %v8141_v32  ;;  %v2010_v26 = vrot.slane %v1996_v59, %v8141_v32  ;;  %v2026_v27 = vrot.slane %v2012_v60, %v8141_v32 }
 0x6a7   : > { %v1935_v2 = vrot.slane %v1927_v58, %v8141_v32  ;;  %v1942_v3 = vrot.slane %v1928_v63, %v8141_v32  ;;  %v1951_v4 = vrot.slane %v1943_v0, %v8141_v32  ;;  %v1958_v8 = vrot.slane %v1944_v1, %v8141_v32  ;;  %v6815_v28 = vpop.eup %6814  ;;  %v6678_v58 = vld [vmem:[#allocation13] sm:$0xff]   ;;  %v6679_v63 = vld [vmem:[#allocation13 + $0x8] sm:$0xff]   ;;  %v6681_v0 = vld [vmem:[#allocation13 + $0x18] sm:$0xff]  }
 0x6a8   : > { %v2027_v38 = vcombine.low %v2003_v23, %v2019_v24  ;;  %v2028_v39 = vcombine.high %v2003_v23, %v2019_v24  ;;  %v2029_v11 = vcombine.low %v2010_v26, %v2026_v27  ;;  %v2030_v40 = vcombine.high %v2010_v26, %v2026_v27  ;;  %v6683_v1 = vld [vmem:[#allocation13 + $0x28] sm:$0xff]  }
 0x6a9   : > { %v2031_v61 = vcombine.low %v1935_v2, %v1942_v3  ;;  %v5841_v62 = vcombine.high %v1935_v2, %v1942_v3  ;;  %v2047_v14 = vcombine.low %v1951_v4, %v1958_v8  ;;  %v5842_v16 = vcombine.high %v1951_v4, %v1958_v8 }
 0x6aa   : > { %v2330_v46 = vmul.f32 %v6815_v28, %v8245_v9  ;;  %v2333_v51 = vpack.c.bf16 %v2329_v45, %v2329_v45 }
 0x6ab   : > { %v2038_v18 = vrot.slane %v2031_v61, %v8138_v25  ;;  %v2046_v19 = vrot.slane %v5841_v62, %v8138_v25  ;;  %v2054_v20 = vrot.slane %v2047_v14, %v8138_v25  ;;  %v2062_v22 = vrot.slane %v5842_v16, %v8138_v25 }
 0x6ac   : > { %v2334_v52 = vpack.c.bf16 %v2330_v46, %v2330_v46 }
 0x6ad   : > { %v2063_v29 = vcombine.low %v2038_v18, %v2046_v19  ;;  %v2079_v30 = vcombine.low %v2054_v20, %v2062_v22  ;;  %v2064_v31 = vcombine.high %v2038_v18, %v2046_v19  ;;  %v2080_v33 = vcombine.high %v2054_v20, %v2062_v22 }
 0x6af   : > { %v2071_v34 = vrot.slane %v2063_v29, %v8141_v32  ;;  %v2087_v35 = vrot.slane %v2079_v30, %v8141_v32  ;;  %v2078_v36 = vrot.slane %v2064_v31, %v8141_v32  ;;  %v2094_v37 = vrot.slane %v2080_v33, %v8141_v32 }
 0x6b1   : > { %v2095_v41 = vcombine.low %v2071_v34, %v2087_v35  ;;  %v2096_v42 = vcombine.high %v2071_v34, %v2087_v35  ;;  %v2097_v43 = vcombine.low %v2078_v36, %v2094_v37  ;;  %v2098_v44 = vcombine.high %v2078_v36, %v2094_v37  ;;  %v6684_v36 = vld [vmem:[#allocation13 + $0x30] sm:$0xff]  }
 0x6b3   : > { %v2099_v47 = vpack.c.bf16 %v2095_v41, %v2027_v38  ;;  %v2100_v48 = vpack.c.bf16 %v2096_v42, %v2028_v39  ;;  %v2101_v49 = vpack.c.bf16 %v2097_v43, %v2029_v11  ;;  %v2102_v50 = vpack.c.bf16 %v2098_v44, %v2030_v40 }
 0x6b5   : > { %6237 = vmatpush3.bf16.msra.mxu0 %v2099_v47  ;;  %6243 = vmatpush3.bf16.msra.mxu1 %v2100_v48  ;;  %v6685_v48 = vld [vmem:[#allocation13 + $0x38] sm:$0xff]  }
 0x6b6   : > { %6248 = vmatprep.subr.bf16.mxu0 %v7378_v5  ;;  %6254 = vmatprep.subr.bf16.mxu1 %v7378_v5 }
 0x6b8   : > { %6239 = vmatmul.mubr.msk.bf16.vlgmr.msra.gmra.mrb[8].mxu0 %vm2288_vm2, %v2333_v51  ;;  %6245 = vmatmul.mubr.msk.bf16.vlgmr.msra.gmra.mrb[20].mxu1 %vm2288_vm2, %v2334_v52 }
 0x6b9   : > { %6249 = vmatpush3.bf16.msra.mxu0 %v2101_v49  ;;  %6255 = vmatpush3.bf16.msra.mxu1 %v2102_v50 }
 0x6ba   : > { %6250 = vmatprep.mubr.msk.bf16.mxu0 %vm7379_vm0, %v7378_v5  ;;  %6256 = vmatprep.mubr.msk.bf16.mxu1 %vm7379_vm0, %v7378_v5 }
 0x6bb   : > { %6260 = vmatprep.subr.bf16.mxu0 %v7378_v5  ;;  %6280 = vmatprep.subr.bf16.mxu1 %v7378_v5 }
 0x6c8   : > { %v2321_v7 = vpop.xlane.xlu1 %2320 }
 0x6c9   : > { %6816 = vrcp.f32 %v2321_v7 }
 0x6d0   : > { %v2324_v9 = vpop.xlane.xlu0 %2323 }
 0x6d1   : > { %6818 = vrcp.f32 %v2324_v9 }
 0x6d3   : > { %v6817_v53 = vpop.eup %6816 }
 0x6d4   : > { %v2331_v54 = vmul.f32 %v6817_v53, %v8253_v15  ;;  %v6680_v15 = vld [vmem:[#allocation13 + $0x10] sm:$0xff]  }
 0x6d6   : > { %v2335_v55 = vpack.c.bf16 %v2331_v54, %v2331_v54 }
 0x6d8   : > { %6251 = vmatmul.mubr.msk.bf16.vlgmr.msra.gmra.mrb[12].mxu0 %vm2288_vm2, %v2335_v55 }
 0x6d9   : > { %6276 = vmatprep.mubr.msk.bf16.mxu0 %vm7379_vm0, %v7378_v5  ;;  %6261 = vmatpush3.bf16.msra.mxu0 %v6678_v58 }
 0x6da   : > { %6262 = vmatprep.subr.bf16.mxu0 %v7378_v5 }
 0x6db   : > { %v6819_v13 = vpop.eup %6818 }
 0x6dc   : > { %v2332_v56 = vmul.f32 %v6819_v13, %v8257_v17  ;;  %v6682_v17 = vld [vmem:[#allocation13 + $0x20] sm:$0xff]  }
 0x6dd   : > { %6263 = vmatpush3.bf16.msra.mxu0 %v6679_v63 }
 0x6de   : > { %v2336_v57 = vpack.c.bf16 %v2332_v56, %v2332_v56  ;;  %6264 = vmatprep.subr.bf16.mxu0 %v7378_v5 }
 0x6e0   : > { %6257 = vmatmul.mubr.msk.bf16.vlgmr.msra.gmra.mrb[24].mxu1 %vm2288_vm2, %v2336_v57 }
 0x6e1   : > { %6296 = vmatprep.mubr.msk.bf16.mxu1 %vm7379_vm0, %v7378_v5  ;;  %6265 = vmatpush3.bf16.msra.mxu0 %v6680_v15 }
 0x6e2   : > { %6266 = vmatprep.subr.bf16.mxu0 %v7378_v5 }
 0x6e5   : > { %6267 = vmatpush3.bf16.msra.mxu0 %v6681_v0 }
 0x6e6   : > { %6268 = vmatprep.subr.bf16.mxu0 %v7378_v5 }
 0x6e9   : > { %6269 = vmatpush3.bf16.msra.mxu0 %v6682_v17 }
 0x6ea   : > { %6270 = vmatprep.subr.bf16.mxu0 %v7378_v5 }
 0x6ed   : > { %6271 = vmatpush3.bf16.msra.mxu0 %v6683_v1 }
 0x6ee   : > { %6272 = vmatprep.subr.bf16.mxu0 %v7378_v5 }
 0x6f1   : > { %6273 = vmatpush3.bf16.msra.mxu0 %v6684_v36  ;;  %v6696_v36 = vld [vmem:[#allocation14 + $0x10] sm:$0xff]  }
 0x6f2   : > { %6274 = vmatprep.subr.bf16.mxu0 %v7378_v5 }
 0x6f5   : > { %6275 = vmatpush3.bf16.msra.mxu0 %v6685_v48 }
 0x78b   : > { %v2374_v2 = vpop.f32.mrb[8].mxu0  ;;  %v2417_v3 = vpop.f32.mrb[20].mxu1 }
 0x78c   : > { %v6240_v4 = vpop.f32.mrb[9].mxu0  ;;  %v6246_v8 = vpop.f32.mrb[21].mxu1 }
 0x78d   : > { %v2377_v10 = vpop.f32.mrb[10].mxu0  ;;  %v2420_v12 = vpop.f32.mrb[22].mxu1  ;;  %v6687_v4 = vld [vmem:[#allocation16 + $0x8] sm:$0xff]   ;;  %v6688_v8 = vld [vmem:[#allocation16 + $0x10] sm:$0xff]  }
 0x78e   : > { %v6241_v59 = vpop.f32.mrb[11].mxu0  ;;  %v6247_v60 = vpop.f32.mrb[23].mxu1  ;;  %v6689_v10 = vld [vmem:[#allocation16 + $0x18] sm:$0xff]   ;;  %v5853_v12 = vld [vmem:[%s8952_s11] ss:$0 sm:$0xff]  ;;  %s8958_s11 = sld [smem:[#allocation60_spill]] }
 0x7ab   : > { %v2460_v61 = vpop.f32.mrb[12].mxu0 }
 0x7ac   : > { %v2509_v62 = vcombine.low %v2374_v2, %v2460_v61  ;;  %v2510_v14 = vcombine.high %v2374_v2, %v2460_v61  ;;  %v6252_v16 = vpop.f32.mrb[13].mxu0 }
 0x7ad   : > { %v2463_v18 = vpop.f32.mrb[14].mxu0 }
 0x7ae   : > { %v6253_v19 = vpop.f32.mrb[15].mxu0  ;;  %v2517_v26 = vrot.slane %v2509_v62, %v8138_v25  ;;  %v2524_v27 = vrot.slane %v2510_v14, %v8138_v25  ;;  %v6840_v14 = vld [vmem:[%s8018_s20] sm:$0xff] }
 0x7af   : > { %v6690_v19 = vld [vmem:[#allocation16 + $0x20] sm:$0xff]  }
 0x7b3   : > { %v2503_v20 = vpop.f32.mrb[24].mxu1 }
 0x7b4   : > { %v2525_v22 = vcombine.low %v2417_v3, %v2503_v20  ;;  %v2526_v6 = vcombine.high %v2417_v3, %v2503_v20  ;;  %v6258_v23 = vpop.f32.mrb[25].mxu1  ;;  %v6686_v3 = vld [vmem:[#allocation16] sm:$0xff]   ;;  %v6691_v20 = vld [vmem:[#allocation16 + $0x28] sm:$0xff]  }
 0x7b5   : > { %v2506_v24 = vpop.f32.mrb[26].mxu1  ;;  %6300 = vmatprep.subr.bf16.mxu0 %v6686_v3  ;;  %v971_v23 = vld [vmem:[%s8030_s4 + $0x8] sm:$0xff] }
 0x7b6   : > { %v2533_v28 = vrot.slane %v2525_v22, %v8138_v25  ;;  %v2540_v29 = vrot.slane %v2526_v6, %v8138_v25  ;;  %v6259_v30 = vpop.f32.mrb[27].mxu1  ;;  %v6692_v22 = vld [vmem:[#allocation16 + $0x30] sm:$0xff]   ;;  %v6694_v24 = vld [vmem:[#allocation14] sm:$0xff]  }
 0x7b7   : > { %v970_v6 = vld [vmem:[%s8030_s4] sm:$0xff]  ;;  %6281 = vmatpush3.bf16.msra.mxu1 %v6694_v24 }
 0x7b8   : > { %v2541_v31 = vcombine.low %v2517_v26, %v2533_v28  ;;  %v2542_v33 = vcombine.high %v2517_v26, %v2533_v28  ;;  %v2557_v34 = vcombine.low %v2524_v27, %v2540_v29  ;;  %v2558_v35 = vcombine.high %v2524_v27, %v2540_v29  ;;  %v6695_v27 = vld [vmem:[#allocation14 + $0x8] sm:$0xff]   ;;  %v6693_v28 = vld [vmem:[#allocation16 + $0x38] sm:$0xff]   ;;  %6282 = vmatprep.subr.bf16.mxu1 %v7378_v5 }
 0x7b9   : > { %v8355_v26 = vpack.c.bf16 %v971_v23, %v970_v6  ;;  %v972_v29 = vld [vmem:[%s8030_s4 + $0x10] sm:$0xff]  ;;  %s8954_s4 = sld [smem:[#allocation51_spill]] }
 0x7ba   : > { %v2549_v37 = vrot.slane %v2541_v31, %v8141_v32  ;;  %v2556_v38 = vrot.slane %v2542_v33, %v8141_v32  ;;  %v2565_v39 = vrot.slane %v2557_v34, %v8141_v32  ;;  %v2572_v11 = vrot.slane %v2558_v35, %v8141_v32 }
 0x7bb   : > { %6283 = vmatpush3.bf16.msra.mxu1 %v6695_v27  ;;  %v8361_v30 = vpack.c.bf16 %v972_v29, %v972_v29 }
 0x7bc   : > { %v2577_v40 = vcombine.low %v2549_v37, %v2556_v38  ;;  %v5851_v41 = vcombine.high %v2549_v37, %v2556_v38  ;;  %v2593_v42 = vcombine.low %v2565_v39, %v2572_v11  ;;  %v5852_v43 = vcombine.high %v2565_v39, %v2572_v11  ;;  %6284 = vmatprep.subr.bf16.mxu1 %v7378_v5  ;;  %v6697_v37 = vld [vmem:[#allocation14 + $0x18] sm:$0xff]   ;;  %v6698_v38 = vld [vmem:[#allocation14 + $0x20] sm:$0xff]   ;;  %v6699_v39 = vld [vmem:[#allocation14 + $0x28] sm:$0xff]  }
 0x7bd   : > { %v6700_v11 = vld [vmem:[#allocation14 + $0x30] sm:$0xff]  }
 0x7be   : > { %v2584_v44 = vrot.slane %v2577_v40, %v8138_v25  ;;  %v2592_v45 = vrot.slane %v5851_v41, %v8138_v25  ;;  %v2600_v46 = vrot.slane %v2593_v42, %v8138_v25  ;;  %v2608_v47 = vrot.slane %v5852_v43, %v8138_v25  ;;  %v6701_v40 = vld [vmem:[#allocation14 + $0x38] sm:$0xff]   ;;  %v6702_v41 = vld [vmem:[#allocation17] sm:$0xff]  }
 0x7bf   : > { %6285 = vmatpush3.bf16.msra.mxu1 %v6696_v36 }
 0x7c0   : > { %v2610_v49 = vcombine.high %v2584_v44, %v2592_v45  ;;  %v2626_v50 = vcombine.high %v2600_v46, %v2608_v47  ;;  %v2609_v51 = vcombine.low %v2584_v44, %v2592_v45  ;;  %v2625_v52 = vcombine.low %v2600_v46, %v2608_v47  ;;  %6286 = vmatprep.subr.bf16.mxu1 %v7378_v5 }
 0x7c2   : > { %v2624_v7 = vrot.slane %v2610_v49, %v8141_v32  ;;  %v2640_v9 = vrot.slane %v2626_v50, %v8141_v32  ;;  %v2617_v53 = vrot.slane %v2609_v51, %v8141_v32  ;;  %v2633_v54 = vrot.slane %v2625_v52, %v8141_v32  ;;  %v5862_v50 = vld [vmem:[%s8953_s9] ss:$0 sm:$0xff]  ;;  %s8959_s9 = sld [smem:[#allocation36_spill]] }
 0x7c3   : > { %6287 = vmatpush3.bf16.msra.mxu1 %v6697_v37  ;;  %v5863_v52 = vld [vmem:[%s8954_s4] ss:$0 sm:$0xff] }
 0x7c4   : > { %v2643_v55 = vcombine.low %v2624_v7, %v2640_v9  ;;  %v2642_v13 = vcombine.high %v2617_v53, %v2633_v54  ;;  %v2644_v56 = vcombine.high %v2624_v7, %v2640_v9  ;;  %v2641_v57 = vcombine.low %v2617_v53, %v2633_v54  ;;  %6288 = vmatprep.subr.bf16.mxu1 %v7378_v5 }
 0x7c6   : > { %2650 = vrot.lane.b32.xlu1 %v2643_v55, %s7380_s1  ;;  %2646 = vrot.lane.b32.xlu0 %v2642_v13, %s7382_s23  ;;  %v6703_v55 = vld [vmem:[#allocation17 + $0x8] sm:$0xff]   ;;  %v6704_v13 = vld [vmem:[#allocation17 + $0x10] sm:$0xff]  }
 0x7c7   : > { %6289 = vmatpush3.bf16.msra.mxu1 %v6698_v38 }
 0x7c8   : > { %6290 = vmatprep.subr.bf16.mxu1 %v7378_v5  ;;  %s5989_s13 = sshll.u32 %s8959_s9, 1  ;;  %s7217_s9 = scalar_lea.vmem %s7216_s19, 256 }
 0x7c9   : > { %s5545_s4 = sadd.s32 %s8960_s22, %s5989_s13 }
 0x7ca   : > { %2654 = vrot.lane.b32.xlu1 %v2644_v56, %s7381_s2  ;;  %v6705_v56 = vld [vmem:[#allocation17 + $0x18] sm:$0xff]   ;;  %s5990_s17 = sshll.u32 %s5545_s4, 7 }
 0x7cb   : > { %6291 = vmatpush3.bf16.msra.mxu1 %v6699_v39 }
 0x7cc   : > { %6292 = vmatprep.subr.bf16.mxu1 %v7378_v5 }
 0x7cf   : > { %6293 = vmatpush3.bf16.msra.mxu1 %v6700_v11 }
 0x7d0   : > { %6294 = vmatprep.subr.bf16.mxu1 %v7378_v5 }
 0x7d3   : > { %6295 = vmatpush3.bf16.msra.mxu1 %v6701_v40 }
 0x7d4   : > { %6320 = vmatprep.subr.bf16.mxu1 %v6702_v41 }
 0x838   : > { %v2651_v58 = vpop.permute.xlu1 %2650  ;;  %v2647_v63 = vpop.permute.xlu0 %2646 }
 0x839   : > { %v2657_v15 = vsel %vm2103_vm1, %v2641_v57, %v2647_v63  ;;  %v6706_v57 = vld [vmem:[#allocation17 + $0x20] sm:$0xff]   ;;  %v6708_v63 = vld [vmem:[#allocation17 + $0x30] sm:$0xff]  }
 0x83a   : > { %v2659_v17 = vsel %vm2658_vm3, %v2657_v15, %v2651_v58  ;;  %v6707_v58 = vld [vmem:[#allocation17 + $0x28] sm:$0xff]   ;;  %v6709_v15 = vld [vmem:[#allocation17 + $0x38] sm:$0xff]  }
 0x83c   : > { %v2655_v0 = vpop.permute.xlu1 %2654 }
 0x83d   : > { %v2661_v1 = vsel %vm2660_vm4, %v2659_v17, %v2655_v0 }
 0x83e   : > { %v2662_v2 = vpack.c.bf16 %v2661_v1, %v2661_v1 }
 0x840   : > { %6277 = vmatmul.mubr.bf16.vlgmr.msra.gmra.mrb[16].mxu0 %v2662_v2 }
 0x841   : > { %6301 = vmatpush3.bf16.msra.mxu0 %v6686_v3  ;;  %6316 = vmatprep.mubr.bf16.mxu0 %v8355_v26 }
 0x842   : > { %6302 = vmatprep.subr.bf16.mxu0 %v6687_v4 }
 0x845   : > { %6303 = vmatpush3.bf16.msra.mxu0 %v6687_v4 }
 0x846   : > { %6304 = vmatprep.subr.bf16.mxu0 %v6688_v8 }
 0x849   : > { %6305 = vmatpush3.bf16.msra.mxu0 %v6688_v8 }
 0x84a   : > { %6306 = vmatprep.subr.bf16.mxu0 %v6689_v10 }
 0x84d   : > { %6307 = vmatpush3.bf16.msra.mxu0 %v6689_v10 }
 0x84e   : > { %6308 = vmatprep.subr.bf16.mxu0 %v6690_v19 }
 0x851   : > { %6309 = vmatpush3.bf16.msra.mxu0 %v6690_v19 }
 0x852   : > { %6310 = vmatprep.subr.bf16.mxu0 %v6691_v20 }
 0x855   : > { %6311 = vmatpush3.bf16.msra.mxu0 %v6691_v20 }
 0x856   : > { %6312 = vmatprep.subr.bf16.mxu0 %v6692_v22 }
 0x859   : > { %6313 = vmatpush3.bf16.msra.mxu0 %v6692_v22 }
 0x85a   : > { %6314 = vmatprep.subr.bf16.mxu0 %v6693_v28 }
 0x85d   : > { %6315 = vmatpush3.bf16.msra.mxu0 %v6693_v28 }
 0x85e   : > { %6356 = vmatprep.subr.bf16.mxu0 %v7378_v5 }
 0x860   : > { %6317 = vmatmul.mubr.bf16.vlgmr.msra.gmra.mrb[20].mxu0 %v8361_v30 }
 0x861   : > { %6360 = vmatprep.mubr.msk.bf16.mxu0 %vm7379_vm0, %v7378_v5 }
 0x913   : > { %v2751_v59 = vpop.f32.mrb[16].mxu0 }
 0x914   : > { %v2752_v60 = vadd.f32 %v5853_v12, %v2751_v59  ;;  %v6278_v61 = vpop.f32.mrb[17].mxu0 }
 0x915   : > { %v2754_v62 = vpop.f32.mrb[18].mxu0 }
 0x916   : > { %v8350_v16 = vadd.f32 %v6840_v14, %v2752_v60  ;;  %v6279_v18 = vpop.f32.mrb[19].mxu0 }
 0x918   : > { %2760 = vadd.xlane.f32.xlu0 %v8350_v16 }
 0x933   : > { %v8373_v42 = vpop.f32.mrb[20].mxu0 }
 0x934   : > { %v3024_v43 = vpop.f32.mrb[21].mxu0 }
 0x935   : > { %v6319_v44 = vpop.f32.mrb[22].mxu0  ;;  %3287 = vrot.lane.b32.xlu0 %v3024_v43, %s7381_s2 }
 0x936   : > { %v8376_v45 = vpop.f32.mrb[23].mxu0 }
 0x939   : > { %3296 = vrot.lane.b32.xlu0 %v3024_v43, %s7380_s1 }
 0x93d   : > { %3305 = vrot.lane.b32.xlu0 %v3024_v43, %s7382_s23 }
 0x941   : > { %3291 = vrot.lane.b32.xlu0 %v8373_v42, %s7381_s2 }
 0x945   : > { %3309 = vrot.lane.b32.xlu0 %v8373_v42, %s7382_s23 }
 0x9a5   : > { %v2761_v31 = vpop.xlane.xlu0 %2760 }
 0x9a6   : > { %v2762_v33 = vmul.f32 0.0078125, %v2761_v31 }
 0x9a8   : > { %v2763_v34 = vsub.f32 %v8350_v16, %v2762_v33 }
 0x9a9   : > { %v3288_v0 = vpop.permute.xlu0 %3287 }
 0x9aa   : > { %v2764_v35 = vmul.f32 %v2763_v34, %v2763_v34 }
 0x9ac   : > { %2765 = vadd.xlane.f32.xlu1 %v2764_v35 }
 0x9ad   : > { %v3297_v1 = vpop.permute.xlu0 %3296 }
 0x9ae   : > { %v3314_v2 = vcombine.low %v3024_v43, %v3297_v1  ;;  %v3315_v3 = vcombine.high %v3024_v43, %v3297_v1 }
 0x9b0   : > { %v3322_v59 = vrot.slane %v3314_v2, %v8138_v25  ;;  %v3329_v60 = vrot.slane %v3315_v3, %v8138_v25 }
 0x9b1   : > { %v3306_v12 = vpop.permute.xlu0 %3305 }
 0x9b2   : > { %v3330_v61 = vcombine.low %v3288_v0, %v3306_v12  ;;  %v3331_v62 = vcombine.high %v3288_v0, %v3306_v12 }
 0x9b4   : > { %v3338_v18 = vrot.slane %v3330_v61, %v8138_v25  ;;  %v3345_v19 = vrot.slane %v3331_v62, %v8138_v25 }
 0x9b5   : > { %v3292_v24 = vpop.permute.xlu0 %3291 }
 0x9b6   : > { %v3347_v27 = vcombine.high %v3322_v59, %v3338_v18  ;;  %v3362_v28 = vcombine.low %v3329_v60, %v3345_v19  ;;  %v3363_v29 = vcombine.high %v3329_v60, %v3345_v19 }
 0x9b8   : > { %v3370_v35 = vrot.slane %v3362_v28, %v8141_v32  ;;  %v3377_v36 = vrot.slane %v3363_v29, %v8141_v32 }
 0x9ba   : > { %v3534_v43 = vcombine.low %v3370_v35, %v3377_v36  ;;  %v5891_v44 = vcombine.high %v3370_v35, %v3377_v36 }
 0x9bd   : > { %3289 = vrot.lane.b32.xlu1 %v8376_v45, %s7381_s2 }
 0x9c1   : > { %3298 = vrot.lane.b32.xlu1 %v8376_v45, %s7380_s1 }
 0x9c5   : > { %3307 = vrot.lane.b32.xlu1 %v8376_v45, %s7382_s23 }
 0x9c9   : > { %3300 = vrot.lane.b32.xlu1 %v8373_v42, %s7380_s1 }
 0xa39   : > { %v2766_v46 = vpop.xlane.xlu1 %2765 }
 0xa3a   : > { %v2767_v47 = vmul.f32 0.0078125, %v2766_v46 }
 0xa3c   : > { %v2768_v48 = vadd.f32 1e-05, %v2767_v47 }
 0xa3d   : > { %v3290_v17 = vpop.permute.xlu1 %3289 }
 0xa3e   : > { %6820 = vrsqrt.f32 %v2768_v48 }
 0xa41   : > { %v3299_v4 = vpop.permute.xlu1 %3298 }
 0xa42   : > { %v3382_v8 = vcombine.low %v8376_v45, %v3299_v4  ;;  %v3383_v10 = vcombine.high %v8376_v45, %v3299_v4 }
 0xa44   : > { %v3390_v6 = vrot.slane %v3382_v8, %v8138_v25  ;;  %v3397_v23 = vrot.slane %v3383_v10, %v8138_v25 }
 0xa45   : > { %v3308_v14 = vpop.permute.xlu1 %3307 }
 0xa46   : > { %v3398_v20 = vcombine.low %v3290_v17, %v3308_v14  ;;  %v3399_v22 = vcombine.high %v3290_v17, %v3308_v14 }
 0xa48   : > { %v6821_v49 = vpop.eup %6820  ;;  %v3413_v31 = vrot.slane %v3399_v22, %v8138_v25 }
 0xa49   : > { %v2770_v51 = vmul.f32 %v6821_v49, %v2763_v34  ;;  %v3361_v34 = vrot.slane %v3347_v27, %v8141_v32  ;;  %v3310_v49 = vpop.permute.xlu0 %3309 }
 0xa4a   : > { %v3430_v39 = vcombine.low %v3397_v23, %v3413_v31  ;;  %v3431_v11 = vcombine.high %v3397_v23, %v3413_v31 }
 0xa4b   : > { %v2777_v7 = vmul.f32 %v5862_v50, %v2770_v51  ;;  %v3301_v50 = vpop.permute.xlu1 %3300 }
 0xa4c   : > { %v3438_v47 = vrot.slane %v3430_v39, %v8141_v32  ;;  %v3445_v48 = vrot.slane %v3431_v11, %v8141_v32 }
 0xa4d   : > { %v2784_v9 = vadd.f32 %v5863_v52, %v2777_v7  ;;  %v3541_v7 = vrot.slane %v3534_v43, %v8138_v25 }
 0xa4f   : > { %v2850_v53 = vmul.f32 0.17677669, %v2784_v9  ;;  %v3549_v9 = vrot.slane %v5891_v44, %v8138_v25 }
 0xa51   : > { %v2851_v54 = vpack.c.bf16 %v2850_v53, %v2850_v53  ;;  %v3566_v12 = vcombine.low %v3541_v7, %v3549_v9 }
 0xa53   : > { %6297 = vmatmul.mubr.bf16.vlgmr.msra.gmra.mrb[28].mxu1 %v2851_v54  ;;  %v3574_v19 = vrot.slane %v3566_v12, %v8141_v32 }
 0xa54   : > { %6321 = vmatpush3.bf16.msra.mxu1 %v6702_v41  ;;  %6336 = vmatprep.mubr.bf16.mxu1 %v8355_v26  ;;  %v3346_v26 = vcombine.low %v3322_v59, %v3338_v18 }
 0xa55   : > { %6322 = vmatprep.subr.bf16.mxu1 %v6703_v55 }
 0xa56   : > { %v3354_v33 = vrot.slane %v3346_v26, %v8141_v32 }
 0xa58   : > { %6323 = vmatpush3.bf16.msra.mxu1 %v6703_v55  ;;  %v3518_v40 = vcombine.low %v3354_v33, %v3361_v34  ;;  %v5890_v41 = vcombine.high %v3354_v33, %v3361_v34  ;;  %v3602_v55 = vcombine.low %v3438_v47, %v3445_v48 }
 0xa59   : > { %6324 = vmatprep.subr.bf16.mxu1 %v6704_v13 }
 0xa5a   : > { %v3525_v51 = vrot.slane %v3518_v40, %v8138_v25  ;;  %v3533_v52 = vrot.slane %v5890_v41, %v8138_v25  ;;  %v3609_v17 = vrot.slane %v3602_v55, %v8138_v25 }
 0xa5c   : > { %6325 = vmatpush3.bf16.msra.mxu1 %v6704_v13  ;;  %v5893_v13 = vcombine.high %v3438_v47, %v3445_v48  ;;  %v3550_v10 = vcombine.low %v3525_v51, %v3533_v52  ;;  %v3551_v29 = vcombine.high %v3525_v51, %v3533_v52 }
 0xa5d   : > { %6326 = vmatprep.subr.bf16.mxu1 %v6705_v56 }
 0xa5e   : > { %v3617_v1 = vrot.slane %v5893_v13, %v8138_v25  ;;  %v3558_v18 = vrot.slane %v3550_v10, %v8141_v32 }
 0xa60   : > { %6327 = vmatpush3.bf16.msra.mxu1 %v6705_v56  ;;  %v3466_v56 = vcombine.low %v3292_v24, %v3310_v49  ;;  %v3582_v27 = vcombine.low %v3558_v18, %v3574_v19 }
 0xa61   : > { %6328 = vmatprep.subr.bf16.mxu1 %v6706_v57 }
 0xa62   : > { %v3474_v2 = vrot.slane %v3466_v56, %v8138_v25 }
 0xa64   : > { %6329 = vmatpush3.bf16.msra.mxu1 %v6706_v57  ;;  %v3467_v57 = vcombine.high %v3292_v24, %v3310_v49 }
 0xa65   : > { %6330 = vmatprep.subr.bf16.mxu1 %v6707_v58 }
 0xa66   : > { %v3481_v3 = vrot.slane %v3467_v57, %v8138_v25 }
 0xa68   : > { %6331 = vmatpush3.bf16.msra.mxu1 %v6707_v58  ;;  %v3450_v58 = vcombine.low %v8373_v42, %v3301_v50 }
 0xa69   : > { %6332 = vmatprep.subr.bf16.mxu1 %v6708_v63 }
 0xa6a   : > { %v3458_v4 = vrot.slane %v3450_v58, %v8138_v25 }
 0xa6c   : > { %6333 = vmatpush3.bf16.msra.mxu1 %v6708_v63  ;;  %v3451_v63 = vcombine.high %v8373_v42, %v3301_v50  ;;  %v3634_v42 = vcombine.low %v3609_v17, %v3617_v1  ;;  %v3482_v60 = vcombine.low %v3458_v4, %v3474_v2  ;;  %v3483_v61 = vcombine.high %v3458_v4, %v3474_v2 }
 0xa6d   : > { %6334 = vmatprep.subr.bf16.mxu1 %v6709_v15 }
 0xa6e   : > { %v3465_v8 = vrot.slane %v3451_v63, %v8138_v25  ;;  %v3642_v22 = vrot.slane %v3634_v42, %v8141_v32  ;;  %v3497_v23 = vrot.slane %v3483_v61, %v8141_v32 }
 0xa70   : > { %6335 = vmatpush3.bf16.msra.mxu1 %v6709_v15  ;;  %v3498_v62 = vcombine.low %v3465_v8, %v3481_v3  ;;  %v3499_v14 = vcombine.high %v3465_v8, %v3481_v3 }
 0xa71   : > { %6340 = vmatprep.subr.bf16.mxu1 %v7378_v5 }
 0xa72   : > { %v3506_v24 = vrot.slane %v3498_v62, %v8141_v32  ;;  %v3513_v26 = vrot.slane %v3499_v14, %v8141_v32 }
 0xa73   : > { %6337 = vmatmul.mubr.bf16.vlgmr.msra.gmra.mrb[32].mxu1 %v8361_v30  ;;  %v3406_v30 = vrot.slane %v3398_v20, %v8138_v25 }
 0xa74   : > { %6344 = vmatprep.mubr.msk.bf16.mxu1 %vm7379_vm0, %v7378_v5  ;;  %v3670_v34 = vcombine.low %v3506_v24, %v3513_v26  ;;  %v5895_v35 = vcombine.high %v3506_v24, %v3513_v26 }
 0xa75   : > { %v3414_v37 = vcombine.low %v3390_v6, %v3406_v30  ;;  %v3415_v38 = vcombine.high %v3390_v6, %v3406_v30  ;;  %v3490_v6 = vrot.slane %v3482_v60, %v8141_v32  ;;  %v3567_v30 = vcombine.high %v3541_v7, %v3549_v9 }
 0xa76   : > { %v3677_v41 = vrot.slane %v3670_v34, %v8138_v25  ;;  %v3685_v43 = vrot.slane %v5895_v35, %v8138_v25 }
 0xa77   : > { %v3422_v45 = vrot.slane %v3414_v37, %v8141_v32  ;;  %v3429_v46 = vrot.slane %v3415_v38, %v8141_v32  ;;  %v3654_v31 = vcombine.low %v3490_v6, %v3497_v23  ;;  %v5894_v33 = vcombine.high %v3490_v6, %v3497_v23 }
 0xa78   : > { %v3565_v37 = vrot.slane %v3551_v29, %v8141_v32  ;;  %v3581_v38 = vrot.slane %v3567_v30, %v8141_v32  ;;  %v3702_v48 = vcombine.low %v3677_v41, %v3685_v43  ;;  %v3703_v50 = vcombine.high %v3677_v41, %v3685_v43 }
 0xa79   : > { %v3586_v53 = vcombine.low %v3422_v45, %v3429_v46  ;;  %v5892_v54 = vcombine.high %v3422_v45, %v3429_v46  ;;  %v3661_v11 = vrot.slane %v3654_v31, %v8138_v25  ;;  %v3669_v40 = vrot.slane %v5894_v33, %v8138_v25 }
 0xa7a   : > { %v3635_v46 = vcombine.high %v3609_v17, %v3617_v1  ;;  %v3584_v51 = vcombine.low %v3565_v37, %v3581_v38  ;;  %v3710_v9 = vrot.slane %v3702_v48, %v8141_v32  ;;  %v3583_v17 = vcombine.high %v3558_v18, %v3574_v19 }
 0xa7b   : > { %v3593_v15 = vrot.slane %v3586_v53, %v8138_v25  ;;  %v3601_v0 = vrot.slane %v5892_v54, %v8138_v25  ;;  %v3686_v47 = vcombine.low %v3661_v11, %v3669_v40  ;;  %v3687_v49 = vcombine.high %v3661_v11, %v3669_v40 }
 0xa7c   : > { %v3649_v52 = vrot.slane %v3635_v46, %v8141_v32  ;;  %v3717_v54 = vrot.slane %v3703_v50, %v8141_v32  ;;  %v3585_v3 = vcombine.high %v3565_v37, %v3581_v38 }
 0xa7d   : > { %v3618_v59 = vcombine.low %v3593_v15, %v3601_v0  ;;  %v3619_v39 = vcombine.high %v3593_v15, %v3601_v0  ;;  %v3694_v7 = vrot.slane %v3686_v47, %v8141_v32  ;;  %v3701_v53 = vrot.slane %v3687_v49, %v8141_v32 }
 0xa7f   : > { %v3626_v20 = vrot.slane %v3618_v59, %v8141_v32  ;;  %v3633_v45 = vrot.slane %v3619_v39, %v8141_v32  ;;  %v3718_v13 = vcombine.low %v3694_v7, %v3710_v9  ;;  %v3720_v56 = vcombine.low %v3701_v53, %v3717_v54 }
 0xa80   : > { %v8460_v2 = vcombine.high %v3694_v7, %v3710_v9  ;;  %v8463_v8 = vcombine.high %v3701_v53, %v3717_v54 }
 0xa81   : > { %v3650_v28 = vcombine.low %v3626_v20, %v3642_v22  ;;  %v3652_v55 = vcombine.low %v3633_v45, %v3649_v52  ;;  %v3723_v58 = vpack.c.bf16 %v3718_v13, %v3718_v13  ;;  %v3727_v0 = vpack.c.bf16 %v3720_v56, %v3720_v56 }
 0xa82   : > { %v3651_v1 = vcombine.high %v3626_v20, %v3642_v22  ;;  %v3653_v4 = vcombine.high %v3633_v45, %v3649_v52 }
 0xa83   : > { %v3722_v36 = vpack.c.bf16 %v3650_v28, %v3582_v27  ;;  %v3726_v57 = vpack.c.bf16 %v3652_v55, %v3584_v51  ;;  %v4183_v15 = vsel %vm2103_vm1, %v3723_v58, 0  ;;  %v4281_v59 = vsel %vm2103_vm1, %v3727_v0, 0 }
 0xa84   : > { %v3724_v10 = vpack.c.bf16 %v3651_v1, %v3583_v17  ;;  %v8465_v12 = vpack.c.bf16 %v3653_v4, %v3585_v3 }
 0xa85   : > { %v4180_v44 = vsel %vm2103_vm1, %v3722_v36, 0  ;;  %v4278_v63 = vsel %vm2103_vm1, %v3726_v57, 0 }
 0xa86   : > { %6341 = vmatpush3.bf16.xpose.msra.mxu1 %v4180_v44  ;;  %6357 = vmatpush3.bf16.xpose.msra.mxu0 %v4278_v63  ;;  %v4229_v63 = vsel %vm2103_vm1, %v3724_v10, 0  ;;  %v4327_v3 = vsel %vm2103_vm1, %v8465_v12, 0 }
 0xa87   : > { %6342 = vmatprep.subr.bf16.mxu1 %v7378_v5  ;;  %6358 = vmatprep.subr.bf16.mxu0 %v7378_v5 }
 0xa8e   : > { %6343 = vmatpush3.bf16.xpose.msra.mxu1 %v4183_v15  ;;  %6359 = vmatpush3.bf16.xpose.msra.mxu0 %v4281_v59  ;;  %v3725_v15 = vpack.c.bf16 %v8460_v2, %v8460_v2  ;;  %v3729_v2 = vpack.c.bf16 %v8463_v8, %v8463_v8 }
 0xa8f   : > { %6348 = vmatprep.subr.bf16.mxu1 %v7378_v5  ;;  %6372 = vmatprep.subr.bf16.mxu0 %v7378_v5 }
 0xa90   : > { %v4232_v0 = vsel %vm2103_vm1, %v3725_v15, 0  ;;  %v4330_v4 = vsel %vm2103_vm1, %v3729_v2, 0 }
 0xb26   : > { %v2936_v42 = vpop.f32.mrb[28].mxu1 }
 0xb27   : > { %v6298_v60 = vpop.f32.mrb[29].mxu1  ;;  %3138 = vrot.lane.b32.xlu0 %v2936_v42, %s7380_s1  ;;  %3135 = vrot.lane.b32.xlu1 %v2936_v42, %s7381_s2 }
 0xb28   : > { %v2939_v61 = vpop.f32.mrb[30].mxu1 }
 0xb29   : > { %v6299_v62 = vpop.f32.mrb[31].mxu1 }
 0xb2b   : > { %3141 = vrot.lane.b32.xlu1 %v2936_v42, %s7382_s23 }
 0xb46   : > { %v8472_v14 = vpop.f32.mrb[32].mxu1 }
 0xb47   : > { %v8474_v18 = vpop.f32.mrb[33].mxu1 }
 0xb48   : > { %3742 = vrot.lane.b32.xlu1 %v8474_v18, %s7380_s1  ;;  %v6339_v19 = vpop.f32.mrb[34].mxu1  ;;  %3733 = vrot.lane.b32.xlu0 %v8474_v18, %s7381_s2 }
 0xb49   : > { %v8480_v20 = vpop.f32.mrb[35].mxu1 }
 0xb4c   : > { %3735 = vrot.lane.b32.xlu1 %v8480_v20, %s7381_s2  ;;  %3751 = vrot.lane.b32.xlu0 %v8474_v18, %s7382_s23 }
 0xb50   : > { %3744 = vrot.lane.b32.xlu1 %v8480_v20, %s7380_s1 }
 0xb99   : > { %v3139_v22 = vpop.permute.xlu0 %3138  ;;  %v3136_v6 = vpop.permute.xlu1 %3135 }
 0xb9a   : > { %v3144_v23 = vcombine.low %v2936_v42, %v3139_v22  ;;  %v3145_v24 = vcombine.high %v2936_v42, %v3139_v22 }
 0xb9c   : > { %v3152_v29 = vrot.slane %v3144_v23, %v8138_v25  ;;  %v3159_v30 = vrot.slane %v3145_v24, %v8138_v25 }
 0xb9d   : > { %v3142_v26 = vpop.permute.xlu1 %3141 }
 0xb9e   : > { %v3160_v27 = vcombine.low %v3136_v6, %v3142_v26  ;;  %v3161_v28 = vcombine.high %v3136_v6, %v3142_v26 }
 0xba0   : > { %v3168_v31 = vrot.slane %v3160_v27, %v8138_v25  ;;  %v3175_v33 = vrot.slane %v3161_v28, %v8138_v25 }
 0xba2   : > { %v3176_v34 = vcombine.low %v3152_v29, %v3168_v31  ;;  %v3177_v35 = vcombine.high %v3152_v29, %v3168_v31  ;;  %v3192_v36 = vcombine.low %v3159_v30, %v3175_v33  ;;  %v3193_v37 = vcombine.high %v3159_v30, %v3175_v33 }
 0xba4   : > { %v3184_v38 = vrot.slane %v3176_v34, %v8141_v32  ;;  %v3191_v39 = vrot.slane %v3177_v35, %v8141_v32  ;;  %v3200_v11 = vrot.slane %v3192_v36, %v8141_v32  ;;  %v3207_v40 = vrot.slane %v3193_v37, %v8141_v32 }
 0xba6   : > { %v3212_v41 = vcombine.low %v3184_v38, %v3191_v39  ;;  %v5888_v43 = vcombine.high %v3184_v38, %v3191_v39  ;;  %v3228_v44 = vcombine.low %v3200_v11, %v3207_v40  ;;  %v5889_v45 = vcombine.high %v3200_v11, %v3207_v40 }
 0xba8   : > { %v3219_v46 = vrot.slane %v3212_v41, %v8138_v25  ;;  %v3227_v47 = vrot.slane %v5888_v43, %v8138_v25  ;;  %v3235_v48 = vrot.slane %v3228_v44, %v8138_v25  ;;  %v3243_v49 = vrot.slane %v5889_v45, %v8138_v25 }
 0xbaa   : > { %v3244_v50 = vcombine.low %v3219_v46, %v3227_v47  ;;  %v3245_v51 = vcombine.high %v3219_v46, %v3227_v47  ;;  %v3260_v52 = vcombine.low %v3235_v48, %v3243_v49  ;;  %v3261_v7 = vcombine.high %v3235_v48, %v3243_v49 }
 0xbac   : > { %v3252_v9 = vrot.slane %v3244_v50, %v8141_v32  ;;  %v3268_v53 = vrot.slane %v3260_v52, %v8141_v32  ;;  %v3259_v54 = vrot.slane %v3245_v51, %v8141_v32  ;;  %v3275_v55 = vrot.slane %v3261_v7, %v8141_v32 }
 0xbae   : > { %v3276_v13 = vcombine.low %v3252_v9, %v3268_v53  ;;  %v3278_v56 = vcombine.low %v3259_v54, %v3275_v55  ;;  %v3277_v17 = vcombine.high %v3252_v9, %v3268_v53  ;;  %v3279_v10 = vcombine.high %v3259_v54, %v3275_v55 }
 0xbb0   : > { %v3280_v57 = vpack.c.bf16 %v3276_v13, %v3276_v13  ;;  %v3282_v58 = vpack.c.bf16 %v3278_v56, %v3278_v56  ;;  %v3281_v1 = vpack.c.bf16 %v3277_v17, %v3277_v17  ;;  %v3283_v59 = vpack.c.bf16 %v3279_v10, %v3279_v10 }
 0xbb2   : > { %6345 = vmatmul.mubr.msk.bf16.vlgmr.msra.gmra.mrb[36].mxu1 %vm2103_vm1, %v3280_v57  ;;  %6361 = vmatmul.mubr.msk.bf16.vlgmr.msra.gmra.mrb[24].mxu0 %vm2103_vm1, %v3282_v58 }
 0xbb3   : > { %6349 = vmatpush3.bf16.xpose.msra.mxu1 %v4229_v63  ;;  %6352 = vmatprep.mubr.msk.bf16.mxu1 %vm7379_vm0, %v7378_v5 }
 0xbb4   : > { %6350 = vmatprep.subr.bf16.mxu1 %v7378_v5  ;;  %6376 = vmatprep.mubr.msk.bf16.mxu0 %vm7379_vm0, %v7378_v5 }
 0xbba   : > { %v3734_v12 = vpop.permute.xlu0 %3733  ;;  %v3743_v60 = vpop.permute.xlu1 %3742 }
 0xbbb   : > { %6351 = vmatpush3.bf16.xpose.msra.mxu1 %v4232_v0  ;;  %v3760_v61 = vcombine.low %v8474_v18, %v3743_v60  ;;  %v3761_v62 = vcombine.high %v8474_v18, %v3743_v60 }
 0xbbc   : > { %6364 = vmatprep.subr.bf16.mxu1 %v7378_v5 }
 0xbbd   : > { %v3768_v22 = vrot.slane %v3760_v61, %v8138_v25  ;;  %v3775_v6 = vrot.slane %v3761_v62, %v8138_v25 }
 0xbbe   : > { %v3752_v42 = vpop.permute.xlu0 %3751 }
 0xbbf   : > { %v3776_v8 = vcombine.low %v3734_v12, %v3752_v42  ;;  %v3777_v19 = vcombine.high %v3734_v12, %v3752_v42 }
 0xbc1   : > { %v3784_v23 = vrot.slane %v3776_v8, %v8138_v25  ;;  %v3791_v24 = vrot.slane %v3777_v19, %v8138_v25 }
 0xbc2   : > { %6353 = vmatmul.mubr.msk.bf16.vlgmr.msra.gmra.mrb[40].mxu1 %vm2103_vm1, %v3281_v1 }
 0xbc3   : > { %6365 = vmatpush3.bf16.xpose.msra.mxu1 %v4327_v3  ;;  %6368 = vmatprep.mubr.msk.bf16.mxu1 %vm7379_vm0, %v7378_v5  ;;  %v3792_v26 = vcombine.low %v3768_v22, %v3784_v23  ;;  %v3793_v27 = vcombine.high %v3768_v22, %v3784_v23  ;;  %v3808_v28 = vcombine.low %v3775_v6, %v3791_v24 }
 0xbc4   : > { %6366 = vmatprep.subr.bf16.mxu1 %v7378_v5  ;;  %v3809_v29 = vcombine.high %v3775_v6, %v3791_v24 }
 0xbc5   : > { %v3800_v30 = vrot.slane %v3792_v26, %v8141_v32  ;;  %v3807_v31 = vrot.slane %v3793_v27, %v8141_v32  ;;  %v3816_v18 = vrot.slane %v3808_v28, %v8141_v32 }
 0xbc6   : > { %v3823_v33 = vrot.slane %v3809_v29, %v8141_v32 }
 0xbc7   : > { %v3964_v34 = vcombine.low %v3800_v30, %v3807_v31  ;;  %v5896_v35 = vcombine.high %v3800_v30, %v3807_v31 }
 0xbc8   : > { %v3980_v36 = vcombine.low %v3816_v18, %v3823_v33  ;;  %v5897_v37 = vcombine.high %v3816_v18, %v3823_v33 }
 0xbc9   : > { %v8540_v38 = vrot.slane %v3964_v34, %v8138_v25  ;;  %v8543_v39 = vrot.slane %v5896_v35, %v8138_v25 }
 0xbca   : > { %v8546_v11 = vrot.slane %v3980_v36, %v8138_v25  ;;  %v8549_v40 = vrot.slane %v5897_v37, %v8138_v25 }
 0xbcb   : > { %6367 = vmatpush3.bf16.xpose.msra.mxu1 %v4330_v4  ;;  %v3997_v41 = vcombine.high %v8540_v38, %v8543_v39  ;;  %v3996_v37 = vcombine.low %v8540_v38, %v8543_v39 }
 0xbcc   : > { %6380 = vmatprep.subr.bf16.mxu1 %v7378_v5  ;;  %v4013_v43 = vcombine.high %v8546_v11, %v8549_v40 }
 0xbcd   : > { %v8556_v44 = vrot.slane %v3997_v41, %v8141_v32  ;;  %v4012_v41 = vcombine.low %v8546_v11, %v8549_v40  ;;  %v4004_v39 = vrot.slane %v3996_v37, %v8141_v32 }
 0xbce   : > { %v8559_v45 = vrot.slane %v4013_v43, %v8141_v32 }
 0xbcf   : > { %v4020_v11 = vrot.slane %v4012_v41, %v8141_v32 }
 0xbd0   : > { %v4030_v46 = vcombine.low %v8556_v44, %v8559_v45  ;;  %v4031_v47 = vcombine.high %v8556_v44, %v8559_v45 }
 0xbd2   : > { %6369 = vmatmul.mubr.msk.bf16.vlgmr.msra.gmra.mrb[44].mxu1 %vm2103_vm1, %v3283_v59  ;;  %v3736_v59 = vpop.permute.xlu1 %3735 }
 0xbd3   : > { %6384 = vmatprep.mubr.msk.bf16.mxu1 %vm7379_vm0, %v7378_v5 }
 0xbd6   : > { %v3745_v12 = vpop.permute.xlu1 %3744 }
 0xbd7   : > { %v3828_v8 = vcombine.low %v8480_v20, %v3745_v12  ;;  %v3829_v19 = vcombine.high %v8480_v20, %v3745_v12 }
 0xbd9   : > { %v3836_v26 = vrot.slane %v3828_v8, %v8138_v25  ;;  %v3843_v27 = vrot.slane %v3829_v19, %v8138_v25 }
 0xc85   : > { %v4219_v48 = vpop.f32.mrb[36].mxu1  ;;  %v8565_v49 = vpop.f32.mrb[24].mxu0 }
 0xc86   : > { %v6346_v50 = vpop.f32.mrb[37].mxu1  ;;  %v6362_v51 = vpop.f32.mrb[25].mxu0  ;;  %v4373_v52 = vsel %vm4372_vm5, %v4219_v48, -inf  ;;  %v4379_v55 = vsel %vm4372_vm5, %v8565_v49, -inf }
 0xc87   : > { %v4320_v7 = vpop.f32.mrb[26].mxu0  ;;  %4374 = vmax.xlane.f32.xlu0 %v4373_v52  ;;  %v4222_v9 = vpop.f32.mrb[38].mxu1 }
 0xc88   : > { %v6347_v53 = vpop.f32.mrb[39].mxu1  ;;  %v6363_v54 = vpop.f32.mrb[27].mxu0 }
 0xc8b   : > { %4380 = vmax.xlane.f32.xlu0 %v4379_v55 }
 0xc95   : > { %v4268_v13 = vpop.f32.mrb[40].mxu1 }
 0xc96   : > { %v6354_v56 = vpop.f32.mrb[41].mxu1  ;;  %v4376_v57 = vsel %vm4372_vm5, %v4268_v13, -inf }
 0xc97   : > { %4377 = vmax.xlane.f32.xlu1 %v4376_v57  ;;  %v4271_v58 = vpop.f32.mrb[42].mxu1 }
 0xc98   : > { %v6355_v63 = vpop.f32.mrb[43].mxu1 }
 0xca5   : > { %v8571_v15 = vpop.f32.mrb[44].mxu1 }
 0xca6   : > { %v6370_v0 = vpop.f32.mrb[45].mxu1  ;;  %v4382_v17 = vsel %vm4372_vm5, %v8571_v15, -inf }
 0xca7   : > { %4383 = vmax.xlane.f32.xlu0 %v4382_v17  ;;  %v4369_v1 = vpop.f32.mrb[46].mxu1  ;;  %v4028_v17 = vcombine.low %v4004_v39, %v4020_v11 }
 0xca8   : > { %3753 = vrot.lane.b32.xlu1 %v8480_v20, %s7382_s23  ;;  %v6371_v3 = vpop.f32.mrb[47].mxu1 }
 0xca9   : > { %v4029_v3 = vcombine.high %v4004_v39, %v4020_v11 }
 0xcbd   : > { %3737 = vrot.lane.b32.xlu0 %v8472_v14, %s7381_s2 }
 0xd14   : > { %v4375_v2 = vpop.xlane.xlu0 %4374 }
 0xd15   : > { %v4385_v4 = vsub.f32 %v4219_v48, %v4375_v2 }
 0xd17   : > { %v4389_v10 = vmul.f32 1.442695, %v4385_v4 }
 0xd19   : > { %6822 = vpow2.f32 %v4389_v10 }
 0xd23   : > { %v8579_v42 = vpop.eup %6822 }
 0xd24   : > { %v4378_v60 = vpop.xlane.xlu1 %4377  ;;  %v4397_v61 = vsel %vm4372_vm5, %v8579_v42, 0.0 }
 0xd25   : > { %v4386_v62 = vsub.f32 %v4268_v13, %v4378_v60  ;;  %4398 = vadd.xlane.f32.xlu0 %v4397_v61 }
 0xd27   : > { %v4391_v22 = vmul.f32 1.442695, %v4386_v62  ;;  %v4381_v62 = vpop.xlane.xlu0 %4380 }
 0xd28   : > { %v3754_v6 = vpop.permute.xlu1 %3753 }
 0xd29   : > { %6824 = vpow2.f32 %v4391_v22  ;;  %v3844_v23 = vcombine.low %v3736_v59, %v3754_v6  ;;  %v3845_v24 = vcombine.high %v3736_v59, %v3754_v6  ;;  %v4387_v22 = vsub.f32 %v8565_v49, %v4381_v62 }
 0xd2b   : > { %v3852_v28 = vrot.slane %v3844_v23, %v8138_v25  ;;  %v3859_v29 = vrot.slane %v3845_v24, %v8138_v25  ;;  %v4393_v45 = vmul.f32 1.442695, %v4387_v22 }
 0xd2d   : > { %v3860_v30 = vcombine.low %v3836_v26, %v3852_v28  ;;  %v3861_v31 = vcombine.high %v3836_v26, %v3852_v28  ;;  %v3876_v18 = vcombine.low %v3843_v27, %v3859_v29  ;;  %v3877_v33 = vcombine.high %v3843_v27, %v3859_v29 }
 0xd2f   : > { %v3868_v34 = vrot.slane %v3860_v30, %v8141_v32  ;;  %v3875_v20 = vrot.slane %v3861_v31, %v8141_v32  ;;  %v3884_v35 = vrot.slane %v3876_v18, %v8141_v32  ;;  %v3891_v36 = vrot.slane %v3877_v33, %v8141_v32 }
 0xd31   : > { %v4032_v43 = vcombine.low %v3868_v34, %v3875_v20  ;;  %v5898_v48 = vcombine.high %v3868_v34, %v3875_v20  ;;  %v4048_v50 = vcombine.low %v3884_v35, %v3891_v36  ;;  %v5899_v51 = vcombine.high %v3884_v35, %v3891_v36 }
 0xd33   : > { %v8597_v52 = vpop.eup %6824  ;;  %v4039_v7 = vrot.slane %v4032_v43, %v8138_v25  ;;  %v4047_v9 = vrot.slane %v5898_v48, %v8138_v25  ;;  %v4055_v53 = vrot.slane %v4048_v50, %v8138_v25  ;;  %v4063_v54 = vrot.slane %v5899_v51, %v8138_v25 }
 0xd34   : > { %v4400_v38 = vsel %vm4372_vm5, %v8597_v52, 0.0  ;;  %v4384_v8 = vpop.xlane.xlu0 %4383 }
 0xd35   : > { %4401 = vadd.xlane.f32.xlu1 %v4400_v38  ;;  %v4064_v40 = vcombine.low %v4039_v7, %v4047_v9  ;;  %v4080_v55 = vcombine.low %v4055_v53, %v4063_v54  ;;  %v4065_v13 = vcombine.high %v4039_v7, %v4047_v9  ;;  %v4081_v56 = vcombine.high %v4055_v53, %v4063_v54 }
 0xd36   : > { %v4388_v19 = vsub.f32 %v8571_v15, %v4384_v8 }
 0xd37   : > { %v4072_v57 = vrot.slane %v4064_v40, %v8141_v32  ;;  %v4088_v58 = vrot.slane %v4080_v55, %v8141_v32  ;;  %v4079_v63 = vrot.slane %v4065_v13, %v8141_v32  ;;  %v4095_v0 = vrot.slane %v4081_v56, %v8141_v32 }
 0xd38   : > { %v3738_v23 = vpop.permute.xlu0 %3737 }
 0xd39   : > { %v4096_v1 = vcombine.low %v4072_v57, %v4088_v58  ;;  %v4097_v2 = vcombine.high %v4072_v57, %v4088_v58  ;;  %v4098_v4 = vcombine.low %v4079_v63, %v4095_v0  ;;  %v4099_v10 = vcombine.high %v4079_v63, %v4095_v0 }
 0xd3b   : > { %3755 = vrot.lane.b32.xlu0 %v8472_v14, %s7382_s23  ;;  %v4168_v59 = vpack.c.bf16 %v4096_v1, %v4028_v17  ;;  %v4170_v12 = vpack.c.bf16 %v4097_v2, %v4029_v3  ;;  %v8616_v60 = vpack.c.bf16 %v4098_v4, %v4030_v46  ;;  %v8621_v61 = vpack.c.bf16 %v4099_v10, %v4031_v47 }
 0xd3c   : > { %v4395_v46 = vmul.f32 1.442695, %v4388_v19 }
 0xd3d   : > { %6373 = vmatpush3.bf16.msra.mxu0 %v4168_v59  ;;  %6381 = vmatpush3.bf16.msra.mxu1 %v4170_v12 }
 0xd3e   : > { %6374 = vmatprep.subr.bf16.mxu0 %v7378_v5  ;;  %6382 = vmatprep.subr.bf16.mxu1 %v7378_v5  ;;  %6826 = vpow2.f32 %v4395_v46 }
 0xd3f   : > { %6828 = vpow2.f32 %v4393_v45 }
 0xd46   : > { %3746 = vrot.lane.b32.xlu1 %v8472_v14, %s7380_s1 }
 0xd48   : > { %v8629_v44 = vpop.eup %6826 }
 0xd49   : > { %v4406_v47 = vsel %vm4372_vm5, %v8629_v44, 0.0  ;;  %v8633_v6 = vpop.eup %6828 }
 0xd4a   : > { %v4403_v15 = vsel %vm4372_vm5, %v8633_v6, 0.0 }
 0xd5a   : > { %4407 = vadd.xlane.f32.xlu0 %v4406_v47 }
 0xd6a   : > { %4404 = vadd.xlane.f32.xlu1 %v4403_v15 }
 0xdb2   : > { %v4399_v24 = vpop.xlane.xlu0 %4398 }
 0xdb3   : > { %6830 = vrcp.f32 %v4399_v24 }
 0xdb6   : > { %v3756_v26 = vpop.permute.xlu0 %3755 }
 0xdb7   : > { %v3912_v28 = vcombine.low %v3738_v23, %v3756_v26  ;;  %v3913_v49 = vcombine.high %v3738_v23, %v3756_v26 }
 0xdb9   : > { %v3920_v18 = vrot.slane %v3912_v28, %v8138_v25  ;;  %v3927_v33 = vrot.slane %v3913_v49, %v8138_v25 }
 0xdbd   : > { %v6831_v57 = vpop.eup %6830 }
 0xdbe   : > { %v4413_v4 = vmul.f32 %v6831_v57, %v8579_v42 }
 0xdc0   : > { %v4417_v22 = vpack.c.bf16 %v4413_v4, %v4413_v4 }
 0xdc2   : > { %v4402_v27 = vpop.xlane.xlu1 %4401 }
 0xdc3   : > { %6832 = vrcp.f32 %v4402_v27 }
 0xdc6   : > { %v3747_v29 = vpop.permute.xlu1 %3746 }
 0xdc7   : > { %v3896_v30 = vcombine.low %v8472_v14, %v3747_v29  ;;  %v3897_v31 = vcombine.high %v8472_v14, %v3747_v29  ;;  %v6710_v29 = vld [vmem:[#allocation19] sm:$0xff]  }
 0xdc9   : > { %v3904_v34 = vrot.slane %v3896_v30, %v8138_v25  ;;  %v3911_v20 = vrot.slane %v3897_v31, %v8138_v25  ;;  %v6711_v30 = vld [vmem:[#allocation19 + $0x8] sm:$0xff]   ;;  %v6713_v31 = vld [vmem:[#allocation19 + $0x18] sm:$0xff]  }
 0xdcb   : > { %v3928_v35 = vcombine.low %v3904_v34, %v3920_v18  ;;  %v3929_v36 = vcombine.high %v3904_v34, %v3920_v18  ;;  %v3944_v37 = vcombine.low %v3911_v20, %v3927_v33  ;;  %v3945_v41 = vcombine.high %v3911_v20, %v3927_v33  ;;  %v6715_v18 = vld [vmem:[#allocation19 + $0x28] sm:$0xff]  }
 0xdcd   : > { %v3936_v43 = vrot.slane %v3928_v35, %v8141_v32  ;;  %v3943_v48 = vrot.slane %v3929_v36, %v8141_v32  ;;  %v3952_v14 = vrot.slane %v3944_v37, %v8141_v32  ;;  %v3959_v50 = vrot.slane %v3945_v41, %v8141_v32  ;;  %v6833_v0 = vpop.eup %6832 }
 0xdce   : > { %v4414_v10 = vmul.f32 %v6833_v0, %v8597_v52 }
 0xdcf   : > { %v4100_v51 = vcombine.low %v3936_v43, %v3943_v48  ;;  %v5900_v7 = vcombine.high %v3936_v43, %v3943_v48  ;;  %v4116_v9 = vcombine.low %v3952_v14, %v3959_v50  ;;  %v5901_v53 = vcombine.high %v3952_v14, %v3959_v50 }
 0xdd0   : > { %v4418_v45 = vpack.c.bf16 %v4414_v10, %v4414_v10 }
 0xdd1   : > { %v4107_v54 = vrot.slane %v4100_v51, %v8138_v25  ;;  %v4115_v38 = vrot.slane %v5900_v7, %v8138_v25  ;;  %v4123_v39 = vrot.slane %v4116_v9, %v8138_v25  ;;  %v4131_v11 = vrot.slane %v5901_v53, %v8138_v25 }
 0xdd3   : > { %v4132_v40 = vcombine.low %v4107_v54, %v4115_v38  ;;  %v4148_v55 = vcombine.low %v4123_v39, %v4131_v11  ;;  %v4133_v13 = vcombine.high %v4107_v54, %v4115_v38  ;;  %v4149_v56 = vcombine.high %v4123_v39, %v4131_v11 }
 0xdd5   : > { %v4140_v58 = vrot.slane %v4132_v40, %v8141_v32  ;;  %v4156_v63 = vrot.slane %v4148_v55, %v8141_v32  ;;  %v4147_v3 = vrot.slane %v4133_v13, %v8141_v32  ;;  %v4163_v2 = vrot.slane %v4149_v56, %v8141_v32 }
 0xdd7   : > { %v4164_v17 = vcombine.low %v4140_v58, %v4156_v63  ;;  %v4165_v1 = vcombine.high %v4140_v58, %v4156_v63  ;;  %v4166_v19 = vcombine.low %v4147_v3, %v4163_v2  ;;  %v4167_v46 = vcombine.high %v4147_v3, %v4163_v2 }
 0xdd9   : > { %v4169_v59 = vpack.c.bf16 %v4164_v17, %v4164_v17  ;;  %v4171_v12 = vpack.c.bf16 %v4165_v1, %v4165_v1  ;;  %v4173_v42 = vpack.c.bf16 %v4166_v19, %v4166_v19  ;;  %v4175_v52 = vpack.c.bf16 %v4167_v46, %v4167_v46  ;;  %v6716_v1 = vld [vmem:[#allocation19 + $0x30] sm:$0xff]  }
 0xddb   : > { %v4426_v62 = vsel %vm4424_vm6, %v4169_v59, 0  ;;  %v4472_v8 = vsel %vm4424_vm6, %v4171_v12, 0  ;;  %v4518_v47 = vsel %vm4424_vm6, %v4173_v42, 0  ;;  %v4564_v15 = vsel %vm4424_vm6, %v4175_v52, 0  ;;  %v6717_v42 = vld [vmem:[#allocation19 + $0x38] sm:$0xff]  }
 0xddc   : > { %6375 = vmatpush3.bf16.msra.mxu0 %v4426_v62  ;;  %6383 = vmatpush3.bf16.msra.mxu1 %v4472_v8 }
 0xddd   : > { %6388 = vmatprep.subr.bf16.mxu0 %v7378_v5  ;;  %6396 = vmatprep.subr.bf16.mxu1 %v7378_v5 }
 0xddf   : > { %6377 = vmatmul.mubr.msk.bf16.vlgmr.msra.gmra.mrb[28].mxu0 %vm4372_vm5, %v4417_v22  ;;  %6385 = vmatmul.mubr.msk.bf16.vlgmr.msra.gmra.mrb[48].mxu1 %vm4372_vm5, %v4418_v45 }
 0xde0   : > { %6389 = vmatpush3.bf16.msra.mxu0 %v8616_v60  ;;  %6397 = vmatpush3.bf16.msra.mxu1 %v8621_v61 }
 0xde1   : > { %6390 = vmatprep.subr.bf16.mxu0 %v7378_v5  ;;  %6398 = vmatprep.subr.bf16.mxu1 %v7378_v5 }
 0xde2   : > { %6400 = vmatprep.mubr.msk.bf16.mxu1 %vm7379_vm0, %v7378_v5  ;;  %6392 = vmatprep.mubr.msk.bf16.mxu0 %vm7379_vm0, %v7378_v5 }
 0xde4   : > { %6391 = vmatpush3.bf16.msra.mxu0 %v4518_v47  ;;  %6399 = vmatpush3.bf16.msra.mxu1 %v4564_v15 }
 0xde5   : > { %6404 = vmatprep.subr.bf16.mxu0 %v7378_v5 }
 0xde7   : > { %v4408_v60 = vpop.xlane.xlu0 %4407 }
 0xde8   : > { %6834 = vrcp.f32 %v4408_v60 }
 0xdf2   : > { %v6835_v61 = vpop.eup %6834 }
 0xdf3   : > { %v4416_v23 = vmul.f32 %v6835_v61, %v8629_v44  ;;  %v6712_v44 = vld [vmem:[#allocation19 + $0x10] sm:$0xff]  }
 0xdf5   : > { %v4420_v24 = vpack.c.bf16 %v4416_v23, %v4416_v23 }
 0xdf7   : > { %v4405_v26 = vpop.xlane.xlu1 %4404  ;;  %6401 = vmatmul.mubr.msk.bf16.vlgmr.msra.gmra.mrb[52].mxu1 %vm4372_vm5, %v4420_v24 }
 0xdf8   : > { %6836 = vrcp.f32 %v4405_v26 }
 0xe02   : > { %v6837_v27 = vpop.eup %6836 }
 0xe03   : > { %v4415_v28 = vmul.f32 %v6837_v27, %v8633_v6  ;;  %v6714_v6 = vld [vmem:[#allocation19 + $0x20] sm:$0xff]  }
 0xe05   : > { %v4419_v49 = vpack.c.bf16 %v4415_v28, %v4415_v28 }
 0xe07   : > { %6393 = vmatmul.mubr.msk.bf16.vlgmr.msra.gmra.mrb[32].mxu0 %vm4372_vm5, %v4419_v49 }
 0xe08   : > { %6420 = vmatprep.mubr.msk.bf16.mxu0 %vm7379_vm0, %v7378_v5  ;;  %6405 = vmatpush3.bf16.msra.mxu0 %v6710_v29 }
 0xe09   : > { %6406 = vmatprep.subr.bf16.mxu0 %v7378_v5 }
 0xe0c   : > { %6407 = vmatpush3.bf16.msra.mxu0 %v6711_v30 }
 0xe0d   : > { %6408 = vmatprep.subr.bf16.mxu0 %v7378_v5 }
 0xe10   : > { %6409 = vmatpush3.bf16.msra.mxu0 %v6712_v44 }
 0xe11   : > { %6410 = vmatprep.subr.bf16.mxu0 %v7378_v5 }
 0xe14   : > { %6411 = vmatpush3.bf16.msra.mxu0 %v6713_v31 }
 0xe15   : > { %6412 = vmatprep.subr.bf16.mxu0 %v7378_v5 }
 0xe18   : > { %6413 = vmatpush3.bf16.msra.mxu0 %v6714_v6 }
 0xe19   : > { %6414 = vmatprep.subr.bf16.mxu0 %v7378_v5 }
 0xe1c   : > { %6415 = vmatpush3.bf16.msra.mxu0 %v6715_v18  ;;  %v5912_v18 = vld [vmem:[%s8955_s3] ss:$0 sm:$0xff]  ;;  %s8961_s3 = sld [smem:[#allocation62_spill]] }
 0xe1d   : > { %6416 = vmatprep.subr.bf16.mxu0 %v7378_v5 }
 0xe20   : > { %6417 = vmatpush3.bf16.msra.mxu0 %v6716_v1  ;;  %v6747_v1 = vld [vmem:[#allocation20 + $0x8c] ss:$16 sps:$4 sm:$0xff]  }
 0xe21   : > { %6418 = vmatprep.subr.bf16.mxu0 %v7378_v5 }
 0xe24   : > { %6419 = vmatpush3.bf16.msra.mxu0 %v6717_v42  ;;  %v6763_v42 = vld [vmem:[#allocation20 + $0xe8] ss:$16 sps:$4 sm:$0xff]  }
 0xeb2   : > { %v4462_v33 = vpop.f32.mrb[28].mxu0  ;;  %v4508_v34 = vpop.f32.mrb[48].mxu1 }
 0xeb3   : > { %v6378_v20 = vpop.f32.mrb[29].mxu0  ;;  %v6386_v35 = vpop.f32.mrb[49].mxu1 }
 0xeb4   : > { %v4465_v36 = vpop.f32.mrb[30].mxu0  ;;  %v4511_v37 = vpop.f32.mrb[50].mxu1 }
 0xeb5   : > { %v6379_v41 = vpop.f32.mrb[31].mxu0  ;;  %v6387_v43 = vpop.f32.mrb[51].mxu1 }
 0xeb6   : > { %v6718_v41 = vld [vmem:[#allocation20] ss:$16 sps:$4 sm:$0xff]   ;;  %v6720_v43 = vld [vmem:[#allocation20 + $0x4] ss:$16 sps:$4 sm:$0xff]  }
 0xeb7   : > { %4989 = vmatprep.subr.bf16.mxu1 %v6720_v43  ;;  %v6782_v43 = vld [vmem:[#allocation22 + $0xe0] sm:$0xff]  }
 0xeb8   : > { %4990 = vmatpush1.bf16.msra.mxu1 %v6718_v41  ;;  %v6781_v41 = vld [vmem:[#allocation22 + $0x18] sm:$0xff]  }
 0xeca   : > { %v4600_v48 = vpop.f32.mrb[52].mxu1 }
 0xecb   : > { %v4622_v14 = vcombine.low %v4508_v34, %v4600_v48  ;;  %v4623_v50 = vcombine.high %v4508_v34, %v4600_v48  ;;  %v6402_v51 = vpop.f32.mrb[53].mxu1  ;;  %v6721_v48 = vld [vmem:[#allocation20 + $0x8] ss:$16 sps:$4 sm:$0xff]  }
 0xecc   : > { %v4603_v7 = vpop.f32.mrb[54].mxu1  ;;  %v6729_v51 = vld [vmem:[#allocation20 + $0x2c] ss:$16 sps:$4 sm:$0xff]  }
 0xecd   : > { %v6403_v9 = vpop.f32.mrb[55].mxu1  ;;  %v4630_v40 = vrot.slane %v4622_v14, %v8138_v25  ;;  %v4637_v55 = vrot.slane %v4623_v50, %v8138_v25  ;;  %v6723_v14 = vld [vmem:[#allocation20 + $0xc] ss:$16 sps:$4 sm:$0xff]   ;;  %v6726_v50 = vld [vmem:[#allocation20 + $0x24] ss:$16 sps:$4 sm:$0xff]  }
 0xece   : > { %5174 = vmatprep.subr.bf16.mxu0 %v6723_v14  ;;  %v6724_v7 = vld [vmem:[#allocation20 + $0x20] ss:$16 sps:$4 sm:$0xff]   ;;  %4991 = vmatprep.subr.bf16.mxu1 %v6726_v50  ;;  %v6727_v9 = vld [vmem:[#allocation20 + $0x28] ss:$16 sps:$4 sm:$0xff]  }
 0xecf   : > { %4992 = vmatpush1.bf16.msra.mxu1 %v6724_v7  ;;  %v6784_v14 = vld [vmem:[#allocation22 + $0xa0] sm:$0xff]   ;;  %v6787_v7 = vld [vmem:[#allocation22 + $0x68] sm:$0xff]  }
 0xed0   : > { %v6785_v50 = vld [vmem:[#allocation22 + $0x20] sm:$0xff]  }
 0xeda   : > { %v4554_v53 = vpop.f32.mrb[32].mxu0 }
 0xedb   : > { %v4606_v54 = vcombine.low %v4462_v33, %v4554_v53  ;;  %v4607_v38 = vcombine.high %v4462_v33, %v4554_v53  ;;  %v6394_v39 = vpop.f32.mrb[33].mxu0  ;;  %v6732_v53 = vld [vmem:[#allocation20 + $0x44] ss:$16 sps:$4 sm:$0xff]  }
 0xedc   : > { %v4557_v11 = vpop.f32.mrb[34].mxu0  ;;  %4993 = vmatprep.subr.bf16.mxu1 %v6732_v53  ;;  %v6789_v53 = vld [vmem:[#allocation22 + $0x28] sm:$0xff]  }
 0xedd   : > { %v4614_v13 = vrot.slane %v4606_v54, %v8138_v25  ;;  %v4621_v56 = vrot.slane %v4607_v38, %v8138_v25  ;;  %v6395_v57 = vpop.f32.mrb[35].mxu0  ;;  %v6730_v54 = vld [vmem:[#allocation20 + $0x40] ss:$16 sps:$4 sm:$0xff]   ;;  %v6733_v38 = vld [vmem:[#allocation20 + $0x48] ss:$16 sps:$4 sm:$0xff]  }
 0xede   : > { %4994 = vmatpush1.bf16.msra.mxu1 %v6730_v54  ;;  %v6736_v57 = vld [vmem:[#allocation20 + $0x60] ss:$16 sps:$4 sm:$0xff]  }
 0xedf   : > { %v4638_v58 = vcombine.low %v4614_v13, %v4630_v40  ;;  %v4639_v63 = vcombine.high %v4614_v13, %v4630_v40  ;;  %v4654_v0 = vcombine.low %v4621_v56, %v4637_v55  ;;  %v4655_v17 = vcombine.high %v4621_v56, %v4637_v55  ;;  %v6738_v13 = vld [vmem:[#allocation20 + $0x64] ss:$16 sps:$4 sm:$0xff]   ;;  %v6741_v56 = vld [vmem:[#allocation20 + $0x6c] ss:$16 sps:$4 sm:$0xff]  }
 0xee0   : > { %4995 = vmatprep.subr.bf16.mxu1 %v6738_v13  ;;  %v6791_v54 = vld [vmem:[#allocation22 + $0x70] sm:$0xff]   ;;  %v6797_v13 = vld [vmem:[#allocation22 + $0x38] sm:$0xff]  }
 0xee1   : > { %v4646_v3 = vrot.slane %v4638_v58, %v8141_v32  ;;  %v4653_v2 = vrot.slane %v4639_v63, %v8141_v32  ;;  %v4662_v4 = vrot.slane %v4654_v0, %v8141_v32  ;;  %v4669_v10 = vrot.slane %v4655_v17, %v8141_v32  ;;  %v6739_v58 = vld [vmem:[#allocation20 + $0x68] ss:$16 sps:$4 sm:$0xff]   ;;  %v6742_v63 = vld [vmem:[#allocation20 + $0x80] ss:$16 sps:$4 sm:$0xff]   ;;  %v6744_v0 = vld [vmem:[#allocation20 + $0x84] ss:$16 sps:$4 sm:$0xff]  }
 0xee2   : > { %4996 = vmatpush1.bf16.msra.mxu1 %v6736_v57  ;;  %v6745_v17 = vld [vmem:[#allocation20 + $0x88] ss:$16 sps:$4 sm:$0xff]   ;;  %v4897_v57 = vld [vmem:[%s8958_s11] sm:$0x3] }
 0xee3   : > { %v4674_v59 = vcombine.low %v4646_v3, %v4653_v2  ;;  %v5910_v12 = vcombine.high %v4646_v3, %v4653_v2  ;;  %v4690_v62 = vcombine.low %v4662_v4, %v4669_v10  ;;  %v5911_v8 = vcombine.high %v4662_v4, %v4669_v10  ;;  %v6750_v3 = vld [vmem:[#allocation20 + $0xa4] ss:$16 sps:$4 sm:$0xff]   ;;  %4997 = vmatprep.subr.bf16.mxu1 %v6744_v0  ;;  %v6753_v2 = vld [vmem:[#allocation20 + $0xac] ss:$16 sps:$4 sm:$0xff]   ;;  %v6748_v4 = vld [vmem:[#allocation20 + $0xa0] ss:$16 sps:$4 sm:$0xff]  }
 0xee4   : > { %v6751_v10 = vld [vmem:[#allocation20 + $0xa8] ss:$16 sps:$4 sm:$0xff]  }
 0xee5   : > { %v4681_v19 = vrot.slane %v4674_v59, %v8138_v25  ;;  %v4689_v46 = vrot.slane %v5910_v12, %v8138_v25  ;;  %v4697_v22 = vrot.slane %v4690_v62, %v8138_v25  ;;  %v4705_v45 = vrot.slane %v5911_v8, %v8138_v25  ;;  %v6756_v59 = vld [vmem:[#allocation20 + $0xc4] ss:$16 sps:$4 sm:$0xff]   ;;  %v6759_v12 = vld [vmem:[#allocation20 + $0xcc] ss:$16 sps:$4 sm:$0xff]   ;;  %v6754_v8 = vld [vmem:[#allocation20 + $0xc0] ss:$16 sps:$4 sm:$0xff]  }
 0xee6   : > { %4998 = vmatpush1.bf16.msra.mxu1 %v6742_v63  ;;  %v7385_v62 = vmov 0   ;;  %v4905_v63 = vsub.s32 1, %v8135_v21 }
 0xee7   : > { %v4707_v52 = vcombine.high %v4681_v19, %v4689_v46  ;;  %v4723_v47 = vcombine.high %v4697_v22, %v4705_v45  ;;  %v4706_v15 = vcombine.low %v4681_v19, %v4689_v46  ;;  %v4722_v60 = vcombine.low %v4697_v22, %v4705_v45  ;;  %4999 = vmatprep.subr.bf16.mxu1 %v6750_v3  ;;  %v6757_v19 = vld [vmem:[#allocation20 + $0xc8] ss:$16 sps:$4 sm:$0xff]   ;;  %v6762_v46 = vld [vmem:[#allocation20 + $0xe4] ss:$16 sps:$4 sm:$0xff]   ;;  %v6765_v22 = vld [vmem:[#allocation20 + $0xec] ss:$16 sps:$4 sm:$0xff]  }
 0xee8   : > { %5021 = vmatprep.mubr.bf16.mxu1 %v7385_v62  ;;  %v6760_v45 = vld [vmem:[#allocation20 + $0xe0] ss:$16 sps:$4 sm:$0xff]  }
 0xee9   : > { %v4721_v61 = vrot.slane %v4707_v52, %v8141_v32  ;;  %v4737_v23 = vrot.slane %v4723_v47, %v8141_v32  ;;  %v4714_v5 = vrot.slane %v4706_v15, %v8141_v32  ;;  %v4730_v24 = vrot.slane %v4722_v60, %v8141_v32  ;;  %v6766_v52 = vld [vmem:[#allocation22 + $0xc0] sm:$0xff]  }
 0xeea   : > { %5000 = vmatpush1.bf16.msra.mxu1 %v6748_v4  ;;  %v6767_v47 = vld [vmem:[#allocation22 + $0x40] sm:$0xff]  }
 0xeeb   : > { %v4740_v26 = vcombine.low %v4721_v61, %v4737_v23  ;;  %v4739_v27 = vcombine.high %v4714_v5, %v4730_v24  ;;  %v4741_v28 = vcombine.high %v4721_v61, %v4737_v23  ;;  %v4738_v49 = vcombine.low %v4714_v5, %v4730_v24  ;;  %5001 = vmatprep.subr.bf16.mxu1 %v6756_v59  ;;  %v5921_v5 = vld [vmem:[%s8956_s15] ss:$0 sm:$0xff]  ;;  %s5549_s15 = sshll.u32 %s965_s14, 4  ;;  %s8744_s15 = int_to_ptr.vmem [resolvable:$true] %s5549_s15 }
 0xeec   : > { %s7211_s20 = scalar_lea.vmem %s8744_s15, 128  ;;  %p7218_p4 = scmp.lt.s32.totalorder %s8744_s15, %s7216_s19 }
 0xeed   : > { %4747 = vrot.lane.b32.xlu1 %v4740_v26, %s7380_s1  ;;  %4743 = vrot.lane.b32.xlu0 %v4739_v27, %s7382_s23  ;;  %s8957_s23 = sld [smem:[#allocation58_spill]]  ;;  %p7212_p11 = scmp.ne.s32.totalorder %s8744_s15, %s7211_s20 }
 0xeee   : > { %5002 = vmatpush1.bf16.msra.mxu1 %v6754_v8  ;;  %p7219_p10 = scmp.lt.s32.totalorder %s7217_s9, %s7211_s20 }
 0xeef   : > { %5003 = vmatprep.subr.bf16.mxu1 %v6762_v46  ;;  %p7213_p3 = pnand %p7212_p11, %p8963_p7 }
 0xef0   : > { %p7220_p12 = por %p7219_p10, %p7218_p4 }
 0xef1   : > { %4751 = vrot.lane.b32.xlu1 %v4741_v28, %s7381_s2  ;;  %p7214_p13 = pneg %p7213_p3 }
 0xef2   : > { %5004 = vmatpush1.bf16.msra.mxu1 %v6760_v45 }
 0xef3   : > { %6108 = vmatprep.subr.bf16.mxu1 %v6766_v52  ;;  %v5922_v26 = vld [vmem:[%s8957_s23] ss:$0 sm:$0xff]  ;;  %s8962_s23 = sld [smem:[#allocation63_spill]]  ;;  %p7221_p5 = pnand %p7220_p12, %p7214_p13 }
 0xef9   : > { %s8742_s21 = scalar_lea.hbm %s8962_s23, %s5990_s17 }
 0xf5f   : > { %v4748_v25 = vpop.permute.xlu1 %4747  ;;  %v4744_v29 = vpop.permute.xlu0 %4743 }
 0xf60   : > { %v4754_v30 = vsel %vm2103_vm1, %v4738_v49, %v4744_v29  ;;  %v6768_v49 = vld [vmem:[#allocation22 + $0x80] sm:$0xff]  }
 0xf61   : > { %v4755_v31 = vsel %vm2658_vm3, %v4754_v30, %v4748_v25  ;;  %v6769_v25 = vld [vmem:[#allocation22] sm:$0xff]   ;;  %v6770_v30 = vld [vmem:[#allocation22 + $0xc8] sm:$0xff]  }
 0xf63   : > { %v4752_v44 = vpop.permute.xlu1 %4751 }
 0xf64   : > { %v4756_v6 = vsel %vm2660_vm4, %v4755_v31, %v4752_v44  ;;  %v6771_v44 = vld [vmem:[#allocation22 + $0x48] sm:$0xff]  }
 0xf65   : > { %v4757_v32 = vpack.c.bf16 %v4756_v6, %v4756_v6  ;;  %v6772_v31 = vld [vmem:[#allocation22 + $0x88] sm:$0xff]  }
 0xf66   : > { %v6773_v6 = vld [vmem:[#allocation22 + $0x8] sm:$0xff]  }
 0xf67   : > { %6421 = vmatmul.mubr.bf16.vlgmr.msra.gmra.mrb[36].mxu0 %v4757_v32  ;;  %v6774_v32 = vld [vmem:[#allocation22 + $0xd0] sm:$0xff]  }
 0xf68   : > { %5175 = vmatpush1.bf16.msra.mxu0 %v6721_v48  ;;  %5206 = vmatprep.mubr.bf16.mxu0 %v7385_v62  ;;  %v6783_v48 = vld [vmem:[#allocation22 + $0x60] sm:$0xff]  }
 0xf69   : > { %5176 = vmatprep.subr.bf16.mxu0 %v6729_v51  ;;  %v6786_v51 = vld [vmem:[#allocation22 + $0xe8] sm:$0xff]  }
 0xf6c   : > { %5177 = vmatpush1.bf16.msra.mxu0 %v6727_v9  ;;  %v6788_v9 = vld [vmem:[#allocation22 + $0xa8] sm:$0xff]  }
0x103a   : > { %v4846_v33 = vpop.f32.mrb[36].mxu0 }
0x103b   : > { %v4847_v34 = vadd.f32 %v5912_v18, %v4846_v33  ;;  %v6422_v20 = vpop.f32.mrb[37].mxu0  ;;  %v6775_v18 = vld [vmem:[#allocation22 + $0x50] sm:$0xff]  }
0x103c   : > { %v4849_v35 = vpop.f32.mrb[38].mxu0  ;;  %v6776_v33 = vld [vmem:[#allocation22 + $0x90] sm:$0xff]   ;;  %v6778_v20 = vld [vmem:[#allocation22 + $0xd8] sm:$0xff]  }
0x103d   : > { %v8713_v36 = vadd.f32 %v4847_v34, %v8350_v16  ;;  %v6423_v37 = vpop.f32.mrb[39].mxu0  ;;  %v6735_v16 = vld [vmem:[#allocation20 + $0x4c] ss:$16 sps:$4 sm:$0xff]   ;;  %v6777_v34 = vld [vmem:[#allocation22 + $0x10] sm:$0xff]  }
0x103e   : > { %5178 = vmatprep.subr.bf16.mxu0 %v6735_v16  ;;  %v6779_v35 = vld [vmem:[#allocation22 + $0x58] sm:$0xff]   ;;  %v6790_v16 = vld [vmem:[#allocation22 + $0xf0] sm:$0xff]  }
0x103f   : > { %4855 = vadd.xlane.f32.xlu0 %v8713_v36  ;;  %5179 = vmatpush1.bf16.msra.mxu0 %v6733_v38  ;;  %v6780_v37 = vld [vmem:[#allocation22 + $0x98] sm:$0xff]   ;;  %v6792_v38 = vld [vmem:[#allocation22 + $0xb0] sm:$0xff]  }
0x1040   : > { %5180 = vmatprep.subr.bf16.mxu0 %v6741_v56  ;;  %v4901_v56 = vsub.s32 0, %v8135_v21 }
0x1042   : > { %v4902_v0 = vrot.slane %v4897_v57, %v4901_v56 }
0x1043   : > { %5181 = vmatpush1.bf16.msra.mxu0 %v6739_v58  ;;  %v5082_v58 = vld [vmem:[%s8958_s11 + $0x2] sm:$0x3] }
0x1044   : > { %5182 = vmatprep.subr.bf16.mxu0 %v6747_v1  ;;  %v4906_v1 = vrot.slane %v4897_v57, %v4905_v63  ;;  %v5091_v3 = vrot.slane %v5082_v58, %v4905_v63 }
0x1047   : > { %5183 = vmatpush1.bf16.msra.mxu0 %v6745_v17  ;;  %v5087_v17 = vrot.slane %v5082_v58, %v4901_v56 }
0x1048   : > { %5184 = vmatprep.subr.bf16.mxu0 %v6753_v2 }
0x104b   : > { %5185 = vmatpush1.bf16.msra.mxu0 %v6751_v10 }
0x104c   : > { %5186 = vmatprep.subr.bf16.mxu0 %v6759_v12 }
0x104f   : > { %5187 = vmatpush1.bf16.msra.mxu0 %v6757_v19 }
0x1050   : > { %5188 = vmatprep.subr.bf16.mxu0 %v6765_v22 }
0x1053   : > { %5189 = vmatpush1.bf16.msra.mxu0 %v6763_v42 }
0x1054   : > { %6130 = vmatprep.subr.bf16.mxu0 %v6767_v47 }
0x10cc   : > { %v4856_v39 = vpop.xlane.xlu0 %4855 }
0x10cd   : > { %v4857_v11 = vmul.f32 0.0078125, %v4856_v39  ;;  %v6793_v39 = vld [vmem:[#allocation22 + $0x30] sm:$0xff]  }
0x10cf   : > { %v4858_v40 = vsub.f32 %v8713_v36, %v4857_v11  ;;  %v6794_v11 = vld [vmem:[#allocation22 + $0xf8] sm:$0xff]  }
0x10d1   : > { %v4859_v55 = vmul.f32 %v4858_v40, %v4858_v40 }
0x10d3   : > { %4860 = vadd.xlane.f32.xlu1 %v4859_v55  ;;  %v6796_v55 = vld [vmem:[#allocation22 + $0xb8] sm:$0xff]  }
0x1160   : > { %v4861_v15 = vpop.xlane.xlu1 %4860 }
0x1161   : > { %v4862_v60 = vmul.f32 0.0078125, %v4861_v15 }
0x1163   : > { %v4863_v61 = vadd.f32 1e-05, %v4862_v60 }
0x1165   : > { %6838 = vrsqrt.f32 %v4863_v61 }
0x116f   : > { %v6839_v23 = vpop.eup %6838 }
0x1170   : > { %v4865_v24 = vmul.f32 %v6839_v23, %v4858_v40  ;;  %v6795_v40 = vld [vmem:[#allocation22 + $0x78] sm:$0xff]  }
0x1172   : > { %v4872_v27 = vmul.f32 %v5921_v5, %v4865_v24 }
0x1174   : > { %v4879_v28 = vadd.f32 %v5922_v26, %v4872_v27 }
0x1176   : > { %v4880_v29 = vpack.c.bf16 %v4879_v28, %v4879_v28 }
0x1178   : > { %5022 = vmatmul.mubr.bf16.vlgmr.msra.gmra.mrb[56].mxu1 %v4880_v29  ;;  %5207 = vmatmul.mubr.bf16.vlgmr.msra.gmra.mrb[40].mxu0 %v4880_v29 }
0x1179   : > { %6109 = vmatpush3.bf16.msra.mxu1 %v6768_v49  ;;  %6131 = vmatpush3.bf16.msra.mxu0 %v6769_v25 }
0x117a   : > { %6110 = vmatprep.subr.bf16.mxu1 %v6770_v30  ;;  %6132 = vmatprep.subr.bf16.mxu0 %v6771_v44  ;;  %v5987_v44 = vld [vmem:[%s8961_s3] ss:$0 sm:$0xff] }
0x117d   : > { %6111 = vmatpush3.bf16.msra.mxu1 %v6772_v31  ;;  %6133 = vmatpush3.bf16.msra.mxu0 %v6773_v6 }
0x117e   : > { %6112 = vmatprep.subr.bf16.mxu1 %v6774_v32  ;;  %6134 = vmatprep.subr.bf16.mxu0 %v6775_v18 }
0x1181   : > { %6113 = vmatpush3.bf16.msra.mxu1 %v6776_v33  ;;  %6135 = vmatpush3.bf16.msra.mxu0 %v6777_v34 }
0x1182   : > { %6114 = vmatprep.subr.bf16.mxu1 %v6778_v20  ;;  %6136 = vmatprep.subr.bf16.mxu0 %v6779_v35 }
0x1185   : > { %6115 = vmatpush3.bf16.msra.mxu1 %v6780_v37  ;;  %6137 = vmatpush3.bf16.msra.mxu0 %v6781_v41 }
0x1186   : > { %6116 = vmatprep.subr.bf16.mxu1 %v6782_v43  ;;  %6138 = vmatprep.subr.bf16.mxu0 %v6783_v48 }
0x1189   : > { %6117 = vmatpush3.bf16.msra.mxu1 %v6784_v14  ;;  %6139 = vmatpush3.bf16.msra.mxu0 %v6785_v50 }
0x118a   : > { %6118 = vmatprep.subr.bf16.mxu1 %v6786_v51  ;;  %6140 = vmatprep.subr.bf16.mxu0 %v6787_v7 }
0x118d   : > { %6119 = vmatpush3.bf16.msra.mxu1 %v6788_v9  ;;  %6141 = vmatpush3.bf16.msra.mxu0 %v6789_v53 }
0x118e   : > { %6120 = vmatprep.subr.bf16.mxu1 %v6790_v16  ;;  %6142 = vmatprep.subr.bf16.mxu0 %v6791_v54 }
0x1191   : > { %6121 = vmatpush3.bf16.msra.mxu1 %v6792_v38  ;;  %6143 = vmatpush3.bf16.msra.mxu0 %v6793_v39 }
0x1192   : > { %6122 = vmatprep.subr.bf16.mxu1 %v6794_v11  ;;  %6144 = vmatprep.subr.bf16.mxu0 %v6795_v40 }
0x1195   : > { %6123 = vmatpush3.bf16.msra.mxu1 %v6796_v55  ;;  %6145 = vmatpush3.bf16.msra.mxu0 %v6797_v13 }
0x124b   : > { %v5023_v2 = vpop.f32.mrb[56].mxu1  ;;  %v5208_v4 = vpop.f32.mrb[40].mxu0 }
0x124c   : > { %v5024_v10 = vadd.f32 %v5023_v2, %v4902_v0  ;;  %v5209_v59 = vadd.f32 %v5208_v4, %v5087_v17  ;;  %v5025_v12 = vpop.f32.mrb[57].mxu1  ;;  %v5210_v62 = vpop.f32.mrb[41].mxu0 }
0x124d   : > { %v5026_v8 = vadd.f32 %v5025_v12, %v4906_v1  ;;  %v5211_v19 = vadd.f32 %v5210_v62, %v5091_v3  ;;  %v5027_v46 = vpop.f32.mrb[58].mxu1  ;;  %v5212_v22 = vpop.f32.mrb[42].mxu0 }
0x124e   : > { %v5030_v45 = vmax.f32 %v5024_v10, 0.0  ;;  %v5215_v42 = vmax.f32 %v5209_v59, 0.0  ;;  %v5028_v52 = vpop.f32.mrb[59].mxu1  ;;  %v5213_v47 = vpop.f32.mrb[43].mxu0 }
0x124f   : > { %v5031_v21 = vmax.f32 %v5026_v8, 0.0  ;;  %v5216_v15 = vmax.f32 %v5211_v19, 0.0 }
0x1250   : > { %v5032_v23 = vpack.c.bf16 %v5030_v45, %v5030_v45  ;;  %v5217_v5 = vpack.c.bf16 %v5215_v42, %v5215_v42 }
0x1251   : > { %v5033_v60 = vpack.c.bf16 %v5031_v21, %v5031_v21  ;;  %v5218_v61 = vpack.c.bf16 %v5216_v15, %v5216_v15 }
0x1253   : > { %5379 = vmatprep.mubr.bf16.mxu1 %v5218_v61  ;;  %5515 = vmatprep.mubr.bf16.mxu0 %v5033_v60 }
0x1254   : > { %5380 = vmatmul.mubr.bf16.vlgmr.msra.gmra.mrb[60].mxu1 %v5217_v5  ;;  %5516 = vmatmul.mubr.bf16.vlgmr.msra.gmra.mrb[44].mxu0 %v5032_v23 }
0x1327   : > { %v6124_v24 = vpop.f32.mrb[60].mxu1  ;;  %v6146_v26 = vpop.f32.mrb[44].mxu0 }
0x1328   : > { %v6125_v27 = vpop.f32.mrb[61].mxu1  ;;  %v6147_v28 = vpop.f32.mrb[45].mxu0 }
0x1329   : > { %v6126_v49 = vadd.f32 %v6125_v27, %v6124_v24  ;;  %v6148_v25 = vadd.f32 %v6147_v28, %v6146_v26  ;;  %v6127_v29 = vpop.f32.mrb[62].mxu1  ;;  %v6149_v30 = vpop.f32.mrb[46].mxu0 }
0x132a   : > { %v6128_v31 = vpop.f32.mrb[63].mxu1  ;;  %v6150_v6 = vpop.f32.mrb[47].mxu0 }
0x132b   : > { %v5518_v32 = vadd.f32 %v6148_v25, %v6126_v49 }
0x132d   : > { %v5530_v18 = vadd.f32 %v5987_v44, %v5518_v32 }
0x132f   : > { %v5531_v33 = vadd.f32 %v5530_v18, %v8713_v36 }
0x1331   : > { %5532 = vst [vmem:[%s965_s14] sm:$0xff] %v5531_v33 }
0x1332   : > { %7224 = shalt.err (!%p7221_p5)
}
0x1333   : > { %s7225_s0 = scalar_lea.hbm %s8742_s21, 128  ;;  %s7229_s4 = scalar_lea.hbm %s8962_s23, 512 }
0x1334   : > { %p7226_p0 = scmp.ne.s32.totalorder %s8742_s21, %s7225_s0  ;;  %p7230_p1 = scmp.lt.u32.totalorder %s8742_s21, %s8962_s23 }
0x1335   : > { %p7231_p2 = scmp.lt.u32.totalorder %s7229_s4, %s7225_s0  ;;  %p7233_p11 = scmp.lt.u32.totalorder %s7225_s0, %s8742_s21 }
0x1336   : > { %p7227_p9 = pnand %p7226_p0, %p8963_p7 }
0x1337   : > { %p7232_p8 = por %p7231_p2, %p7230_p1 }
0x1338   : > { %p7228_p6 = pneg %p7227_p9 }
0x1339   : > { %p7234_p3 = por %p7233_p11, %p7232_p8 }
0x133b   : > { %p7235_p13 = pnand %p7234_p3, %p7228_p6 }
0x133d   : > { %7238 = shalt.err (!%p7235_p13)
}
0x133e   : > { %6473 = dma.vmem_to_hbm [thread:$0]  (%p8963_p7), %s8744_s15, 128, %s8742_s21, %s5534_s25  }
0x133f PF: > { %s8964_s3 = sld [smem:[#allocation32_spill]]  ;;  %p6541_p4 = scmp.ge.s32.totalorder %s7357_s7, 2 }
0x1340   : > { %p8965_p10 = scmp.ne.s32.totalorder %s8926_s5, 0 }
0x1342   : > { %p6517_p12 = pnand %p6541_p4, %p8965_p10 }
0x1345   : > { %s5561_s17 = sand.u32 1, %s8964_s3  }
0x1346   : > { %s5562_s14 = scalar_lea.sflag [#allocation4], %s5561_s17 }
0x1347   : > { %7312 = dma.done.wait (!%p6517_p12), %s5562_s14, 128  }
0x1348   : > { %7314 = vsyncadd (!%p6517_p12), %s5562_s14, 4294967168  ;;  %s47_s7 = sadd.s32 1, %s7357_s7   ;;  %s8966_s25 = sld [smem:[#allocation33_spill]] }
0x1349   : > { %p44_p5 = scmp.ge.s32.totalorder %s47_s7, 6   ;;  %s8967_s5 = sld [smem:[#allocation34_spill]] }
0x134a   : > { %s8968_s26 = sld [smem:[#allocation37_spill]]  ;;  %s8969_s18 = sld [smem:[#allocation39_spill]] }
0x134b   : > { %s8970_s4 = smov %s7321_s30  ;;  %s8971_s30 = smov %s7325_s24 }
0x134c   : > { %s8972_s24 = smov %s7924_s8  ;;  %s8973_s1 = smov %s8984_s29 }
0x134d   : > { %s8974_s2 = smov %s7353_s27  ;;  %s8975_s6 = smov %s8978_s16 }
0x134e   :  { %46 = sbr.rel (!%p44_p5) target bundleno = 41 (0x29), region = 221 }
0x1350   : > { %s8976_s27 = smov %s8969_s18 }
0x1355   :  { %5567 = vsyncpa [#allocation3], 1 }
0x1356   :  { %5569 = vsyncpa [#allocation3 + $0x1], 1 }
0x1357   :  { %5570 = vsyncpa [#allocation6], 1 }
0x1358   :  { %5572 = vsyncpa [#allocation6 + $0x1], 1 }
0x1359   :  { %5573 = vsyncpa [#allocation9], 1 }
0x135a   :  { %5574 = vsyncpa [#allocation12], 1 }
0x135b   :  { %5575 = vsyncpa [#allocation15], 1 }
0x135c   :  { %5576 = vsyncpa [#allocation18], 1 }
0x135d   :  { %5577 = vsyncpa [#allocation21], 1 }
0x135e   :  { %5578 = vsyncpa [#allocation4], 1 }
0x135f   :  { %5580 = vsyncpa [#allocation4 + $0x1], 1 }

</bundles_post_ra>
